<compile_context>
chip_gen: v5e
topology: v5e:2x2
jax: 0.10.0
libtpu: 0.0.40
codegen_flags: <defaults>
</compile_context>

<pallas_src>
import functools

import jax
import jax.numpy as jnp
from jax.experimental import pallas as pl
from jax.experimental.pallas import tpu as pltpu


def cnn_ndvi_kernel(x_ref, pos_ref, wl_ref, w0_ref, b0_ref, wh_ref, bh_ref,
                    wf_ref, bhead_ref, out_ref, *, use_mxu):
    TB = out_ref.shape[1]            # batch tile
    TBL = x_ref.shape[1]             # TB * L flat lane axis (lane = l*TB + b)
    L = TBL // TB                    # sequence length
    C, K = w0_ref.shape              # channels, kernel size
    NH = wh_ref.shape[0]             # hidden conv layers (num_layers - 1)
    P = K // 2                       # "same" padding (odd K)

    # Edge masks, hoisted ONCE per grid step.  pos[j] = l for lane j = l*TB+b
    # (precomputed on the wrapper side - no in-kernel integer div/mod).
    pos = pos_ref[...]                                          # (1, TB*L) i32
    masks = {s: jnp.logical_and(pos + s >= 0, pos + s < L)
             for s in range(-P, P + 1) if s != 0}
    masks_full = ({s: jnp.broadcast_to(m, (C, TBL)) for s, m in masks.items()}
                  if use_mxu else None)                         # hoisted too

    def shifted(v, s, full=False):
        # v[..., lane(l, b)] -> v[..., lane(l+s, b)], zero outside [0, L).
        if s == 0:
            return v
        r = pltpu.roll(v, shift=(-s * TB) % TBL, axis=1)        # XLU lane rotate
        return jnp.where(masks_full[s] if full else masks[s], r, 0.0)

    # ---- first conv (Cin = 1): VPU broadcast-FMA over the K taps ----
    x = x_ref[...]                                              # (1, TB*L)
    h = jnp.zeros((C, TBL), jnp.float32)
    for k in range(K):
        h = h + w0_ref[:, k:k + 1] * shifted(x, k - P)          # (C,1)*(1,TBL)
    h = jnp.maximum(h + b0_ref[...], 0.0)                       # (C, TB*L)

    # ---- hidden convs: per-tap accumulation, NO concatenate ----
    for i in range(NH):
        wi = wh_ref[i]                                          # (C, K*C), col = k*C+ci
        acc = jnp.zeros((C, TBL), jnp.float32)
        if use_mxu:
            # larger C: K small matmuls accumulated in f32
            for k in range(K):
                acc = acc + jnp.dot(wi[:, k * C:(k + 1) * C],
                                    shifted(h, k - P, full=True),
                                    preferred_element_type=jnp.float32)
        else:
            # small C*K: VPU broadcast-FMA path (MXU would be badly undersized)
            for ci in range(C):
                row = h[ci:ci + 1, :]                           # (1, TB*L)
                for k in range(K):
                    col = k * C + ci
                    acc = acc + wi[:, col:col + 1] * shifted(row, k - P)
        h = jnp.maximum(acc + bh_ref[i], 0.0)                   # (C, TB*L)

    # ---- fused head: 1x1 conv (C->1) + Linear(L, 1) ----
    y = jnp.sum(h * wf_ref[...], axis=0, keepdims=True)         # (1, TB*L)
    yw = y * wl_ref[...]                                        # * wl[l] per lane

    # Segment sum over l via binary window doubling: seg[lane b] (l == 0 slot)
    # ends up holding sum_l yw[l*TB + b]; extract with a static lane slice.
    seg = jnp.zeros_like(yw)
    pw, width, covered, k = yw, 1, 0, 0
    while (1 << k) <= L:
        if (L >> k) & 1:
            term = pw if covered == 0 else pltpu.roll(
                pw, shift=(-covered * TB) % TBL, axis=1)
            seg = seg + term
            covered += width
        k += 1
        if (1 << k) <= L:
            pw = pw + pltpu.roll(pw, shift=(-width * TB) % TBL, axis=1)
            width *= 2

    out_ref[...] = seg[:, 0:TB] + bhead_ref[0, 0]               # scalar from SMEM


def init_params(key, sequence_length, num_channels, kernel_size, num_layers):
    """Parameters in PyTorch layout (Conv1d: (Cout, Cin, K), Linear: (out, in))."""
    assert kernel_size % 2 == 1, "padding=K//2 gives 'same' length only for odd K"
    assert num_layers >= 2
    C, K, L = num_channels, kernel_size, sequence_length
    NH = num_layers - 1
    ks = jax.random.split(key, 8)
    s = 0.1
    return dict(
        w0=s * jax.random.normal(ks[0], (C, 1, K), jnp.float32),      # first conv
        b0=s * jax.random.normal(ks[1], (C,), jnp.float32),
        wh=s * jax.random.normal(ks[2], (NH, C, C, K), jnp.float32),  # hidden convs
        bh=s * jax.random.normal(ks[3], (NH, C), jnp.float32),
        wf=s * jax.random.normal(ks[4], (1, C, 1), jnp.float32),      # final 1x1 conv
        bf=s * jax.random.normal(ks[5], (1,), jnp.float32),
        wl=s * jax.random.normal(ks[6], (1, L), jnp.float32),         # Linear(L, 1)
        bl=s * jax.random.normal(ks[7], (1,), jnp.float32),
    )


def _vmem_capacity_bytes():
    try:
        return int(pltpu.get_tpu_info().vmem_capacity_bytes)
    except Exception:
        return 64 * 1024 * 1024           # conservative default (v7x per-core VMEM)


def _pick_batch_tile(B, L, C, K, act_budget_bytes):
    if B <= 256:
        return B                          # single grid step; blocks == full arrays
    per_row = (2 * C + K + 16) * L * 4    # rough VMEM bytes per batch row
    tb = act_budget_bytes // max(per_row, 1)
    tb = max(128, min(1024, (tb // 128) * 128))
    # keep at least 2 grid steps so pipelining / v7x megacore has work to split
    while tb > 128 and -(-B // tb) < 2:
        tb -= 128
    return tb


def cnn_ndvi_forward(ndvi, years, seasons, params, *, batch_tile=None):
    # years / seasons are unused by the PyTorch forward; kept for signature parity.
    del years, seasons
    ndvi = ndvi.astype(jnp.float32)
    B, L = ndvi.shape
    C, _, K = params["w0"].shape
    NH = params["wh"].shape[0]

    vmem_cap = _vmem_capacity_bytes()
    vmem_limit = min(vmem_cap * 3 // 4, 100 * 1024 * 1024)     # ~48 MiB v7x, ~96 MiB v5e/v6e

    if batch_tile is None:
        TB = _pick_batch_tile(B, L, C, K, vmem_limit * 3 // 5)
    else:
        TB = max(int(batch_tile), 1)
        if TB < B and TB % 128 != 0:      # multi-step grids need (8,128)-aligned blocks
            TB = ((TB + 127) // 128) * 128
    Bp = -(-B // TB) * TB
    G = Bp // TB

    if Bp != B:
        ndvi = jnp.pad(ndvi, ((0, Bp - B), (0, 0)))            # zero-pad ragged batch
    # l-major / batch-minor flat lane layout per tile: lane = l*TB + b
    x_flat = ndvi.reshape(G, TB, L).transpose(0, 2, 1).reshape(1, Bp * L)

    # resident per-lane tables (identical for every grid step)
    pos = (jnp.arange(TB * L, dtype=jnp.int32) // TB).reshape(1, TB * L)
    wl = params["wl"][0].astype(jnp.float32)                   # (L,)
    wl_tiled = jnp.repeat(wl, TB).reshape(1, TB * L)           # wl[l] at lane l*TB+b

    # ---- one-time weight packing into kernel layout (wrapper side) ----
    w0 = params["w0"][:, 0, :]                                 # (C, K)
    b0 = params["b0"][:, None]                                 # (C, 1)
    # (NH, Cout, Cin, K) -> (NH, Cout, K*Cin), column index k*C + ci
    wh = jnp.transpose(params["wh"], (0, 1, 3, 2)).reshape(NH, C, K * C)
    bh = params["bh"][:, :, None]                              # (NH, C, 1)
    wf = params["wf"][0, :, :]                                 # (C, 1)
    # fused bias: final-conv bias routed through the Linear layer + Linear bias
    bhead = (params["bf"][0] * jnp.sum(wl) + params["bl"][0]).reshape(1, 1)

    use_mxu = (C * K) >= 128
    kernel = functools.partial(cnn_ndvi_kernel, use_mxu=use_mxu)

    const2 = lambda i: (0, 0)
    const3 = lambda i: (0, 0, 0)

    def call(single_buffer):
        res = dict(pipeline_mode=pl.Buffered(1)) if single_buffer else {}
        in_specs = [
            pl.BlockSpec((1, TB * L), lambda i: (0, i)),                   # ndvi tile (streamed)
            pl.BlockSpec((1, TB * L), const2, **res),                      # pos (resident)
            pl.BlockSpec((1, TB * L), const2, **res),                      # wl tiled (resident)
            pl.BlockSpec((C, K), const2, **res),                           # w0
            pl.BlockSpec((C, 1), const2, **res),                           # b0
            pl.BlockSpec((NH, C, K * C), const3, **res),                   # wh
            pl.BlockSpec((NH, C, 1), const3, **res),                       # bh
            pl.BlockSpec((C, 1), const2, **res),                           # wf
            pl.BlockSpec((1, 1), const2,
                         memory_space=pltpu.MemorySpace.SMEM),             # fused bias scalar
        ]
        return pl.pallas_call(
            kernel,
            grid=(G,),
            in_specs=in_specs,
            out_specs=pl.BlockSpec((1, TB), lambda i: (0, i)),
            out_shape=jax.ShapeDtypeStruct((1, Bp), jnp.float32),
            compiler_params=pltpu.CompilerParams(
                dimension_semantics=("parallel",),
                vmem_limit_bytes=int(vmem_limit),
            ),
        )(x_flat, pos, wl_tiled, w0, b0, wh, bh, wf, bhead)

    try:
        out = call(True)
    except Exception:
        # fallback if pipeline_mode=pl.Buffered(1) is unsupported on this JAX
        out = call(False)
    return out[0, :B]


def cnn_ndvi_reference(ndvi, params):
    """Pure-JAX reference of the PyTorch forward, for correctness checking."""
    B, L = ndvi.shape
    K = params["w0"].shape[2]
    P = K // 2

    def conv(x, w, b):   # x: (B, Cin, L), w: (Cout, Cin, K), b: (Cout,)
        xp = jnp.pad(x, ((0, 0), (0, 0), (P, P)))
        out = sum(jnp.einsum("bcl,oc->bol", xp[:, :, k:k + L], w[:, :, k])
                  for k in range(K))
        return out + b[None, :, None]

    h = ndvi.astype(jnp.float32)[:, None, :]
    h = jnp.maximum(conv(h, params["w0"], params["b0"]), 0.0)
    for i in range(params["wh"].shape[0]):
        h = jnp.maximum(conv(h, params["wh"][i], params["bh"][i]), 0.0)
    y = jnp.einsum("bcl,oc->bol", h, params["wf"][:, :, 0])[:, 0, :] + params["bf"][0]
    return y @ params["wl"][0] + params["bl"][0]


if __name__ == "__main__":
    # small, module-consistent shapes (TB*L = 128 -> one full lane-dense tile)
    sequence_length = 16
    num_channels = 8
    kernel_size = 3
    num_layers = 3          # -> 1 first conv + 2 hidden convs
    batch = 8

    key = jax.random.PRNGKey(0)
    k_ndvi, k_params = jax.random.split(key)

    ndvi = jax.random.normal(k_ndvi, (batch, sequence_length), jnp.float32)
    years = jnp.zeros((batch,), jnp.int32)     # unused by forward
    seasons = jnp.zeros((batch,), jnp.int32)   # unused by forward

    params = init_params(k_params, sequence_length, num_channels,
                         kernel_size, num_layers)

    pred = cnn_ndvi_forward(ndvi, years, seasons, params)
    pred = jax.block_until_ready(pred)

    ref = cnn_ndvi_reference(ndvi, params)
    assert pred.shape == (batch,)
    assert jnp.allclose(pred, ref, atol=1e-4, rtol=1e-4), (pred, ref)

    print("KERNEL_OK")
</pallas_src>

<mosaic_0001>
module attributes {stable_mosaic.version = 11 : i64} {
  func.func @cnn_ndvi_kernel(%arg0: i32, %arg1: memref<1x128xf32, #tpu.memory_space<vmem>>, %arg2: memref<1x128xi32, #tpu.memory_space<vmem>>, %arg3: memref<1x128xf32, #tpu.memory_space<vmem>>, %arg4: memref<8x3xf32, #tpu.memory_space<vmem>>, %arg5: memref<8x1xf32, #tpu.memory_space<vmem>>, %arg6: memref<2x8x24xf32, #tpu.memory_space<vmem>>, %arg7: memref<2x8x1xf32, #tpu.memory_space<vmem>>, %arg8: memref<8x1xf32, #tpu.memory_space<vmem>>, %arg9: memref<1x1xf32, #tpu.memory_space<smem>>, %arg10: memref<1x8xf32, #tpu.memory_space<vmem>>) attributes {dimension_semantics = [#tpu.dimension_semantics<parallel>], iteration_bounds = array<i64: 1>, scalar_prefetch = 0 : i64, scratch_operands = 0 : i64, tpu.core_type = #tpu.core_type<tc>, window_params = [{transform_indices = @transform_0, window_bounds = array<i64: 1, 128>}, {pipeline_mode = #tpu.pipeline_mode<synchronous>, transform_indices = @transform_1, window_bounds = array<i64: 1, 128>}, {pipeline_mode = #tpu.pipeline_mode<synchronous>, transform_indices = @transform_2, window_bounds = array<i64: 1, 128>}, {pipeline_mode = #tpu.pipeline_mode<synchronous>, transform_indices = @transform_3, window_bounds = array<i64: 8, 3>}, {pipeline_mode = #tpu.pipeline_mode<synchronous>, transform_indices = @transform_4, window_bounds = array<i64: 8, 1>}, {pipeline_mode = #tpu.pipeline_mode<synchronous>, transform_indices = @transform_5, window_bounds = array<i64: 2, 8, 24>}, {pipeline_mode = #tpu.pipeline_mode<synchronous>, transform_indices = @transform_6, window_bounds = array<i64: 2, 8, 1>}, {pipeline_mode = #tpu.pipeline_mode<synchronous>, transform_indices = @transform_7, window_bounds = array<i64: 8, 1>}, {transform_indices = @transform_8, window_bounds = array<i64: 1, 1>}, {transform_indices = @transform_9, window_bounds = array<i64: 1, 8>}]} {
    %c0 = arith.constant 0 : index
    %c0_0 = arith.constant 0 : index
    %0 = vector.load %arg2[%c0, %c0_0] : memref<1x128xi32, #tpu.memory_space<vmem>>, vector<1x128xi32>
    %c-1_i32 = arith.constant -1 : i32
    %1 = vector.broadcast %c-1_i32 : i32 to vector<1x128xi32>
    %2 = arith.addi %0, %1 : vector<1x128xi32>
    %c0_i32 = arith.constant 0 : i32
    %3 = vector.broadcast %c0_i32 : i32 to vector<1x128xi32>
    %4 = arith.cmpi sge, %2, %3 : vector<1x128xi32>
    %c-1_i32_1 = arith.constant -1 : i32
    %5 = vector.broadcast %c-1_i32_1 : i32 to vector<1x128xi32>
    %6 = arith.addi %0, %5 : vector<1x128xi32>
    %c16_i32 = arith.constant 16 : i32
    %7 = vector.broadcast %c16_i32 : i32 to vector<1x128xi32>
    %8 = arith.cmpi slt, %6, %7 : vector<1x128xi32>
    %9 = arith.andi %4, %8 : vector<1x128xi1>
    %c1_i32 = arith.constant 1 : i32
    %10 = vector.broadcast %c1_i32 : i32 to vector<1x128xi32>
    %11 = arith.addi %0, %10 : vector<1x128xi32>
    %c0_i32_2 = arith.constant 0 : i32
    %12 = vector.broadcast %c0_i32_2 : i32 to vector<1x128xi32>
    %13 = arith.cmpi sge, %11, %12 : vector<1x128xi32>
    %c1_i32_3 = arith.constant 1 : i32
    %14 = vector.broadcast %c1_i32_3 : i32 to vector<1x128xi32>
    %15 = arith.addi %0, %14 : vector<1x128xi32>
    %c16_i32_4 = arith.constant 16 : i32
    %16 = vector.broadcast %c16_i32_4 : i32 to vector<1x128xi32>
    %17 = arith.cmpi slt, %15, %16 : vector<1x128xi32>
    %18 = arith.andi %13, %17 : vector<1x128xi1>
    %c0_5 = arith.constant 0 : index
    %c0_6 = arith.constant 0 : index
    %19 = vector.load %arg1[%c0_5, %c0_6] : memref<1x128xf32, #tpu.memory_space<vmem>>, vector<1x128xf32>
    %cst = arith.constant 0.000000e+00 : f32
    %20 = vector.broadcast %cst : f32 to vector<8x128xf32>
    %c0_7 = arith.constant 0 : index
    %c0_8 = arith.constant 0 : index
    %21 = vector.load %arg4[%c0_7, %c0_8] : memref<8x3xf32, #tpu.memory_space<vmem>>, vector<8x1xf32>
    %c8_i32 = arith.constant 8 : i32
    %22 = tpu.dynamic_rotate %19 by %c8_i32 dim 1 : vector<1x128xf32>, i32 -> vector<1x128xf32>
    %cst_9 = arith.constant 0.000000e+00 : f32
    %23 = vector.broadcast %cst_9 : f32 to vector<1x128xf32>
    %24 = arith.select %9, %22, %23 : vector<1x128xi1>, vector<1x128xf32>
    %25 = vector.broadcast %21 : vector<8x1xf32> to vector<8x128xf32>
    %26 = vector.broadcast %24 : vector<1x128xf32> to vector<8x128xf32>
    %27 = arith.mulf %25, %26 : vector<8x128xf32>
    %28 = arith.addf %20, %27 : vector<8x128xf32>
    %c0_10 = arith.constant 0 : index
    %c1 = arith.constant 1 : index
    %29 = vector.load %arg4[%c0_10, %c1] : memref<8x3xf32, #tpu.memory_space<vmem>>, vector<8x1xf32>
    %30 = vector.broadcast %29 : vector<8x1xf32> to vector<8x128xf32>
    %31 = vector.broadcast %19 : vector<1x128xf32> to vector<8x128xf32>
    %32 = arith.mulf %30, %31 : vector<8x128xf32>
    %33 = arith.addf %28, %32 : vector<8x128xf32>
    %c0_11 = arith.constant 0 : index
    %c2 = arith.constant 2 : index
    %34 = vector.load %arg4[%c0_11, %c2] : memref<8x3xf32, #tpu.memory_space<vmem>>, vector<8x1xf32>
    %c120_i32 = arith.constant 120 : i32
    %35 = tpu.dynamic_rotate %19 by %c120_i32 dim 1 : vector<1x128xf32>, i32 -> vector<1x128xf32>
    %cst_12 = arith.constant 0.000000e+00 : f32
    %36 = vector.broadcast %cst_12 : f32 to vector<1x128xf32>
    %37 = arith.select %18, %35, %36 : vector<1x128xi1>, vector<1x128xf32>
    %38 = vector.broadcast %34 : vector<8x1xf32> to vector<8x128xf32>
    %39 = vector.broadcast %37 : vector<1x128xf32> to vector<8x128xf32>
    %40 = arith.mulf %38, %39 : vector<8x128xf32>
    %41 = arith.addf %33, %40 : vector<8x128xf32>
    %c0_13 = arith.constant 0 : index
    %c0_14 = arith.constant 0 : index
    %42 = vector.load %arg5[%c0_13, %c0_14] : memref<8x1xf32, #tpu.memory_space<vmem>>, vector<8x1xf32>
    %43 = vector.broadcast %42 : vector<8x1xf32> to vector<8x128xf32>
    %44 = arith.addf %41, %43 : vector<8x128xf32>
    %cst_15 = arith.constant 0.000000e+00 : f32
    %45 = vector.broadcast %cst_15 : f32 to vector<8x128xf32>
    %46 = arith.maximumf %44, %45 : vector<8x128xf32>
    %c0_16 = arith.constant 0 : index
    %c0_17 = arith.constant 0 : index
    %c0_18 = arith.constant 0 : index
    %47 = vector.load %arg6[%c0_16, %c0_17, %c0_18] : memref<2x8x24xf32, #tpu.memory_space<vmem>>, vector<1x8x24xf32>
    %48 = vector.shape_cast %47 : vector<1x8x24xf32> to vector<8x24xf32>
    %cst_19 = arith.constant 0.000000e+00 : f32
    %49 = vector.broadcast %cst_19 : f32 to vector<8x128xf32>
    %50 = vector.extract_strided_slice %46 {offsets = [0, 0], sizes = [1, 128], strides = [1, 1]} : vector<8x128xf32> to vector<1x128xf32>
    %51 = vector.extract_strided_slice %48 {offsets = [0, 0], sizes = [8, 1], strides = [1, 1]} : vector<8x24xf32> to vector<8x1xf32>
    %c8_i32_20 = arith.constant 8 : i32
    %52 = tpu.dynamic_rotate %50 by %c8_i32_20 dim 1 : vector<1x128xf32>, i32 -> vector<1x128xf32>
    %cst_21 = arith.constant 0.000000e+00 : f32
    %53 = vector.broadcast %cst_21 : f32 to vector<1x128xf32>
    %54 = arith.select %9, %52, %53 : vector<1x128xi1>, vector<1x128xf32>
    %55 = vector.broadcast %51 : vector<8x1xf32> to vector<8x128xf32>
    %56 = vector.broadcast %54 : vector<1x128xf32> to vector<8x128xf32>
    %57 = arith.mulf %55, %56 : vector<8x128xf32>
    %58 = arith.addf %49, %57 : vector<8x128xf32>
    %59 = vector.extract_strided_slice %48 {offsets = [0, 8], sizes = [8, 1], strides = [1, 1]} : vector<8x24xf32> to vector<8x1xf32>
    %60 = vector.broadcast %59 : vector<8x1xf32> to vector<8x128xf32>
    %61 = vector.broadcast %50 : vector<1x128xf32> to vector<8x128xf32>
    %62 = arith.mulf %60, %61 : vector<8x128xf32>
    %63 = arith.addf %58, %62 : vector<8x128xf32>
    %64 = vector.extract_strided_slice %48 {offsets = [0, 16], sizes = [8, 1], strides = [1, 1]} : vector<8x24xf32> to vector<8x1xf32>
    %c120_i32_22 = arith.constant 120 : i32
    %65 = tpu.dynamic_rotate %50 by %c120_i32_22 dim 1 : vector<1x128xf32>, i32 -> vector<1x128xf32>
    %cst_23 = arith.constant 0.000000e+00 : f32
    %66 = vector.broadcast %cst_23 : f32 to vector<1x128xf32>
    %67 = arith.select %18, %65, %66 : vector<1x128xi1>, vector<1x128xf32>
    %68 = vector.broadcast %64 : vector<8x1xf32> to vector<8x128xf32>
    %69 = vector.broadcast %67 : vector<1x128xf32> to vector<8x128xf32>
    %70 = arith.mulf %68, %69 : vector<8x128xf32>
    %71 = arith.addf %63, %70 : vector<8x128xf32>
    %72 = vector.extract_strided_slice %46 {offsets = [1, 0], sizes = [1, 128], strides = [1, 1]} : vector<8x128xf32> to vector<1x128xf32>
    %73 = vector.extract_strided_slice %48 {offsets = [0, 1], sizes = [8, 1], strides = [1, 1]} : vector<8x24xf32> to vector<8x1xf32>
    %c8_i32_24 = arith.constant 8 : i32
    %74 = tpu.dynamic_rotate %72 by %c8_i32_24 dim 1 : vector<1x128xf32>, i32 -> vector<1x128xf32>
    %cst_25 = arith.constant 0.000000e+00 : f32
    %75 = vector.broadcast %cst_25 : f32 to vector<1x128xf32>
    %76 = arith.select %9, %74, %75 : vector<1x128xi1>, vector<1x128xf32>
    %77 = vector.broadcast %73 : vector<8x1xf32> to vector<8x128xf32>
    %78 = vector.broadcast %76 : vector<1x128xf32> to vector<8x128xf32>
    %79 = arith.mulf %77, %78 : vector<8x128xf32>
    %80 = arith.addf %71, %79 : vector<8x128xf32>
    %81 = vector.extract_strided_slice %48 {offsets = [0, 9], sizes = [8, 1], strides = [1, 1]} : vector<8x24xf32> to vector<8x1xf32>
    %82 = vector.broadcast %81 : vector<8x1xf32> to vector<8x128xf32>
    %83 = vector.broadcast %72 : vector<1x128xf32> to vector<8x128xf32>
    %84 = arith.mulf %82, %83 : vector<8x128xf32>
    %85 = arith.addf %80, %84 : vector<8x128xf32>
    %86 = vector.extract_strided_slice %48 {offsets = [0, 17], sizes = [8, 1], strides = [1, 1]} : vector<8x24xf32> to vector<8x1xf32>
    %c120_i32_26 = arith.constant 120 : i32
    %87 = tpu.dynamic_rotate %72 by %c120_i32_26 dim 1 : vector<1x128xf32>, i32 -> vector<1x128xf32>
    %cst_27 = arith.constant 0.000000e+00 : f32
    %88 = vector.broadcast %cst_27 : f32 to vector<1x128xf32>
    %89 = arith.select %18, %87, %88 : vector<1x128xi1>, vector<1x128xf32>
    %90 = vector.broadcast %86 : vector<8x1xf32> to vector<8x128xf32>
    %91 = vector.broadcast %89 : vector<1x128xf32> to vector<8x128xf32>
    %92 = arith.mulf %90, %91 : vector<8x128xf32>
    %93 = arith.addf %85, %92 : vector<8x128xf32>
    %94 = vector.extract_strided_slice %46 {offsets = [2, 0], sizes = [1, 128], strides = [1, 1]} : vector<8x128xf32> to vector<1x128xf32>
    %95 = vector.extract_strided_slice %48 {offsets = [0, 2], sizes = [8, 1], strides = [1, 1]} : vector<8x24xf32> to vector<8x1xf32>
    %c8_i32_28 = arith.constant 8 : i32
    %96 = tpu.dynamic_rotate %94 by %c8_i32_28 dim 1 : vector<1x128xf32>, i32 -> vector<1x128xf32>
    %cst_29 = arith.constant 0.000000e+00 : f32
    %97 = vector.broadcast %cst_29 : f32 to vector<1x128xf32>
    %98 = arith.select %9, %96, %97 : vector<1x128xi1>, vector<1x128xf32>
    %99 = vector.broadcast %95 : vector<8x1xf32> to vector<8x128xf32>
    %100 = vector.broadcast %98 : vector<1x128xf32> to vector<8x128xf32>
    %101 = arith.mulf %99, %100 : vector<8x128xf32>
    %102 = arith.addf %93, %101 : vector<8x128xf32>
    %103 = vector.extract_strided_slice %48 {offsets = [0, 10], sizes = [8, 1], strides = [1, 1]} : vector<8x24xf32> to vector<8x1xf32>
    %104 = vector.broadcast %103 : vector<8x1xf32> to vector<8x128xf32>
    %105 = vector.broadcast %94 : vector<1x128xf32> to vector<8x128xf32>
    %106 = arith.mulf %104, %105 : vector<8x128xf32>
    %107 = arith.addf %102, %106 : vector<8x128xf32>
    %108 = vector.extract_strided_slice %48 {offsets = [0, 18], sizes = [8, 1], strides = [1, 1]} : vector<8x24xf32> to vector<8x1xf32>
    %c120_i32_30 = arith.constant 120 : i32
    %109 = tpu.dynamic_rotate %94 by %c120_i32_30 dim 1 : vector<1x128xf32>, i32 -> vector<1x128xf32>
    %cst_31 = arith.constant 0.000000e+00 : f32
    %110 = vector.broadcast %cst_31 : f32 to vector<1x128xf32>
    %111 = arith.select %18, %109, %110 : vector<1x128xi1>, vector<1x128xf32>
    %112 = vector.broadcast %108 : vector<8x1xf32> to vector<8x128xf32>
    %113 = vector.broadcast %111 : vector<1x128xf32> to vector<8x128xf32>
    %114 = arith.mulf %112, %113 : vector<8x128xf32>
    %115 = arith.addf %107, %114 : vector<8x128xf32>
    %116 = vector.extract_strided_slice %46 {offsets = [3, 0], sizes = [1, 128], strides = [1, 1]} : vector<8x128xf32> to vector<1x128xf32>
    %117 = vector.extract_strided_slice %48 {offsets = [0, 3], sizes = [8, 1], strides = [1, 1]} : vector<8x24xf32> to vector<8x1xf32>
    %c8_i32_32 = arith.constant 8 : i32
    %118 = tpu.dynamic_rotate %116 by %c8_i32_32 dim 1 : vector<1x128xf32>, i32 -> vector<1x128xf32>
    %cst_33 = arith.constant 0.000000e+00 : f32
    %119 = vector.broadcast %cst_33 : f32 to vector<1x128xf32>
    %120 = arith.select %9, %118, %119 : vector<1x128xi1>, vector<1x128xf32>
    %121 = vector.broadcast %117 : vector<8x1xf32> to vector<8x128xf32>
    %122 = vector.broadcast %120 : vector<1x128xf32> to vector<8x128xf32>
    %123 = arith.mulf %121, %122 : vector<8x128xf32>
    %124 = arith.addf %115, %123 : vector<8x128xf32>
    %125 = vector.extract_strided_slice %48 {offsets = [0, 11], sizes = [8, 1], strides = [1, 1]} : vector<8x24xf32> to vector<8x1xf32>
    %126 = vector.broadcast %125 : vector<8x1xf32> to vector<8x128xf32>
    %127 = vector.broadcast %116 : vector<1x128xf32> to vector<8x128xf32>
    %128 = arith.mulf %126, %127 : vector<8x128xf32>
    %129 = arith.addf %124, %128 : vector<8x128xf32>
    %130 = vector.extract_strided_slice %48 {offsets = [0, 19], sizes = [8, 1], strides = [1, 1]} : vector<8x24xf32> to vector<8x1xf32>
    %c120_i32_34 = arith.constant 120 : i32
    %131 = tpu.dynamic_rotate %116 by %c120_i32_34 dim 1 : vector<1x128xf32>, i32 -> vector<1x128xf32>
    %cst_35 = arith.constant 0.000000e+00 : f32
    %132 = vector.broadcast %cst_35 : f32 to vector<1x128xf32>
    %133 = arith.select %18, %131, %132 : vector<1x128xi1>, vector<1x128xf32>
    %134 = vector.broadcast %130 : vector<8x1xf32> to vector<8x128xf32>
    %135 = vector.broadcast %133 : vector<1x128xf32> to vector<8x128xf32>
    %136 = arith.mulf %134, %135 : vector<8x128xf32>
    %137 = arith.addf %129, %136 : vector<8x128xf32>
    %138 = vector.extract_strided_slice %46 {offsets = [4, 0], sizes = [1, 128], strides = [1, 1]} : vector<8x128xf32> to vector<1x128xf32>
    %139 = vector.extract_strided_slice %48 {offsets = [0, 4], sizes = [8, 1], strides = [1, 1]} : vector<8x24xf32> to vector<8x1xf32>
    %c8_i32_36 = arith.constant 8 : i32
    %140 = tpu.dynamic_rotate %138 by %c8_i32_36 dim 1 : vector<1x128xf32>, i32 -> vector<1x128xf32>
    %cst_37 = arith.constant 0.000000e+00 : f32
    %141 = vector.broadcast %cst_37 : f32 to vector<1x128xf32>
    %142 = arith.select %9, %140, %141 : vector<1x128xi1>, vector<1x128xf32>
    %143 = vector.broadcast %139 : vector<8x1xf32> to vector<8x128xf32>
    %144 = vector.broadcast %142 : vector<1x128xf32> to vector<8x128xf32>
    %145 = arith.mulf %143, %144 : vector<8x128xf32>
    %146 = arith.addf %137, %145 : vector<8x128xf32>
    %147 = vector.extract_strided_slice %48 {offsets = [0, 12], sizes = [8, 1], strides = [1, 1]} : vector<8x24xf32> to vector<8x1xf32>
    %148 = vector.broadcast %147 : vector<8x1xf32> to vector<8x128xf32>
    %149 = vector.broadcast %138 : vector<1x128xf32> to vector<8x128xf32>
    %150 = arith.mulf %148, %149 : vector<8x128xf32>
    %151 = arith.addf %146, %150 : vector<8x128xf32>
    %152 = vector.extract_strided_slice %48 {offsets = [0, 20], sizes = [8, 1], strides = [1, 1]} : vector<8x24xf32> to vector<8x1xf32>
    %c120_i32_38 = arith.constant 120 : i32
    %153 = tpu.dynamic_rotate %138 by %c120_i32_38 dim 1 : vector<1x128xf32>, i32 -> vector<1x128xf32>
    %cst_39 = arith.constant 0.000000e+00 : f32
    %154 = vector.broadcast %cst_39 : f32 to vector<1x128xf32>
    %155 = arith.select %18, %153, %154 : vector<1x128xi1>, vector<1x128xf32>
    %156 = vector.broadcast %152 : vector<8x1xf32> to vector<8x128xf32>
    %157 = vector.broadcast %155 : vector<1x128xf32> to vector<8x128xf32>
    %158 = arith.mulf %156, %157 : vector<8x128xf32>
    %159 = arith.addf %151, %158 : vector<8x128xf32>
    %160 = vector.extract_strided_slice %46 {offsets = [5, 0], sizes = [1, 128], strides = [1, 1]} : vector<8x128xf32> to vector<1x128xf32>
    %161 = vector.extract_strided_slice %48 {offsets = [0, 5], sizes = [8, 1], strides = [1, 1]} : vector<8x24xf32> to vector<8x1xf32>
    %c8_i32_40 = arith.constant 8 : i32
    %162 = tpu.dynamic_rotate %160 by %c8_i32_40 dim 1 : vector<1x128xf32>, i32 -> vector<1x128xf32>
    %cst_41 = arith.constant 0.000000e+00 : f32
    %163 = vector.broadcast %cst_41 : f32 to vector<1x128xf32>
    %164 = arith.select %9, %162, %163 : vector<1x128xi1>, vector<1x128xf32>
    %165 = vector.broadcast %161 : vector<8x1xf32> to vector<8x128xf32>
    %166 = vector.broadcast %164 : vector<1x128xf32> to vector<8x128xf32>
    %167 = arith.mulf %165, %166 : vector<8x128xf32>
    %168 = arith.addf %159, %167 : vector<8x128xf32>
    %169 = vector.extract_strided_slice %48 {offsets = [0, 13], sizes = [8, 1], strides = [1, 1]} : vector<8x24xf32> to vector<8x1xf32>
    %170 = vector.broadcast %169 : vector<8x1xf32> to vector<8x128xf32>
    %171 = vector.broadcast %160 : vector<1x128xf32> to vector<8x128xf32>
    %172 = arith.mulf %170, %171 : vector<8x128xf32>
    %173 = arith.addf %168, %172 : vector<8x128xf32>
    %174 = vector.extract_strided_slice %48 {offsets = [0, 21], sizes = [8, 1], strides = [1, 1]} : vector<8x24xf32> to vector<8x1xf32>
    %c120_i32_42 = arith.constant 120 : i32
    %175 = tpu.dynamic_rotate %160 by %c120_i32_42 dim 1 : vector<1x128xf32>, i32 -> vector<1x128xf32>
    %cst_43 = arith.constant 0.000000e+00 : f32
    %176 = vector.broadcast %cst_43 : f32 to vector<1x128xf32>
    %177 = arith.select %18, %175, %176 : vector<1x128xi1>, vector<1x128xf32>
    %178 = vector.broadcast %174 : vector<8x1xf32> to vector<8x128xf32>
    %179 = vector.broadcast %177 : vector<1x128xf32> to vector<8x128xf32>
    %180 = arith.mulf %178, %179 : vector<8x128xf32>
    %181 = arith.addf %173, %180 : vector<8x128xf32>
    %182 = vector.extract_strided_slice %46 {offsets = [6, 0], sizes = [1, 128], strides = [1, 1]} : vector<8x128xf32> to vector<1x128xf32>
    %183 = vector.extract_strided_slice %48 {offsets = [0, 6], sizes = [8, 1], strides = [1, 1]} : vector<8x24xf32> to vector<8x1xf32>
    %c8_i32_44 = arith.constant 8 : i32
    %184 = tpu.dynamic_rotate %182 by %c8_i32_44 dim 1 : vector<1x128xf32>, i32 -> vector<1x128xf32>
    %cst_45 = arith.constant 0.000000e+00 : f32
    %185 = vector.broadcast %cst_45 : f32 to vector<1x128xf32>
    %186 = arith.select %9, %184, %185 : vector<1x128xi1>, vector<1x128xf32>
    %187 = vector.broadcast %183 : vector<8x1xf32> to vector<8x128xf32>
    %188 = vector.broadcast %186 : vector<1x128xf32> to vector<8x128xf32>
    %189 = arith.mulf %187, %188 : vector<8x128xf32>
    %190 = arith.addf %181, %189 : vector<8x128xf32>
    %191 = vector.extract_strided_slice %48 {offsets = [0, 14], sizes = [8, 1], strides = [1, 1]} : vector<8x24xf32> to vector<8x1xf32>
    %192 = vector.broadcast %191 : vector<8x1xf32> to vector<8x128xf32>
    %193 = vector.broadcast %182 : vector<1x128xf32> to vector<8x128xf32>
    %194 = arith.mulf %192, %193 : vector<8x128xf32>
    %195 = arith.addf %190, %194 : vector<8x128xf32>
    %196 = vector.extract_strided_slice %48 {offsets = [0, 22], sizes = [8, 1], strides = [1, 1]} : vector<8x24xf32> to vector<8x1xf32>
    %c120_i32_46 = arith.constant 120 : i32
    %197 = tpu.dynamic_rotate %182 by %c120_i32_46 dim 1 : vector<1x128xf32>, i32 -> vector<1x128xf32>
    %cst_47 = arith.constant 0.000000e+00 : f32
    %198 = vector.broadcast %cst_47 : f32 to vector<1x128xf32>
    %199 = arith.select %18, %197, %198 : vector<1x128xi1>, vector<1x128xf32>
    %200 = vector.broadcast %196 : vector<8x1xf32> to vector<8x128xf32>
    %201 = vector.broadcast %199 : vector<1x128xf32> to vector<8x128xf32>
    %202 = arith.mulf %200, %201 : vector<8x128xf32>
    %203 = arith.addf %195, %202 : vector<8x128xf32>
    %204 = vector.extract_strided_slice %46 {offsets = [7, 0], sizes = [1, 128], strides = [1, 1]} : vector<8x128xf32> to vector<1x128xf32>
    %205 = vector.extract_strided_slice %48 {offsets = [0, 7], sizes = [8, 1], strides = [1, 1]} : vector<8x24xf32> to vector<8x1xf32>
    %c8_i32_48 = arith.constant 8 : i32
    %206 = tpu.dynamic_rotate %204 by %c8_i32_48 dim 1 : vector<1x128xf32>, i32 -> vector<1x128xf32>
    %cst_49 = arith.constant 0.000000e+00 : f32
    %207 = vector.broadcast %cst_49 : f32 to vector<1x128xf32>
    %208 = arith.select %9, %206, %207 : vector<1x128xi1>, vector<1x128xf32>
    %209 = vector.broadcast %205 : vector<8x1xf32> to vector<8x128xf32>
    %210 = vector.broadcast %208 : vector<1x128xf32> to vector<8x128xf32>
    %211 = arith.mulf %209, %210 : vector<8x128xf32>
    %212 = arith.addf %203, %211 : vector<8x128xf32>
    %213 = vector.extract_strided_slice %48 {offsets = [0, 15], sizes = [8, 1], strides = [1, 1]} : vector<8x24xf32> to vector<8x1xf32>
    %214 = vector.broadcast %213 : vector<8x1xf32> to vector<8x128xf32>
    %215 = vector.broadcast %204 : vector<1x128xf32> to vector<8x128xf32>
    %216 = arith.mulf %214, %215 : vector<8x128xf32>
    %217 = arith.addf %212, %216 : vector<8x128xf32>
    %218 = vector.extract_strided_slice %48 {offsets = [0, 23], sizes = [8, 1], strides = [1, 1]} : vector<8x24xf32> to vector<8x1xf32>
    %c120_i32_50 = arith.constant 120 : i32
    %219 = tpu.dynamic_rotate %204 by %c120_i32_50 dim 1 : vector<1x128xf32>, i32 -> vector<1x128xf32>
    %cst_51 = arith.constant 0.000000e+00 : f32
    %220 = vector.broadcast %cst_51 : f32 to vector<1x128xf32>
    %221 = arith.select %18, %219, %220 : vector<1x128xi1>, vector<1x128xf32>
    %222 = vector.broadcast %218 : vector<8x1xf32> to vector<8x128xf32>
    %223 = vector.broadcast %221 : vector<1x128xf32> to vector<8x128xf32>
    %224 = arith.mulf %222, %223 : vector<8x128xf32>
    %225 = arith.addf %217, %224 : vector<8x128xf32>
    %c0_52 = arith.constant 0 : index
    %c0_53 = arith.constant 0 : index
    %c0_54 = arith.constant 0 : index
    %226 = vector.load %arg7[%c0_52, %c0_53, %c0_54] : memref<2x8x1xf32, #tpu.memory_space<vmem>>, vector<1x8x1xf32>
    %227 = vector.shape_cast %226 : vector<1x8x1xf32> to vector<8x1xf32>
    %228 = vector.broadcast %227 : vector<8x1xf32> to vector<8x128xf32>
    %229 = arith.addf %225, %228 : vector<8x128xf32>
    %cst_55 = arith.constant 0.000000e+00 : f32
    %230 = vector.broadcast %cst_55 : f32 to vector<8x128xf32>
    %231 = arith.maximumf %229, %230 : vector<8x128xf32>
    %c1_56 = arith.constant 1 : index
    %c0_57 = arith.constant 0 : index
    %c0_58 = arith.constant 0 : index
    %232 = vector.load %arg6[%c1_56, %c0_57, %c0_58] : memref<2x8x24xf32, #tpu.memory_space<vmem>>, vector<1x8x24xf32>
    %233 = vector.shape_cast %232 : vector<1x8x24xf32> to vector<8x24xf32>
    %cst_59 = arith.constant 0.000000e+00 : f32
    %234 = vector.broadcast %cst_59 : f32 to vector<8x128xf32>
    %235 = vector.extract_strided_slice %231 {offsets = [0, 0], sizes = [1, 128], strides = [1, 1]} : vector<8x128xf32> to vector<1x128xf32>
    %236 = vector.extract_strided_slice %233 {offsets = [0, 0], sizes = [8, 1], strides = [1, 1]} : vector<8x24xf32> to vector<8x1xf32>
    %c8_i32_60 = arith.constant 8 : i32
    %237 = tpu.dynamic_rotate %235 by %c8_i32_60 dim 1 : vector<1x128xf32>, i32 -> vector<1x128xf32>
    %cst_61 = arith.constant 0.000000e+00 : f32
    %238 = vector.broadcast %cst_61 : f32 to vector<1x128xf32>
    %239 = arith.select %9, %237, %238 : vector<1x128xi1>, vector<1x128xf32>
    %240 = vector.broadcast %236 : vector<8x1xf32> to vector<8x128xf32>
    %241 = vector.broadcast %239 : vector<1x128xf32> to vector<8x128xf32>
    %242 = arith.mulf %240, %241 : vector<8x128xf32>
    %243 = arith.addf %234, %242 : vector<8x128xf32>
    %244 = vector.extract_strided_slice %233 {offsets = [0, 8], sizes = [8, 1], strides = [1, 1]} : vector<8x24xf32> to vector<8x1xf32>
    %245 = vector.broadcast %244 : vector<8x1xf32> to vector<8x128xf32>
    %246 = vector.broadcast %235 : vector<1x128xf32> to vector<8x128xf32>
    %247 = arith.mulf %245, %246 : vector<8x128xf32>
    %248 = arith.addf %243, %247 : vector<8x128xf32>
    %249 = vector.extract_strided_slice %233 {offsets = [0, 16], sizes = [8, 1], strides = [1, 1]} : vector<8x24xf32> to vector<8x1xf32>
    %c120_i32_62 = arith.constant 120 : i32
    %250 = tpu.dynamic_rotate %235 by %c120_i32_62 dim 1 : vector<1x128xf32>, i32 -> vector<1x128xf32>
    %cst_63 = arith.constant 0.000000e+00 : f32
    %251 = vector.broadcast %cst_63 : f32 to vector<1x128xf32>
    %252 = arith.select %18, %250, %251 : vector<1x128xi1>, vector<1x128xf32>
    %253 = vector.broadcast %249 : vector<8x1xf32> to vector<8x128xf32>
    %254 = vector.broadcast %252 : vector<1x128xf32> to vector<8x128xf32>
    %255 = arith.mulf %253, %254 : vector<8x128xf32>
    %256 = arith.addf %248, %255 : vector<8x128xf32>
    %257 = vector.extract_strided_slice %231 {offsets = [1, 0], sizes = [1, 128], strides = [1, 1]} : vector<8x128xf32> to vector<1x128xf32>
    %258 = vector.extract_strided_slice %233 {offsets = [0, 1], sizes = [8, 1], strides = [1, 1]} : vector<8x24xf32> to vector<8x1xf32>
    %c8_i32_64 = arith.constant 8 : i32
    %259 = tpu.dynamic_rotate %257 by %c8_i32_64 dim 1 : vector<1x128xf32>, i32 -> vector<1x128xf32>
    %cst_65 = arith.constant 0.000000e+00 : f32
    %260 = vector.broadcast %cst_65 : f32 to vector<1x128xf32>
    %261 = arith.select %9, %259, %260 : vector<1x128xi1>, vector<1x128xf32>
    %262 = vector.broadcast %258 : vector<8x1xf32> to vector<8x128xf32>
    %263 = vector.broadcast %261 : vector<1x128xf32> to vector<8x128xf32>
    %264 = arith.mulf %262, %263 : vector<8x128xf32>
    %265 = arith.addf %256, %264 : vector<8x128xf32>
    %266 = vector.extract_strided_slice %233 {offsets = [0, 9], sizes = [8, 1], strides = [1, 1]} : vector<8x24xf32> to vector<8x1xf32>
    %267 = vector.broadcast %266 : vector<8x1xf32> to vector<8x128xf32>
    %268 = vector.broadcast %257 : vector<1x128xf32> to vector<8x128xf32>
    %269 = arith.mulf %267, %268 : vector<8x128xf32>
    %270 = arith.addf %265, %269 : vector<8x128xf32>
    %271 = vector.extract_strided_slice %233 {offsets = [0, 17], sizes = [8, 1], strides = [1, 1]} : vector<8x24xf32> to vector<8x1xf32>
    %c120_i32_66 = arith.constant 120 : i32
    %272 = tpu.dynamic_rotate %257 by %c120_i32_66 dim 1 : vector<1x128xf32>, i32 -> vector<1x128xf32>
    %cst_67 = arith.constant 0.000000e+00 : f32
    %273 = vector.broadcast %cst_67 : f32 to vector<1x128xf32>
    %274 = arith.select %18, %272, %273 : vector<1x128xi1>, vector<1x128xf32>
    %275 = vector.broadcast %271 : vector<8x1xf32> to vector<8x128xf32>
    %276 = vector.broadcast %274 : vector<1x128xf32> to vector<8x128xf32>
    %277 = arith.mulf %275, %276 : vector<8x128xf32>
    %278 = arith.addf %270, %277 : vector<8x128xf32>
    %279 = vector.extract_strided_slice %231 {offsets = [2, 0], sizes = [1, 128], strides = [1, 1]} : vector<8x128xf32> to vector<1x128xf32>
    %280 = vector.extract_strided_slice %233 {offsets = [0, 2], sizes = [8, 1], strides = [1, 1]} : vector<8x24xf32> to vector<8x1xf32>
    %c8_i32_68 = arith.constant 8 : i32
    %281 = tpu.dynamic_rotate %279 by %c8_i32_68 dim 1 : vector<1x128xf32>, i32 -> vector<1x128xf32>
    %cst_69 = arith.constant 0.000000e+00 : f32
    %282 = vector.broadcast %cst_69 : f32 to vector<1x128xf32>
    %283 = arith.select %9, %281, %282 : vector<1x128xi1>, vector<1x128xf32>
    %284 = vector.broadcast %280 : vector<8x1xf32> to vector<8x128xf32>
    %285 = vector.broadcast %283 : vector<1x128xf32> to vector<8x128xf32>
    %286 = arith.mulf %284, %285 : vector<8x128xf32>
    %287 = arith.addf %278, %286 : vector<8x128xf32>
    %288 = vector.extract_strided_slice %233 {offsets = [0, 10], sizes = [8, 1], strides = [1, 1]} : vector<8x24xf32> to vector<8x1xf32>
    %289 = vector.broadcast %288 : vector<8x1xf32> to vector<8x128xf32>
    %290 = vector.broadcast %279 : vector<1x128xf32> to vector<8x128xf32>
    %291 = arith.mulf %289, %290 : vector<8x128xf32>
    %292 = arith.addf %287, %291 : vector<8x128xf32>
    %293 = vector.extract_strided_slice %233 {offsets = [0, 18], sizes = [8, 1], strides = [1, 1]} : vector<8x24xf32> to vector<8x1xf32>
    %c120_i32_70 = arith.constant 120 : i32
    %294 = tpu.dynamic_rotate %279 by %c120_i32_70 dim 1 : vector<1x128xf32>, i32 -> vector<1x128xf32>
    %cst_71 = arith.constant 0.000000e+00 : f32
    %295 = vector.broadcast %cst_71 : f32 to vector<1x128xf32>
    %296 = arith.select %18, %294, %295 : vector<1x128xi1>, vector<1x128xf32>
    %297 = vector.broadcast %293 : vector<8x1xf32> to vector<8x128xf32>
    %298 = vector.broadcast %296 : vector<1x128xf32> to vector<8x128xf32>
    %299 = arith.mulf %297, %298 : vector<8x128xf32>
    %300 = arith.addf %292, %299 : vector<8x128xf32>
    %301 = vector.extract_strided_slice %231 {offsets = [3, 0], sizes = [1, 128], strides = [1, 1]} : vector<8x128xf32> to vector<1x128xf32>
    %302 = vector.extract_strided_slice %233 {offsets = [0, 3], sizes = [8, 1], strides = [1, 1]} : vector<8x24xf32> to vector<8x1xf32>
    %c8_i32_72 = arith.constant 8 : i32
    %303 = tpu.dynamic_rotate %301 by %c8_i32_72 dim 1 : vector<1x128xf32>, i32 -> vector<1x128xf32>
    %cst_73 = arith.constant 0.000000e+00 : f32
    %304 = vector.broadcast %cst_73 : f32 to vector<1x128xf32>
    %305 = arith.select %9, %303, %304 : vector<1x128xi1>, vector<1x128xf32>
    %306 = vector.broadcast %302 : vector<8x1xf32> to vector<8x128xf32>
    %307 = vector.broadcast %305 : vector<1x128xf32> to vector<8x128xf32>
    %308 = arith.mulf %306, %307 : vector<8x128xf32>
    %309 = arith.addf %300, %308 : vector<8x128xf32>
    %310 = vector.extract_strided_slice %233 {offsets = [0, 11], sizes = [8, 1], strides = [1, 1]} : vector<8x24xf32> to vector<8x1xf32>
    %311 = vector.broadcast %310 : vector<8x1xf32> to vector<8x128xf32>
    %312 = vector.broadcast %301 : vector<1x128xf32> to vector<8x128xf32>
    %313 = arith.mulf %311, %312 : vector<8x128xf32>
    %314 = arith.addf %309, %313 : vector<8x128xf32>
    %315 = vector.extract_strided_slice %233 {offsets = [0, 19], sizes = [8, 1], strides = [1, 1]} : vector<8x24xf32> to vector<8x1xf32>
    %c120_i32_74 = arith.constant 120 : i32
    %316 = tpu.dynamic_rotate %301 by %c120_i32_74 dim 1 : vector<1x128xf32>, i32 -> vector<1x128xf32>
    %cst_75 = arith.constant 0.000000e+00 : f32
    %317 = vector.broadcast %cst_75 : f32 to vector<1x128xf32>
    %318 = arith.select %18, %316, %317 : vector<1x128xi1>, vector<1x128xf32>
    %319 = vector.broadcast %315 : vector<8x1xf32> to vector<8x128xf32>
    %320 = vector.broadcast %318 : vector<1x128xf32> to vector<8x128xf32>
    %321 = arith.mulf %319, %320 : vector<8x128xf32>
    %322 = arith.addf %314, %321 : vector<8x128xf32>
    %323 = vector.extract_strided_slice %231 {offsets = [4, 0], sizes = [1, 128], strides = [1, 1]} : vector<8x128xf32> to vector<1x128xf32>
    %324 = vector.extract_strided_slice %233 {offsets = [0, 4], sizes = [8, 1], strides = [1, 1]} : vector<8x24xf32> to vector<8x1xf32>
    %c8_i32_76 = arith.constant 8 : i32
    %325 = tpu.dynamic_rotate %323 by %c8_i32_76 dim 1 : vector<1x128xf32>, i32 -> vector<1x128xf32>
    %cst_77 = arith.constant 0.000000e+00 : f32
    %326 = vector.broadcast %cst_77 : f32 to vector<1x128xf32>
    %327 = arith.select %9, %325, %326 : vector<1x128xi1>, vector<1x128xf32>
    %328 = vector.broadcast %324 : vector<8x1xf32> to vector<8x128xf32>
    %329 = vector.broadcast %327 : vector<1x128xf32> to vector<8x128xf32>
    %330 = arith.mulf %328, %329 : vector<8x128xf32>
    %331 = arith.addf %322, %330 : vector<8x128xf32>
    %332 = vector.extract_strided_slice %233 {offsets = [0, 12], sizes = [8, 1], strides = [1, 1]} : vector<8x24xf32> to vector<8x1xf32>
    %333 = vector.broadcast %332 : vector<8x1xf32> to vector<8x128xf32>
    %334 = vector.broadcast %323 : vector<1x128xf32> to vector<8x128xf32>
    %335 = arith.mulf %333, %334 : vector<8x128xf32>
    %336 = arith.addf %331, %335 : vector<8x128xf32>
    %337 = vector.extract_strided_slice %233 {offsets = [0, 20], sizes = [8, 1], strides = [1, 1]} : vector<8x24xf32> to vector<8x1xf32>
    %c120_i32_78 = arith.constant 120 : i32
    %338 = tpu.dynamic_rotate %323 by %c120_i32_78 dim 1 : vector<1x128xf32>, i32 -> vector<1x128xf32>
    %cst_79 = arith.constant 0.000000e+00 : f32
    %339 = vector.broadcast %cst_79 : f32 to vector<1x128xf32>
    %340 = arith.select %18, %338, %339 : vector<1x128xi1>, vector<1x128xf32>
    %341 = vector.broadcast %337 : vector<8x1xf32> to vector<8x128xf32>
    %342 = vector.broadcast %340 : vector<1x128xf32> to vector<8x128xf32>
    %343 = arith.mulf %341, %342 : vector<8x128xf32>
    %344 = arith.addf %336, %343 : vector<8x128xf32>
    %345 = vector.extract_strided_slice %231 {offsets = [5, 0], sizes = [1, 128], strides = [1, 1]} : vector<8x128xf32> to vector<1x128xf32>
    %346 = vector.extract_strided_slice %233 {offsets = [0, 5], sizes = [8, 1], strides = [1, 1]} : vector<8x24xf32> to vector<8x1xf32>
    %c8_i32_80 = arith.constant 8 : i32
    %347 = tpu.dynamic_rotate %345 by %c8_i32_80 dim 1 : vector<1x128xf32>, i32 -> vector<1x128xf32>
    %cst_81 = arith.constant 0.000000e+00 : f32
    %348 = vector.broadcast %cst_81 : f32 to vector<1x128xf32>
    %349 = arith.select %9, %347, %348 : vector<1x128xi1>, vector<1x128xf32>
    %350 = vector.broadcast %346 : vector<8x1xf32> to vector<8x128xf32>
    %351 = vector.broadcast %349 : vector<1x128xf32> to vector<8x128xf32>
    %352 = arith.mulf %350, %351 : vector<8x128xf32>
    %353 = arith.addf %344, %352 : vector<8x128xf32>
    %354 = vector.extract_strided_slice %233 {offsets = [0, 13], sizes = [8, 1], strides = [1, 1]} : vector<8x24xf32> to vector<8x1xf32>
    %355 = vector.broadcast %354 : vector<8x1xf32> to vector<8x128xf32>
    %356 = vector.broadcast %345 : vector<1x128xf32> to vector<8x128xf32>
    %357 = arith.mulf %355, %356 : vector<8x128xf32>
    %358 = arith.addf %353, %357 : vector<8x128xf32>
    %359 = vector.extract_strided_slice %233 {offsets = [0, 21], sizes = [8, 1], strides = [1, 1]} : vector<8x24xf32> to vector<8x1xf32>
    %c120_i32_82 = arith.constant 120 : i32
    %360 = tpu.dynamic_rotate %345 by %c120_i32_82 dim 1 : vector<1x128xf32>, i32 -> vector<1x128xf32>
    %cst_83 = arith.constant 0.000000e+00 : f32
    %361 = vector.broadcast %cst_83 : f32 to vector<1x128xf32>
    %362 = arith.select %18, %360, %361 : vector<1x128xi1>, vector<1x128xf32>
    %363 = vector.broadcast %359 : vector<8x1xf32> to vector<8x128xf32>
    %364 = vector.broadcast %362 : vector<1x128xf32> to vector<8x128xf32>
    %365 = arith.mulf %363, %364 : vector<8x128xf32>
    %366 = arith.addf %358, %365 : vector<8x128xf32>
    %367 = vector.extract_strided_slice %231 {offsets = [6, 0], sizes = [1, 128], strides = [1, 1]} : vector<8x128xf32> to vector<1x128xf32>
    %368 = vector.extract_strided_slice %233 {offsets = [0, 6], sizes = [8, 1], strides = [1, 1]} : vector<8x24xf32> to vector<8x1xf32>
    %c8_i32_84 = arith.constant 8 : i32
    %369 = tpu.dynamic_rotate %367 by %c8_i32_84 dim 1 : vector<1x128xf32>, i32 -> vector<1x128xf32>
    %cst_85 = arith.constant 0.000000e+00 : f32
    %370 = vector.broadcast %cst_85 : f32 to vector<1x128xf32>
    %371 = arith.select %9, %369, %370 : vector<1x128xi1>, vector<1x128xf32>
    %372 = vector.broadcast %368 : vector<8x1xf32> to vector<8x128xf32>
    %373 = vector.broadcast %371 : vector<1x128xf32> to vector<8x128xf32>
    %374 = arith.mulf %372, %373 : vector<8x128xf32>
    %375 = arith.addf %366, %374 : vector<8x128xf32>
    %376 = vector.extract_strided_slice %233 {offsets = [0, 14], sizes = [8, 1], strides = [1, 1]} : vector<8x24xf32> to vector<8x1xf32>
    %377 = vector.broadcast %376 : vector<8x1xf32> to vector<8x128xf32>
    %378 = vector.broadcast %367 : vector<1x128xf32> to vector<8x128xf32>
    %379 = arith.mulf %377, %378 : vector<8x128xf32>
    %380 = arith.addf %375, %379 : vector<8x128xf32>
    %381 = vector.extract_strided_slice %233 {offsets = [0, 22], sizes = [8, 1], strides = [1, 1]} : vector<8x24xf32> to vector<8x1xf32>
    %c120_i32_86 = arith.constant 120 : i32
    %382 = tpu.dynamic_rotate %367 by %c120_i32_86 dim 1 : vector<1x128xf32>, i32 -> vector<1x128xf32>
    %cst_87 = arith.constant 0.000000e+00 : f32
    %383 = vector.broadcast %cst_87 : f32 to vector<1x128xf32>
    %384 = arith.select %18, %382, %383 : vector<1x128xi1>, vector<1x128xf32>
    %385 = vector.broadcast %381 : vector<8x1xf32> to vector<8x128xf32>
    %386 = vector.broadcast %384 : vector<1x128xf32> to vector<8x128xf32>
    %387 = arith.mulf %385, %386 : vector<8x128xf32>
    %388 = arith.addf %380, %387 : vector<8x128xf32>
    %389 = vector.extract_strided_slice %231 {offsets = [7, 0], sizes = [1, 128], strides = [1, 1]} : vector<8x128xf32> to vector<1x128xf32>
    %390 = vector.extract_strided_slice %233 {offsets = [0, 7], sizes = [8, 1], strides = [1, 1]} : vector<8x24xf32> to vector<8x1xf32>
    %c8_i32_88 = arith.constant 8 : i32
    %391 = tpu.dynamic_rotate %389 by %c8_i32_88 dim 1 : vector<1x128xf32>, i32 -> vector<1x128xf32>
    %cst_89 = arith.constant 0.000000e+00 : f32
    %392 = vector.broadcast %cst_89 : f32 to vector<1x128xf32>
    %393 = arith.select %9, %391, %392 : vector<1x128xi1>, vector<1x128xf32>
    %394 = vector.broadcast %390 : vector<8x1xf32> to vector<8x128xf32>
    %395 = vector.broadcast %393 : vector<1x128xf32> to vector<8x128xf32>
    %396 = arith.mulf %394, %395 : vector<8x128xf32>
    %397 = arith.addf %388, %396 : vector<8x128xf32>
    %398 = vector.extract_strided_slice %233 {offsets = [0, 15], sizes = [8, 1], strides = [1, 1]} : vector<8x24xf32> to vector<8x1xf32>
    %399 = vector.broadcast %398 : vector<8x1xf32> to vector<8x128xf32>
    %400 = vector.broadcast %389 : vector<1x128xf32> to vector<8x128xf32>
    %401 = arith.mulf %399, %400 : vector<8x128xf32>
    %402 = arith.addf %397, %401 : vector<8x128xf32>
    %403 = vector.extract_strided_slice %233 {offsets = [0, 23], sizes = [8, 1], strides = [1, 1]} : vector<8x24xf32> to vector<8x1xf32>
    %c120_i32_90 = arith.constant 120 : i32
    %404 = tpu.dynamic_rotate %389 by %c120_i32_90 dim 1 : vector<1x128xf32>, i32 -> vector<1x128xf32>
    %cst_91 = arith.constant 0.000000e+00 : f32
    %405 = vector.broadcast %cst_91 : f32 to vector<1x128xf32>
    %406 = arith.select %18, %404, %405 : vector<1x128xi1>, vector<1x128xf32>
    %407 = vector.broadcast %403 : vector<8x1xf32> to vector<8x128xf32>
    %408 = vector.broadcast %406 : vector<1x128xf32> to vector<8x128xf32>
    %409 = arith.mulf %407, %408 : vector<8x128xf32>
    %410 = arith.addf %402, %409 : vector<8x128xf32>
    %c1_92 = arith.constant 1 : index
    %c0_93 = arith.constant 0 : index
    %c0_94 = arith.constant 0 : index
    %411 = vector.load %arg7[%c1_92, %c0_93, %c0_94] : memref<2x8x1xf32, #tpu.memory_space<vmem>>, vector<1x8x1xf32>
    %412 = vector.shape_cast %411 : vector<1x8x1xf32> to vector<8x1xf32>
    %413 = vector.broadcast %412 : vector<8x1xf32> to vector<8x128xf32>
    %414 = arith.addf %410, %413 : vector<8x128xf32>
    %cst_95 = arith.constant 0.000000e+00 : f32
    %415 = vector.broadcast %cst_95 : f32 to vector<8x128xf32>
    %416 = arith.maximumf %414, %415 : vector<8x128xf32>
    %c0_96 = arith.constant 0 : index
    %c0_97 = arith.constant 0 : index
    %417 = vector.load %arg8[%c0_96, %c0_97] : memref<8x1xf32, #tpu.memory_space<vmem>>, vector<8x1xf32>
    %418 = vector.broadcast %417 : vector<8x1xf32> to vector<8x128xf32>
    %419 = arith.mulf %416, %418 : vector<8x128xf32>
    %cst_98 = arith.constant dense<0.000000e+00> : vector<128xf32>
    %420 = vector.multi_reduction <add>, %419, %cst_98 [0] : vector<8x128xf32> to vector<128xf32>
    %421 = vector.shape_cast %420 : vector<128xf32> to vector<1x128xf32>
    %c0_99 = arith.constant 0 : index
    %c0_100 = arith.constant 0 : index
    %422 = vector.load %arg3[%c0_99, %c0_100] : memref<1x128xf32, #tpu.memory_space<vmem>>, vector<1x128xf32>
    %423 = arith.mulf %421, %422 : vector<1x128xf32>
    %cst_101 = arith.constant 0.000000e+00 : f32
    %424 = vector.broadcast %cst_101 : f32 to vector<1x128xf32>
    %c120_i32_102 = arith.constant 120 : i32
    %425 = tpu.dynamic_rotate %423 by %c120_i32_102 dim 1 : vector<1x128xf32>, i32 -> vector<1x128xf32>
    %426 = arith.addf %423, %425 : vector<1x128xf32>
    %c112_i32 = arith.constant 112 : i32
    %427 = tpu.dynamic_rotate %426 by %c112_i32 dim 1 : vector<1x128xf32>, i32 -> vector<1x128xf32>
    %428 = arith.addf %426, %427 : vector<1x128xf32>
    %c96_i32 = arith.constant 96 : i32
    %429 = tpu.dynamic_rotate %428 by %c96_i32 dim 1 : vector<1x128xf32>, i32 -> vector<1x128xf32>
    %430 = arith.addf %428, %429 : vector<1x128xf32>
    %c64_i32 = arith.constant 64 : i32
    %431 = tpu.dynamic_rotate %430 by %c64_i32 dim 1 : vector<1x128xf32>, i32 -> vector<1x128xf32>
    %432 = arith.addf %430, %431 : vector<1x128xf32>
    %433 = arith.addf %424, %432 : vector<1x128xf32>
    %434 = vector.extract_strided_slice %433 {offsets = [0, 0], sizes = [1, 8], strides = [1, 1]} : vector<1x128xf32> to vector<1x8xf32>
    %c0_103 = arith.constant 0 : index
    %c0_104 = arith.constant 0 : index
    %435 = memref.load %arg9[%c0_103, %c0_104] : memref<1x1xf32, #tpu.memory_space<smem>>
    %436 = vector.broadcast %435 : f32 to vector<1x8xf32>
    %437 = arith.addf %434, %436 : vector<1x8xf32>
    %c0_105 = arith.constant 0 : index
    %c0_106 = arith.constant 0 : index
    %438 = vector.load %arg10[%c0_105, %c0_106] : memref<1x8xf32, #tpu.memory_space<vmem>>, vector<1x8xf32>
    tpu.vector_store %arg10[%c0_105, %c0_106], %437 {strides = array<i32>} : memref<1x8xf32, #tpu.memory_space<vmem>>, vector<1x8xf32>,
    return
  }
  func.func @transform_0(%arg0: i32) -> (i32, i32) {
    %c0_i32 = arith.constant 0 : i32
    %c0_i32_0 = arith.constant 0 : i32
    return %c0_i32, %arg0 : i32, i32
  }
  func.func @transform_1(%arg0: i32) -> (i32, i32) {
    %c0_i32 = arith.constant 0 : i32
    %c0_i32_0 = arith.constant 0 : i32
    %c0_i32_1 = arith.constant 0 : i32
    return %c0_i32, %c0_i32_0 : i32, i32
  }
  func.func @transform_2(%arg0: i32) -> (i32, i32) {
    %c0_i32 = arith.constant 0 : i32
    %c0_i32_0 = arith.constant 0 : i32
    %c0_i32_1 = arith.constant 0 : i32
    return %c0_i32, %c0_i32_0 : i32, i32
  }
  func.func @transform_3(%arg0: i32) -> (i32, i32) {
    %c0_i32 = arith.constant 0 : i32
    %c0_i32_0 = arith.constant 0 : i32
    %c0_i32_1 = arith.constant 0 : i32
    return %c0_i32, %c0_i32_0 : i32, i32
  }
  func.func @transform_4(%arg0: i32) -> (i32, i32) {
    %c0_i32 = arith.constant 0 : i32
    %c0_i32_0 = arith.constant 0 : i32
    %c0_i32_1 = arith.constant 0 : i32
    return %c0_i32, %c0_i32_0 : i32, i32
  }
  func.func @transform_5(%arg0: i32) -> (i32, i32, i32) {
    %c0_i32 = arith.constant 0 : i32
    %c0_i32_0 = arith.constant 0 : i32
    %c0_i32_1 = arith.constant 0 : i32
    %c0_i32_2 = arith.constant 0 : i32
    return %c0_i32, %c0_i32_0, %c0_i32_1 : i32, i32, i32
  }
  func.func @transform_6(%arg0: i32) -> (i32, i32, i32) {
    %c0_i32 = arith.constant 0 : i32
    %c0_i32_0 = arith.constant 0 : i32
    %c0_i32_1 = arith.constant 0 : i32
    %c0_i32_2 = arith.constant 0 : i32
    return %c0_i32, %c0_i32_0, %c0_i32_1 : i32, i32, i32
  }
  func.func @transform_7(%arg0: i32) -> (i32, i32) {
    %c0_i32 = arith.constant 0 : i32
    %c0_i32_0 = arith.constant 0 : i32
    %c0_i32_1 = arith.constant 0 : i32
    return %c0_i32, %c0_i32_0 : i32, i32
  }
  func.func @transform_8(%arg0: i32) -> (i32, i32) {
    %c0_i32 = arith.constant 0 : i32
    %c0_i32_0 = arith.constant 0 : i32
    %c0_i32_1 = arith.constant 0 : i32
    return %c0_i32, %c0_i32_0 : i32, i32
  }
  func.func @transform_9(%arg0: i32) -> (i32, i32) {
    %c0_i32 = arith.constant 0 : i32
    %c0_i32_0 = arith.constant 0 : i32
    return %c0_i32, %arg0 : i32, i32
  }
}

module attributes {stable_mosaic.version = 11 : i64} {
  func.func @cnn_ndvi_kernel(%arg0: i32, %arg1: memref<1x128xf32, #tpu.memory_space<vmem>>, %arg2: memref<1x128xi32, #tpu.memory_space<vmem>>, %arg3: memref<1x128xf32, #tpu.memory_space<vmem>>, %arg4: memref<8x3xf32, #tpu.memory_space<vmem>>, %arg5: memref<8x1xf32, #tpu.memory_space<vmem>>, %arg6: memref<2x8x24xf32, #tpu.memory_space<vmem>>, %arg7: memref<2x8x1xf32, #tpu.memory_space<vmem>>, %arg8: memref<8x1xf32, #tpu.memory_space<vmem>>, %arg9: memref<1x1xf32, #tpu.memory_space<smem>>, %arg10: memref<1x8xf32, #tpu.memory_space<vmem>>) attributes {dimension_semantics = [#tpu.dimension_semantics<parallel>], iteration_bounds = array<i64: 1>, scalar_prefetch = 0 : i64, scratch_operands = 0 : i64, tpu.core_type = #tpu.core_type<tc>, window_params = [{transform_indices = @transform_0, window_bounds = array<i64: 1, 128>}, {pipeline_mode = #tpu.pipeline_mode<synchronous>, transform_indices = @transform_1, window_bounds = array<i64: 1, 128>}, {pipeline_mode = #tpu.pipeline_mode<synchronous>, transform_indices = @transform_2, window_bounds = array<i64: 1, 128>}, {pipeline_mode = #tpu.pipeline_mode<synchronous>, transform_indices = @transform_3, window_bounds = array<i64: 8, 3>}, {pipeline_mode = #tpu.pipeline_mode<synchronous>, transform_indices = @transform_4, window_bounds = array<i64: 8, 1>}, {pipeline_mode = #tpu.pipeline_mode<synchronous>, transform_indices = @transform_5, window_bounds = array<i64: 2, 8, 24>}, {pipeline_mode = #tpu.pipeline_mode<synchronous>, transform_indices = @transform_6, window_bounds = array<i64: 2, 8, 1>}, {pipeline_mode = #tpu.pipeline_mode<synchronous>, transform_indices = @transform_7, window_bounds = array<i64: 8, 1>}, {transform_indices = @transform_8, window_bounds = array<i64: 1, 1>}, {transform_indices = @transform_9, window_bounds = array<i64: 1, 8>}]} {
    %c0 = arith.constant 0 : index
    %c0_0 = arith.constant 0 : index
    %0 = vector.load %arg2[%c0, %c0_0] : memref<1x128xi32, #tpu.memory_space<vmem>>, vector<1x128xi32>
    %c-1_i32 = arith.constant -1 : i32
    %1 = vector.broadcast %c-1_i32 : i32 to vector<1x128xi32>
    %2 = arith.addi %0, %1 : vector<1x128xi32>
    %c0_i32 = arith.constant 0 : i32
    %3 = vector.broadcast %c0_i32 : i32 to vector<1x128xi32>
    %4 = arith.cmpi sge, %2, %3 : vector<1x128xi32>
    %c-1_i32_1 = arith.constant -1 : i32
    %5 = vector.broadcast %c-1_i32_1 : i32 to vector<1x128xi32>
    %6 = arith.addi %0, %5 : vector<1x128xi32>
    %c16_i32 = arith.constant 16 : i32
    %7 = vector.broadcast %c16_i32 : i32 to vector<1x128xi32>
    %8 = arith.cmpi slt, %6, %7 : vector<1x128xi32>
    %9 = arith.andi %4, %8 : vector<1x128xi1>
    %c1_i32 = arith.constant 1 : i32
    %10 = vector.broadcast %c1_i32 : i32 to vector<1x128xi32>
    %11 = arith.addi %0, %10 : vector<1x128xi32>
    %c0_i32_2 = arith.constant 0 : i32
    %12 = vector.broadcast %c0_i32_2 : i32 to vector<1x128xi32>
    %13 = arith.cmpi sge, %11, %12 : vector<1x128xi32>
    %c1_i32_3 = arith.constant 1 : i32
    %14 = vector.broadcast %c1_i32_3 : i32 to vector<1x128xi32>
    %15 = arith.addi %0, %14 : vector<1x128xi32>
    %c16_i32_4 = arith.constant 16 : i32
    %16 = vector.broadcast %c16_i32_4 : i32 to vector<1x128xi32>
    %17 = arith.cmpi slt, %15, %16 : vector<1x128xi32>
    %18 = arith.andi %13, %17 : vector<1x128xi1>
    %c0_5 = arith.constant 0 : index
    %c0_6 = arith.constant 0 : index
    %19 = vector.load %arg1[%c0_5, %c0_6] : memref<1x128xf32, #tpu.memory_space<vmem>>, vector<1x128xf32>
    %cst = arith.constant 0.000000e+00 : f32
    %20 = vector.broadcast %cst : f32 to vector<8x128xf32>
    %c0_7 = arith.constant 0 : index
    %c0_8 = arith.constant 0 : index
    %21 = vector.load %arg4[%c0_7, %c0_8] : memref<8x3xf32, #tpu.memory_space<vmem>>, vector<8x1xf32>
    %c8_i32 = arith.constant 8 : i32
    %22 = tpu.dynamic_rotate %19 by %c8_i32 dim 1 : vector<1x128xf32>, i32 -> vector<1x128xf32>
    %cst_9 = arith.constant 0.000000e+00 : f32
    %23 = vector.broadcast %cst_9 : f32 to vector<1x128xf32>
    %24 = arith.select %9, %22, %23 : vector<1x128xi1>, vector<1x128xf32>
    %25 = vector.broadcast %21 : vector<8x1xf32> to vector<8x128xf32>
    %26 = vector.broadcast %24 : vector<1x128xf32> to vector<8x128xf32>
    %27 = arith.mulf %25, %26 : vector<8x128xf32>
    %28 = arith.addf %20, %27 : vector<8x128xf32>
    %c0_10 = arith.constant 0 : index
    %c1 = arith.constant 1 : index
    %29 = vector.load %arg4[%c0_10, %c1] : memref<8x3xf32, #tpu.memory_space<vmem>>, vector<8x1xf32>
    %30 = vector.broadcast %29 : vector<8x1xf32> to vector<8x128xf32>
    %31 = vector.broadcast %19 : vector<1x128xf32> to vector<8x128xf32>
    %32 = arith.mulf %30, %31 : vector<8x128xf32>
    %33 = arith.addf %28, %32 : vector<8x128xf32>
    %c0_11 = arith.constant 0 : index
    %c2 = arith.constant 2 : index
    %34 = vector.load %arg4[%c0_11, %c2] : memref<8x3xf32, #tpu.memory_space<vmem>>, vector<8x1xf32>
    %c120_i32 = arith.constant 120 : i32
    %35 = tpu.dynamic_rotate %19 by %c120_i32 dim 1 : vector<1x128xf32>, i32 -> vector<1x128xf32>
    %cst_12 = arith.constant 0.000000e+00 : f32
    %36 = vector.broadcast %cst_12 : f32 to vector<1x128xf32>
    %37 = arith.select %18, %35, %36 : vector<1x128xi1>, vector<1x128xf32>
    %38 = vector.broadcast %34 : vector<8x1xf32> to vector<8x128xf32>
    %39 = vector.broadcast %37 : vector<1x128xf32> to vector<8x128xf32>
    %40 = arith.mulf %38, %39 : vector<8x128xf32>
    %41 = arith.addf %33, %40 : vector<8x128xf32>
    %c0_13 = arith.constant 0 : index
    %c0_14 = arith.constant 0 : index
    %42 = vector.load %arg5[%c0_13, %c0_14] : memref<8x1xf32, #tpu.memory_space<vmem>>, vector<8x1xf32>
    %43 = vector.broadcast %42 : vector<8x1xf32> to vector<8x128xf32>
    %44 = arith.addf %41, %43 : vector<8x128xf32>
    %cst_15 = arith.constant 0.000000e+00 : f32
    %45 = vector.broadcast %cst_15 : f32 to vector<8x128xf32>
    %46 = arith.maximumf %44, %45 : vector<8x128xf32>
    %c0_16 = arith.constant 0 : index
    %c0_17 = arith.constant 0 : index
    %c0_18 = arith.constant 0 : index
    %47 = vector.load %arg6[%c0_16, %c0_17, %c0_18] : memref<2x8x24xf32, #tpu.memory_space<vmem>>, vector<1x8x24xf32>
    %48 = vector.shape_cast %47 : vector<1x8x24xf32> to vector<8x24xf32>
    %cst_19 = arith.constant 0.000000e+00 : f32
    %49 = vector.broadcast %cst_19 : f32 to vector<8x128xf32>
    %50 = vector.extract_strided_slice %46 {offsets = [0, 0], sizes = [1, 128], strides = [1, 1]} : vector<8x128xf32> to vector<1x128xf32>
    %51 = vector.extract_strided_slice %48 {offsets = [0, 0], sizes = [8, 1], strides = [1, 1]} : vector<8x24xf32> to vector<8x1xf32>
    %c8_i32_20 = arith.constant 8 : i32
    %52 = tpu.dynamic_rotate %50 by %c8_i32_20 dim 1 : vector<1x128xf32>, i32 -> vector<1x128xf32>
    %cst_21 = arith.constant 0.000000e+00 : f32
    %53 = vector.broadcast %cst_21 : f32 to vector<1x128xf32>
    %54 = arith.select %9, %52, %53 : vector<1x128xi1>, vector<1x128xf32>
    %55 = vector.broadcast %51 : vector<8x1xf32> to vector<8x128xf32>
    %56 = vector.broadcast %54 : vector<1x128xf32> to vector<8x128xf32>
    %57 = arith.mulf %55, %56 : vector<8x128xf32>
    %58 = arith.addf %49, %57 : vector<8x128xf32>
    %59 = vector.extract_strided_slice %48 {offsets = [0, 8], sizes = [8, 1], strides = [1, 1]} : vector<8x24xf32> to vector<8x1xf32>
    %60 = vector.broadcast %59 : vector<8x1xf32> to vector<8x128xf32>
    %61 = vector.broadcast %50 : vector<1x128xf32> to vector<8x128xf32>
    %62 = arith.mulf %60, %61 : vector<8x128xf32>
    %63 = arith.addf %58, %62 : vector<8x128xf32>
    %64 = vector.extract_strided_slice %48 {offsets = [0, 16], sizes = [8, 1], strides = [1, 1]} : vector<8x24xf32> to vector<8x1xf32>
    %c120_i32_22 = arith.constant 120 : i32
    %65 = tpu.dynamic_rotate %50 by %c120_i32_22 dim 1 : vector<1x128xf32>, i32 -> vector<1x128xf32>
    %cst_23 = arith.constant 0.000000e+00 : f32
    %66 = vector.broadcast %cst_23 : f32 to vector<1x128xf32>
    %67 = arith.select %18, %65, %66 : vector<1x128xi1>, vector<1x128xf32>
    %68 = vector.broadcast %64 : vector<8x1xf32> to vector<8x128xf32>
    %69 = vector.broadcast %67 : vector<1x128xf32> to vector<8x128xf32>
    %70 = arith.mulf %68, %69 : vector<8x128xf32>
    %71 = arith.addf %63, %70 : vector<8x128xf32>
    %72 = vector.extract_strided_slice %46 {offsets = [1, 0], sizes = [1, 128], strides = [1, 1]} : vector<8x128xf32> to vector<1x128xf32>
    %73 = vector.extract_strided_slice %48 {offsets = [0, 1], sizes = [8, 1], strides = [1, 1]} : vector<8x24xf32> to vector<8x1xf32>
    %c8_i32_24 = arith.constant 8 : i32
    %74 = tpu.dynamic_rotate %72 by %c8_i32_24 dim 1 : vector<1x128xf32>, i32 -> vector<1x128xf32>
    %cst_25 = arith.constant 0.000000e+00 : f32
    %75 = vector.broadcast %cst_25 : f32 to vector<1x128xf32>
    %76 = arith.select %9, %74, %75 : vector<1x128xi1>, vector<1x128xf32>
    %77 = vector.broadcast %73 : vector<8x1xf32> to vector<8x128xf32>
    %78 = vector.broadcast %76 : vector<1x128xf32> to vector<8x128xf32>
    %79 = arith.mulf %77, %78 : vector<8x128xf32>
    %80 = arith.addf %71, %79 : vector<8x128xf32>
    %81 = vector.extract_strided_slice %48 {offsets = [0, 9], sizes = [8, 1], strides = [1, 1]} : vector<8x24xf32> to vector<8x1xf32>
    %82 = vector.broadcast %81 : vector<8x1xf32> to vector<8x128xf32>
    %83 = vector.broadcast %72 : vector<1x128xf32> to vector<8x128xf32>
    %84 = arith.mulf %82, %83 : vector<8x128xf32>
    %85 = arith.addf %80, %84 : vector<8x128xf32>
    %86 = vector.extract_strided_slice %48 {offsets = [0, 17], sizes = [8, 1], strides = [1, 1]} : vector<8x24xf32> to vector<8x1xf32>
    %c120_i32_26 = arith.constant 120 : i32
    %87 = tpu.dynamic_rotate %72 by %c120_i32_26 dim 1 : vector<1x128xf32>, i32 -> vector<1x128xf32>
    %cst_27 = arith.constant 0.000000e+00 : f32
    %88 = vector.broadcast %cst_27 : f32 to vector<1x128xf32>
    %89 = arith.select %18, %87, %88 : vector<1x128xi1>, vector<1x128xf32>
    %90 = vector.broadcast %86 : vector<8x1xf32> to vector<8x128xf32>
    %91 = vector.broadcast %89 : vector<1x128xf32> to vector<8x128xf32>
    %92 = arith.mulf %90, %91 : vector<8x128xf32>
    %93 = arith.addf %85, %92 : vector<8x128xf32>
    %94 = vector.extract_strided_slice %46 {offsets = [2, 0], sizes = [1, 128], strides = [1, 1]} : vector<8x128xf32> to vector<1x128xf32>
    %95 = vector.extract_strided_slice %48 {offsets = [0, 2], sizes = [8, 1], strides = [1, 1]} : vector<8x24xf32> to vector<8x1xf32>
    %c8_i32_28 = arith.constant 8 : i32
    %96 = tpu.dynamic_rotate %94 by %c8_i32_28 dim 1 : vector<1x128xf32>, i32 -> vector<1x128xf32>
    %cst_29 = arith.constant 0.000000e+00 : f32
    %97 = vector.broadcast %cst_29 : f32 to vector<1x128xf32>
    %98 = arith.select %9, %96, %97 : vector<1x128xi1>, vector<1x128xf32>
    %99 = vector.broadcast %95 : vector<8x1xf32> to vector<8x128xf32>
    %100 = vector.broadcast %98 : vector<1x128xf32> to vector<8x128xf32>
    %101 = arith.mulf %99, %100 : vector<8x128xf32>
    %102 = arith.addf %93, %101 : vector<8x128xf32>
    %103 = vector.extract_strided_slice %48 {offsets = [0, 10], sizes = [8, 1], strides = [1, 1]} : vector<8x24xf32> to vector<8x1xf32>
    %104 = vector.broadcast %103 : vector<8x1xf32> to vector<8x128xf32>
    %105 = vector.broadcast %94 : vector<1x128xf32> to vector<8x128xf32>
    %106 = arith.mulf %104, %105 : vector<8x128xf32>
    %107 = arith.addf %102, %106 : vector<8x128xf32>
    %108 = vector.extract_strided_slice %48 {offsets = [0, 18], sizes = [8, 1], strides = [1, 1]} : vector<8x24xf32> to vector<8x1xf32>
    %c120_i32_30 = arith.constant 120 : i32
    %109 = tpu.dynamic_rotate %94 by %c120_i32_30 dim 1 : vector<1x128xf32>, i32 -> vector<1x128xf32>
    %cst_31 = arith.constant 0.000000e+00 : f32
    %110 = vector.broadcast %cst_31 : f32 to vector<1x128xf32>
    %111 = arith.select %18, %109, %110 : vector<1x128xi1>, vector<1x128xf32>
    %112 = vector.broadcast %108 : vector<8x1xf32> to vector<8x128xf32>
    %113 = vector.broadcast %111 : vector<1x128xf32> to vector<8x128xf32>
    %114 = arith.mulf %112, %113 : vector<8x128xf32>
    %115 = arith.addf %107, %114 : vector<8x128xf32>
    %116 = vector.extract_strided_slice %46 {offsets = [3, 0], sizes = [1, 128], strides = [1, 1]} : vector<8x128xf32> to vector<1x128xf32>
    %117 = vector.extract_strided_slice %48 {offsets = [0, 3], sizes = [8, 1], strides = [1, 1]} : vector<8x24xf32> to vector<8x1xf32>
    %c8_i32_32 = arith.constant 8 : i32
    %118 = tpu.dynamic_rotate %116 by %c8_i32_32 dim 1 : vector<1x128xf32>, i32 -> vector<1x128xf32>
    %cst_33 = arith.constant 0.000000e+00 : f32
    %119 = vector.broadcast %cst_33 : f32 to vector<1x128xf32>
    %120 = arith.select %9, %118, %119 : vector<1x128xi1>, vector<1x128xf32>
    %121 = vector.broadcast %117 : vector<8x1xf32> to vector<8x128xf32>
    %122 = vector.broadcast %120 : vector<1x128xf32> to vector<8x128xf32>
    %123 = arith.mulf %121, %122 : vector<8x128xf32>
    %124 = arith.addf %115, %123 : vector<8x128xf32>
    %125 = vector.extract_strided_slice %48 {offsets = [0, 11], sizes = [8, 1], strides = [1, 1]} : vector<8x24xf32> to vector<8x1xf32>
    %126 = vector.broadcast %125 : vector<8x1xf32> to vector<8x128xf32>
    %127 = vector.broadcast %116 : vector<1x128xf32> to vector<8x128xf32>
    %128 = arith.mulf %126, %127 : vector<8x128xf32>
    %129 = arith.addf %124, %128 : vector<8x128xf32>
    %130 = vector.extract_strided_slice %48 {offsets = [0, 19], sizes = [8, 1], strides = [1, 1]} : vector<8x24xf32> to vector<8x1xf32>
    %c120_i32_34 = arith.constant 120 : i32
    %131 = tpu.dynamic_rotate %116 by %c120_i32_34 dim 1 : vector<1x128xf32>, i32 -> vector<1x128xf32>
    %cst_35 = arith.constant 0.000000e+00 : f32
    %132 = vector.broadcast %cst_35 : f32 to vector<1x128xf32>
    %133 = arith.select %18, %131, %132 : vector<1x128xi1>, vector<1x128xf32>
    %134 = vector.broadcast %130 : vector<8x1xf32> to vector<8x128xf32>
    %135 = vector.broadcast %133 : vector<1x128xf32> to vector<8x128xf32>
    %136 = arith.mulf %134, %135 : vector<8x128xf32>
    %137 = arith.addf %129, %136 : vector<8x128xf32>
    %138 = vector.extract_strided_slice %46 {offsets = [4, 0], sizes = [1, 128], strides = [1, 1]} : vector<8x128xf32> to vector<1x128xf32>
    %139 = vector.extract_strided_slice %48 {offsets = [0, 4], sizes = [8, 1], strides = [1, 1]} : vector<8x24xf32> to vector<8x1xf32>
    %c8_i32_36 = arith.constant 8 : i32
    %140 = tpu.dynamic_rotate %138 by %c8_i32_36 dim 1 : vector<1x128xf32>, i32 -> vector<1x128xf32>
    %cst_37 = arith.constant 0.000000e+00 : f32
    %141 = vector.broadcast %cst_37 : f32 to vector<1x128xf32>
    %142 = arith.select %9, %140, %141 : vector<1x128xi1>, vector<1x128xf32>
    %143 = vector.broadcast %139 : vector<8x1xf32> to vector<8x128xf32>
    %144 = vector.broadcast %142 : vector<1x128xf32> to vector<8x128xf32>
    %145 = arith.mulf %143, %144 : vector<8x128xf32>
    %146 = arith.addf %137, %145 : vector<8x128xf32>
    %147 = vector.extract_strided_slice %48 {offsets = [0, 12], sizes = [8, 1], strides = [1, 1]} : vector<8x24xf32> to vector<8x1xf32>
    %148 = vector.broadcast %147 : vector<8x1xf32> to vector<8x128xf32>
    %149 = vector.broadcast %138 : vector<1x128xf32> to vector<8x128xf32>
    %150 = arith.mulf %148, %149 : vector<8x128xf32>
    %151 = arith.addf %146, %150 : vector<8x128xf32>
    %152 = vector.extract_strided_slice %48 {offsets = [0, 20], sizes = [8, 1], strides = [1, 1]} : vector<8x24xf32> to vector<8x1xf32>
    %c120_i32_38 = arith.constant 120 : i32
    %153 = tpu.dynamic_rotate %138 by %c120_i32_38 dim 1 : vector<1x128xf32>, i32 -> vector<1x128xf32>
    %cst_39 = arith.constant 0.000000e+00 : f32
    %154 = vector.broadcast %cst_39 : f32 to vector<1x128xf32>
    %155 = arith.select %18, %153, %154 : vector<1x128xi1>, vector<1x128xf32>
    %156 = vector.broadcast %152 : vector<8x1xf32> to vector<8x128xf32>
    %157 = vector.broadcast %155 : vector<1x128xf32> to vector<8x128xf32>
    %158 = arith.mulf %156, %157 : vector<8x128xf32>
    %159 = arith.addf %151, %158 : vector<8x128xf32>
    %160 = vector.extract_strided_slice %46 {offsets = [5, 0], sizes = [1, 128], strides = [1, 1]} : vector<8x128xf32> to vector<1x128xf32>
    %161 = vector.extract_strided_slice %48 {offsets = [0, 5], sizes = [8, 1], strides = [1, 1]} : vector<8x24xf32> to vector<8x1xf32>
    %c8_i32_40 = arith.constant 8 : i32
    %162 = tpu.dynamic_rotate %160 by %c8_i32_40 dim 1 : vector<1x128xf32>, i32 -> vector<1x128xf32>
    %cst_41 = arith.constant 0.000000e+00 : f32
    %163 = vector.broadcast %cst_41 : f32 to vector<1x128xf32>
    %164 = arith.select %9, %162, %163 : vector<1x128xi1>, vector<1x128xf32>
    %165 = vector.broadcast %161 : vector<8x1xf32> to vector<8x128xf32>
    %166 = vector.broadcast %164 : vector<1x128xf32> to vector<8x128xf32>
    %167 = arith.mulf %165, %166 : vector<8x128xf32>
    %168 = arith.addf %159, %167 : vector<8x128xf32>
    %169 = vector.extract_strided_slice %48 {offsets = [0, 13], sizes = [8, 1], strides = [1, 1]} : vector<8x24xf32> to vector<8x1xf32>
    %170 = vector.broadcast %169 : vector<8x1xf32> to vector<8x128xf32>
    %171 = vector.broadcast %160 : vector<1x128xf32> to vector<8x128xf32>
    %172 = arith.mulf %170, %171 : vector<8x128xf32>
    %173 = arith.addf %168, %172 : vector<8x128xf32>
    %174 = vector.extract_strided_slice %48 {offsets = [0, 21], sizes = [8, 1], strides = [1, 1]} : vector<8x24xf32> to vector<8x1xf32>
    %c120_i32_42 = arith.constant 120 : i32
    %175 = tpu.dynamic_rotate %160 by %c120_i32_42 dim 1 : vector<1x128xf32>, i32 -> vector<1x128xf32>
    %cst_43 = arith.constant 0.000000e+00 : f32
    %176 = vector.broadcast %cst_43 : f32 to vector<1x128xf32>
    %177 = arith.select %18, %175, %176 : vector<1x128xi1>, vector<1x128xf32>
    %178 = vector.broadcast %174 : vector<8x1xf32> to vector<8x128xf32>
    %179 = vector.broadcast %177 : vector<1x128xf32> to vector<8x128xf32>
    %180 = arith.mulf %178, %179 : vector<8x128xf32>
    %181 = arith.addf %173, %180 : vector<8x128xf32>
    %182 = vector.extract_strided_slice %46 {offsets = [6, 0], sizes = [1, 128], strides = [1, 1]} : vector<8x128xf32> to vector<1x128xf32>
    %183 = vector.extract_strided_slice %48 {offsets = [0, 6], sizes = [8, 1], strides = [1, 1]} : vector<8x24xf32> to vector<8x1xf32>
    %c8_i32_44 = arith.constant 8 : i32
    %184 = tpu.dynamic_rotate %182 by %c8_i32_44 dim 1 : vector<1x128xf32>, i32 -> vector<1x128xf32>
    %cst_45 = arith.constant 0.000000e+00 : f32
    %185 = vector.broadcast %cst_45 : f32 to vector<1x128xf32>
    %186 = arith.select %9, %184, %185 : vector<1x128xi1>, vector<1x128xf32>
    %187 = vector.broadcast %183 : vector<8x1xf32> to vector<8x128xf32>
    %188 = vector.broadcast %186 : vector<1x128xf32> to vector<8x128xf32>
    %189 = arith.mulf %187, %188 : vector<8x128xf32>
    %190 = arith.addf %181, %189 : vector<8x128xf32>
    %191 = vector.extract_strided_slice %48 {offsets = [0, 14], sizes = [8, 1], strides = [1, 1]} : vector<8x24xf32> to vector<8x1xf32>
    %192 = vector.broadcast %191 : vector<8x1xf32> to vector<8x128xf32>
    %193 = vector.broadcast %182 : vector<1x128xf32> to vector<8x128xf32>
    %194 = arith.mulf %192, %193 : vector<8x128xf32>
    %195 = arith.addf %190, %194 : vector<8x128xf32>
    %196 = vector.extract_strided_slice %48 {offsets = [0, 22], sizes = [8, 1], strides = [1, 1]} : vector<8x24xf32> to vector<8x1xf32>
    %c120_i32_46 = arith.constant 120 : i32
    %197 = tpu.dynamic_rotate %182 by %c120_i32_46 dim 1 : vector<1x128xf32>, i32 -> vector<1x128xf32>
    %cst_47 = arith.constant 0.000000e+00 : f32
    %198 = vector.broadcast %cst_47 : f32 to vector<1x128xf32>
    %199 = arith.select %18, %197, %198 : vector<1x128xi1>, vector<1x128xf32>
    %200 = vector.broadcast %196 : vector<8x1xf32> to vector<8x128xf32>
    %201 = vector.broadcast %199 : vector<1x128xf32> to vector<8x128xf32>
    %202 = arith.mulf %200, %201 : vector<8x128xf32>
    %203 = arith.addf %195, %202 : vector<8x128xf32>
    %204 = vector.extract_strided_slice %46 {offsets = [7, 0], sizes = [1, 128], strides = [1, 1]} : vector<8x128xf32> to vector<1x128xf32>
    %205 = vector.extract_strided_slice %48 {offsets = [0, 7], sizes = [8, 1], strides = [1, 1]} : vector<8x24xf32> to vector<8x1xf32>
    %c8_i32_48 = arith.constant 8 : i32
    %206 = tpu.dynamic_rotate %204 by %c8_i32_48 dim 1 : vector<1x128xf32>, i32 -> vector<1x128xf32>
    %cst_49 = arith.constant 0.000000e+00 : f32
    %207 = vector.broadcast %cst_49 : f32 to vector<1x128xf32>
    %208 = arith.select %9, %206, %207 : vector<1x128xi1>, vector<1x128xf32>
    %209 = vector.broadcast %205 : vector<8x1xf32> to vector<8x128xf32>
    %210 = vector.broadcast %208 : vector<1x128xf32> to vector<8x128xf32>
    %211 = arith.mulf %209, %210 : vector<8x128xf32>
    %212 = arith.addf %203, %211 : vector<8x128xf32>
    %213 = vector.extract_strided_slice %48 {offsets = [0, 15], sizes = [8, 1], strides = [1, 1]} : vector<8x24xf32> to vector<8x1xf32>
    %214 = vector.broadcast %213 : vector<8x1xf32> to vector<8x128xf32>
    %215 = vector.broadcast %204 : vector<1x128xf32> to vector<8x128xf32>
    %216 = arith.mulf %214, %215 : vector<8x128xf32>
    %217 = arith.addf %212, %216 : vector<8x128xf32>
    %218 = vector.extract_strided_slice %48 {offsets = [0, 23], sizes = [8, 1], strides = [1, 1]} : vector<8x24xf32> to vector<8x1xf32>
    %c120_i32_50 = arith.constant 120 : i32
    %219 = tpu.dynamic_rotate %204 by %c120_i32_50 dim 1 : vector<1x128xf32>, i32 -> vector<1x128xf32>
    %cst_51 = arith.constant 0.000000e+00 : f32
    %220 = vector.broadcast %cst_51 : f32 to vector<1x128xf32>
    %221 = arith.select %18, %219, %220 : vector<1x128xi1>, vector<1x128xf32>
    %222 = vector.broadcast %218 : vector<8x1xf32> to vector<8x128xf32>
    %223 = vector.broadcast %221 : vector<1x128xf32> to vector<8x128xf32>
    %224 = arith.mulf %222, %223 : vector<8x128xf32>
    %225 = arith.addf %217, %224 : vector<8x128xf32>
    %c0_52 = arith.constant 0 : index
    %c0_53 = arith.constant 0 : index
    %c0_54 = arith.constant 0 : index
    %226 = vector.load %arg7[%c0_52, %c0_53, %c0_54] : memref<2x8x1xf32, #tpu.memory_space<vmem>>, vector<1x8x1xf32>
    %227 = vector.shape_cast %226 : vector<1x8x1xf32> to vector<8x1xf32>
    %228 = vector.broadcast %227 : vector<8x1xf32> to vector<8x128xf32>
    %229 = arith.addf %225, %228 : vector<8x128xf32>
    %cst_55 = arith.constant 0.000000e+00 : f32
    %230 = vector.broadcast %cst_55 : f32 to vector<8x128xf32>
    %231 = arith.maximumf %229, %230 : vector<8x128xf32>
    %c1_56 = arith.constant 1 : index
    %c0_57 = arith.constant 0 : index
    %c0_58 = arith.constant 0 : index
    %232 = vector.load %arg6[%c1_56, %c0_57, %c0_58] : memref<2x8x24xf32, #tpu.memory_space<vmem>>, vector<1x8x24xf32>
    %233 = vector.shape_cast %232 : vector<1x8x24xf32> to vector<8x24xf32>
    %cst_59 = arith.constant 0.000000e+00 : f32
    %234 = vector.broadcast %cst_59 : f32 to vector<8x128xf32>
    %235 = vector.extract_strided_slice %231 {offsets = [0, 0], sizes = [1, 128], strides = [1, 1]} : vector<8x128xf32> to vector<1x128xf32>
    %236 = vector.extract_strided_slice %233 {offsets = [0, 0], sizes = [8, 1], strides = [1, 1]} : vector<8x24xf32> to vector<8x1xf32>
    %c8_i32_60 = arith.constant 8 : i32
    %237 = tpu.dynamic_rotate %235 by %c8_i32_60 dim 1 : vector<1x128xf32>, i32 -> vector<1x128xf32>
    %cst_61 = arith.constant 0.000000e+00 : f32
    %238 = vector.broadcast %cst_61 : f32 to vector<1x128xf32>
    %239 = arith.select %9, %237, %238 : vector<1x128xi1>, vector<1x128xf32>
    %240 = vector.broadcast %236 : vector<8x1xf32> to vector<8x128xf32>
    %241 = vector.broadcast %239 : vector<1x128xf32> to vector<8x128xf32>
    %242 = arith.mulf %240, %241 : vector<8x128xf32>
    %243 = arith.addf %234, %242 : vector<8x128xf32>
    %244 = vector.extract_strided_slice %233 {offsets = [0, 8], sizes = [8, 1], strides = [1, 1]} : vector<8x24xf32> to vector<8x1xf32>
    %245 = vector.broadcast %244 : vector<8x1xf32> to vector<8x128xf32>
    %246 = vector.broadcast %235 : vector<1x128xf32> to vector<8x128xf32>
    %247 = arith.mulf %245, %246 : vector<8x128xf32>
    %248 = arith.addf %243, %247 : vector<8x128xf32>
    %249 = vector.extract_strided_slice %233 {offsets = [0, 16], sizes = [8, 1], strides = [1, 1]} : vector<8x24xf32> to vector<8x1xf32>
    %c120_i32_62 = arith.constant 120 : i32
    %250 = tpu.dynamic_rotate %235 by %c120_i32_62 dim 1 : vector<1x128xf32>, i32 -> vector<1x128xf32>
    %cst_63 = arith.constant 0.000000e+00 : f32
    %251 = vector.broadcast %cst_63 : f32 to vector<1x128xf32>
    %252 = arith.select %18, %250, %251 : vector<1x128xi1>, vector<1x128xf32>
    %253 = vector.broadcast %249 : vector<8x1xf32> to vector<8x128xf32>
    %254 = vector.broadcast %252 : vector<1x128xf32> to vector<8x128xf32>
    %255 = arith.mulf %253, %254 : vector<8x128xf32>
    %256 = arith.addf %248, %255 : vector<8x128xf32>
    %257 = vector.extract_strided_slice %231 {offsets = [1, 0], sizes = [1, 128], strides = [1, 1]} : vector<8x128xf32> to vector<1x128xf32>
    %258 = vector.extract_strided_slice %233 {offsets = [0, 1], sizes = [8, 1], strides = [1, 1]} : vector<8x24xf32> to vector<8x1xf32>
    %c8_i32_64 = arith.constant 8 : i32
    %259 = tpu.dynamic_rotate %257 by %c8_i32_64 dim 1 : vector<1x128xf32>, i32 -> vector<1x128xf32>
    %cst_65 = arith.constant 0.000000e+00 : f32
    %260 = vector.broadcast %cst_65 : f32 to vector<1x128xf32>
    %261 = arith.select %9, %259, %260 : vector<1x128xi1>, vector<1x128xf32>
    %262 = vector.broadcast %258 : vector<8x1xf32> to vector<8x128xf32>
    %263 = vector.broadcast %261 : vector<1x128xf32> to vector<8x128xf32>
    %264 = arith.mulf %262, %263 : vector<8x128xf32>
    %265 = arith.addf %256, %264 : vector<8x128xf32>
    %266 = vector.extract_strided_slice %233 {offsets = [0, 9], sizes = [8, 1], strides = [1, 1]} : vector<8x24xf32> to vector<8x1xf32>
    %267 = vector.broadcast %266 : vector<8x1xf32> to vector<8x128xf32>
    %268 = vector.broadcast %257 : vector<1x128xf32> to vector<8x128xf32>
    %269 = arith.mulf %267, %268 : vector<8x128xf32>
    %270 = arith.addf %265, %269 : vector<8x128xf32>
    %271 = vector.extract_strided_slice %233 {offsets = [0, 17], sizes = [8, 1], strides = [1, 1]} : vector<8x24xf32> to vector<8x1xf32>
    %c120_i32_66 = arith.constant 120 : i32
    %272 = tpu.dynamic_rotate %257 by %c120_i32_66 dim 1 : vector<1x128xf32>, i32 -> vector<1x128xf32>
    %cst_67 = arith.constant 0.000000e+00 : f32
    %273 = vector.broadcast %cst_67 : f32 to vector<1x128xf32>
    %274 = arith.select %18, %272, %273 : vector<1x128xi1>, vector<1x128xf32>
    %275 = vector.broadcast %271 : vector<8x1xf32> to vector<8x128xf32>
    %276 = vector.broadcast %274 : vector<1x128xf32> to vector<8x128xf32>
    %277 = arith.mulf %275, %276 : vector<8x128xf32>
    %278 = arith.addf %270, %277 : vector<8x128xf32>
    %279 = vector.extract_strided_slice %231 {offsets = [2, 0], sizes = [1, 128], strides = [1, 1]} : vector<8x128xf32> to vector<1x128xf32>
    %280 = vector.extract_strided_slice %233 {offsets = [0, 2], sizes = [8, 1], strides = [1, 1]} : vector<8x24xf32> to vector<8x1xf32>
    %c8_i32_68 = arith.constant 8 : i32
    %281 = tpu.dynamic_rotate %279 by %c8_i32_68 dim 1 : vector<1x128xf32>, i32 -> vector<1x128xf32>
    %cst_69 = arith.constant 0.000000e+00 : f32
    %282 = vector.broadcast %cst_69 : f32 to vector<1x128xf32>
    %283 = arith.select %9, %281, %282 : vector<1x128xi1>, vector<1x128xf32>
    %284 = vector.broadcast %280 : vector<8x1xf32> to vector<8x128xf32>
    %285 = vector.broadcast %283 : vector<1x128xf32> to vector<8x128xf32>
    %286 = arith.mulf %284, %285 : vector<8x128xf32>
    %287 = arith.addf %278, %286 : vector<8x128xf32>
    %288 = vector.extract_strided_slice %233 {offsets = [0, 10], sizes = [8, 1], strides = [1, 1]} : vector<8x24xf32> to vector<8x1xf32>
    %289 = vector.broadcast %288 : vector<8x1xf32> to vector<8x128xf32>
    %290 = vector.broadcast %279 : vector<1x128xf32> to vector<8x128xf32>
    %291 = arith.mulf %289, %290 : vector<8x128xf32>
    %292 = arith.addf %287, %291 : vector<8x128xf32>
    %293 = vector.extract_strided_slice %233 {offsets = [0, 18], sizes = [8, 1], strides = [1, 1]} : vector<8x24xf32> to vector<8x1xf32>
    %c120_i32_70 = arith.constant 120 : i32
    %294 = tpu.dynamic_rotate %279 by %c120_i32_70 dim 1 : vector<1x128xf32>, i32 -> vector<1x128xf32>
    %cst_71 = arith.constant 0.000000e+00 : f32
    %295 = vector.broadcast %cst_71 : f32 to vector<1x128xf32>
    %296 = arith.select %18, %294, %295 : vector<1x128xi1>, vector<1x128xf32>
    %297 = vector.broadcast %293 : vector<8x1xf32> to vector<8x128xf32>
    %298 = vector.broadcast %296 : vector<1x128xf32> to vector<8x128xf32>
    %299 = arith.mulf %297, %298 : vector<8x128xf32>
    %300 = arith.addf %292, %299 : vector<8x128xf32>
    %301 = vector.extract_strided_slice %231 {offsets = [3, 0], sizes = [1, 128], strides = [1, 1]} : vector<8x128xf32> to vector<1x128xf32>
    %302 = vector.extract_strided_slice %233 {offsets = [0, 3], sizes = [8, 1], strides = [1, 1]} : vector<8x24xf32> to vector<8x1xf32>
    %c8_i32_72 = arith.constant 8 : i32
    %303 = tpu.dynamic_rotate %301 by %c8_i32_72 dim 1 : vector<1x128xf32>, i32 -> vector<1x128xf32>
    %cst_73 = arith.constant 0.000000e+00 : f32
    %304 = vector.broadcast %cst_73 : f32 to vector<1x128xf32>
    %305 = arith.select %9, %303, %304 : vector<1x128xi1>, vector<1x128xf32>
    %306 = vector.broadcast %302 : vector<8x1xf32> to vector<8x128xf32>
    %307 = vector.broadcast %305 : vector<1x128xf32> to vector<8x128xf32>
    %308 = arith.mulf %306, %307 : vector<8x128xf32>
    %309 = arith.addf %300, %308 : vector<8x128xf32>
    %310 = vector.extract_strided_slice %233 {offsets = [0, 11], sizes = [8, 1], strides = [1, 1]} : vector<8x24xf32> to vector<8x1xf32>
    %311 = vector.broadcast %310 : vector<8x1xf32> to vector<8x128xf32>
    %312 = vector.broadcast %301 : vector<1x128xf32> to vector<8x128xf32>
    %313 = arith.mulf %311, %312 : vector<8x128xf32>
    %314 = arith.addf %309, %313 : vector<8x128xf32>
    %315 = vector.extract_strided_slice %233 {offsets = [0, 19], sizes = [8, 1], strides = [1, 1]} : vector<8x24xf32> to vector<8x1xf32>
    %c120_i32_74 = arith.constant 120 : i32
    %316 = tpu.dynamic_rotate %301 by %c120_i32_74 dim 1 : vector<1x128xf32>, i32 -> vector<1x128xf32>
    %cst_75 = arith.constant 0.000000e+00 : f32
    %317 = vector.broadcast %cst_75 : f32 to vector<1x128xf32>
    %318 = arith.select %18, %316, %317 : vector<1x128xi1>, vector<1x128xf32>
    %319 = vector.broadcast %315 : vector<8x1xf32> to vector<8x128xf32>
    %320 = vector.broadcast %318 : vector<1x128xf32> to vector<8x128xf32>
    %321 = arith.mulf %319, %320 : vector<8x128xf32>
    %322 = arith.addf %314, %321 : vector<8x128xf32>
    %323 = vector.extract_strided_slice %231 {offsets = [4, 0], sizes = [1, 128], strides = [1, 1]} : vector<8x128xf32> to vector<1x128xf32>
    %324 = vector.extract_strided_slice %233 {offsets = [0, 4], sizes = [8, 1], strides = [1, 1]} : vector<8x24xf32> to vector<8x1xf32>
    %c8_i32_76 = arith.constant 8 : i32
    %325 = tpu.dynamic_rotate %323 by %c8_i32_76 dim 1 : vector<1x128xf32>, i32 -> vector<1x128xf32>
    %cst_77 = arith.constant 0.000000e+00 : f32
    %326 = vector.broadcast %cst_77 : f32 to vector<1x128xf32>
    %327 = arith.select %9, %325, %326 : vector<1x128xi1>, vector<1x128xf32>
    %328 = vector.broadcast %324 : vector<8x1xf32> to vector<8x128xf32>
    %329 = vector.broadcast %327 : vector<1x128xf32> to vector<8x128xf32>
    %330 = arith.mulf %328, %329 : vector<8x128xf32>
    %331 = arith.addf %322, %330 : vector<8x128xf32>
    %332 = vector.extract_strided_slice %233 {offsets = [0, 12], sizes = [8, 1], strides = [1, 1]} : vector<8x24xf32> to vector<8x1xf32>
    %333 = vector.broadcast %332 : vector<8x1xf32> to vector<8x128xf32>
    %334 = vector.broadcast %323 : vector<1x128xf32> to vector<8x128xf32>
    %335 = arith.mulf %333, %334 : vector<8x128xf32>
    %336 = arith.addf %331, %335 : vector<8x128xf32>
    %337 = vector.extract_strided_slice %233 {offsets = [0, 20], sizes = [8, 1], strides = [1, 1]} : vector<8x24xf32> to vector<8x1xf32>
    %c120_i32_78 = arith.constant 120 : i32
    %338 = tpu.dynamic_rotate %323 by %c120_i32_78 dim 1 : vector<1x128xf32>, i32 -> vector<1x128xf32>
    %cst_79 = arith.constant 0.000000e+00 : f32
    %339 = vector.broadcast %cst_79 : f32 to vector<1x128xf32>
    %340 = arith.select %18, %338, %339 : vector<1x128xi1>, vector<1x128xf32>
    %341 = vector.broadcast %337 : vector<8x1xf32> to vector<8x128xf32>
    %342 = vector.broadcast %340 : vector<1x128xf32> to vector<8x128xf32>
    %343 = arith.mulf %341, %342 : vector<8x128xf32>
    %344 = arith.addf %336, %343 : vector<8x128xf32>
    %345 = vector.extract_strided_slice %231 {offsets = [5, 0], sizes = [1, 128], strides = [1, 1]} : vector<8x128xf32> to vector<1x128xf32>
    %346 = vector.extract_strided_slice %233 {offsets = [0, 5], sizes = [8, 1], strides = [1, 1]} : vector<8x24xf32> to vector<8x1xf32>
    %c8_i32_80 = arith.constant 8 : i32
    %347 = tpu.dynamic_rotate %345 by %c8_i32_80 dim 1 : vector<1x128xf32>, i32 -> vector<1x128xf32>
    %cst_81 = arith.constant 0.000000e+00 : f32
    %348 = vector.broadcast %cst_81 : f32 to vector<1x128xf32>
    %349 = arith.select %9, %347, %348 : vector<1x128xi1>, vector<1x128xf32>
    %350 = vector.broadcast %346 : vector<8x1xf32> to vector<8x128xf32>
    %351 = vector.broadcast %349 : vector<1x128xf32> to vector<8x128xf32>
    %352 = arith.mulf %350, %351 : vector<8x128xf32>
    %353 = arith.addf %344, %352 : vector<8x128xf32>
    %354 = vector.extract_strided_slice %233 {offsets = [0, 13], sizes = [8, 1], strides = [1, 1]} : vector<8x24xf32> to vector<8x1xf32>
    %355 = vector.broadcast %354 : vector<8x1xf32> to vector<8x128xf32>
    %356 = vector.broadcast %345 : vector<1x128xf32> to vector<8x128xf32>
    %357 = arith.mulf %355, %356 : vector<8x128xf32>
    %358 = arith.addf %353, %357 : vector<8x128xf32>
    %359 = vector.extract_strided_slice %233 {offsets = [0, 21], sizes = [8, 1], strides = [1, 1]} : vector<8x24xf32> to vector<8x1xf32>
    %c120_i32_82 = arith.constant 120 : i32
    %360 = tpu.dynamic_rotate %345 by %c120_i32_82 dim 1 : vector<1x128xf32>, i32 -> vector<1x128xf32>
    %cst_83 = arith.constant 0.000000e+00 : f32
    %361 = vector.broadcast %cst_83 : f32 to vector<1x128xf32>
    %362 = arith.select %18, %360, %361 : vector<1x128xi1>, vector<1x128xf32>
    %363 = vector.broadcast %359 : vector<8x1xf32> to vector<8x128xf32>
    %364 = vector.broadcast %362 : vector<1x128xf32> to vector<8x128xf32>
    %365 = arith.mulf %363, %364 : vector<8x128xf32>
    %366 = arith.addf %358, %365 : vector<8x128xf32>
    %367 = vector.extract_strided_slice %231 {offsets = [6, 0], sizes = [1, 128], strides = [1, 1]} : vector<8x128xf32> to vector<1x128xf32>
    %368 = vector.extract_strided_slice %233 {offsets = [0, 6], sizes = [8, 1], strides = [1, 1]} : vector<8x24xf32> to vector<8x1xf32>
    %c8_i32_84 = arith.constant 8 : i32
    %369 = tpu.dynamic_rotate %367 by %c8_i32_84 dim 1 : vector<1x128xf32>, i32 -> vector<1x128xf32>
    %cst_85 = arith.constant 0.000000e+00 : f32
    %370 = vector.broadcast %cst_85 : f32 to vector<1x128xf32>
    %371 = arith.select %9, %369, %370 : vector<1x128xi1>, vector<1x128xf32>
    %372 = vector.broadcast %368 : vector<8x1xf32> to vector<8x128xf32>
    %373 = vector.broadcast %371 : vector<1x128xf32> to vector<8x128xf32>
    %374 = arith.mulf %372, %373 : vector<8x128xf32>
    %375 = arith.addf %366, %374 : vector<8x128xf32>
    %376 = vector.extract_strided_slice %233 {offsets = [0, 14], sizes = [8, 1], strides = [1, 1]} : vector<8x24xf32> to vector<8x1xf32>
    %377 = vector.broadcast %376 : vector<8x1xf32> to vector<8x128xf32>
    %378 = vector.broadcast %367 : vector<1x128xf32> to vector<8x128xf32>
    %379 = arith.mulf %377, %378 : vector<8x128xf32>
    %380 = arith.addf %375, %379 : vector<8x128xf32>
    %381 = vector.extract_strided_slice %233 {offsets = [0, 22], sizes = [8, 1], strides = [1, 1]} : vector<8x24xf32> to vector<8x1xf32>
    %c120_i32_86 = arith.constant 120 : i32
    %382 = tpu.dynamic_rotate %367 by %c120_i32_86 dim 1 : vector<1x128xf32>, i32 -> vector<1x128xf32>
    %cst_87 = arith.constant 0.000000e+00 : f32
    %383 = vector.broadcast %cst_87 : f32 to vector<1x128xf32>
    %384 = arith.select %18, %382, %383 : vector<1x128xi1>, vector<1x128xf32>
    %385 = vector.broadcast %381 : vector<8x1xf32> to vector<8x128xf32>
    %386 = vector.broadcast %384 : vector<1x128xf32> to vector<8x128xf32>
    %387 = arith.mulf %385, %386 : vector<8x128xf32>
    %388 = arith.addf %380, %387 : vector<8x128xf32>
    %389 = vector.extract_strided_slice %231 {offsets = [7, 0], sizes = [1, 128], strides = [1, 1]} : vector<8x128xf32> to vector<1x128xf32>
    %390 = vector.extract_strided_slice %233 {offsets = [0, 7], sizes = [8, 1], strides = [1, 1]} : vector<8x24xf32> to vector<8x1xf32>
    %c8_i32_88 = arith.constant 8 : i32
    %391 = tpu.dynamic_rotate %389 by %c8_i32_88 dim 1 : vector<1x128xf32>, i32 -> vector<1x128xf32>
    %cst_89 = arith.constant 0.000000e+00 : f32
    %392 = vector.broadcast %cst_89 : f32 to vector<1x128xf32>
    %393 = arith.select %9, %391, %392 : vector<1x128xi1>, vector<1x128xf32>
    %394 = vector.broadcast %390 : vector<8x1xf32> to vector<8x128xf32>
    %395 = vector.broadcast %393 : vector<1x128xf32> to vector<8x128xf32>
    %396 = arith.mulf %394, %395 : vector<8x128xf32>
    %397 = arith.addf %388, %396 : vector<8x128xf32>
    %398 = vector.extract_strided_slice %233 {offsets = [0, 15], sizes = [8, 1], strides = [1, 1]} : vector<8x24xf32> to vector<8x1xf32>
    %399 = vector.broadcast %398 : vector<8x1xf32> to vector<8x128xf32>
    %400 = vector.broadcast %389 : vector<1x128xf32> to vector<8x128xf32>
    %401 = arith.mulf %399, %400 : vector<8x128xf32>
    %402 = arith.addf %397, %401 : vector<8x128xf32>
    %403 = vector.extract_strided_slice %233 {offsets = [0, 23], sizes = [8, 1], strides = [1, 1]} : vector<8x24xf32> to vector<8x1xf32>
    %c120_i32_90 = arith.constant 120 : i32
    %404 = tpu.dynamic_rotate %389 by %c120_i32_90 dim 1 : vector<1x128xf32>, i32 -> vector<1x128xf32>
    %cst_91 = arith.constant 0.000000e+00 : f32
    %405 = vector.broadcast %cst_91 : f32 to vector<1x128xf32>
    %406 = arith.select %18, %404, %405 : vector<1x128xi1>, vector<1x128xf32>
    %407 = vector.broadcast %403 : vector<8x1xf32> to vector<8x128xf32>
    %408 = vector.broadcast %406 : vector<1x128xf32> to vector<8x128xf32>
    %409 = arith.mulf %407, %408 : vector<8x128xf32>
    %410 = arith.addf %402, %409 : vector<8x128xf32>
    %c1_92 = arith.constant 1 : index
    %c0_93 = arith.constant 0 : index
    %c0_94 = arith.constant 0 : index
    %411 = vector.load %arg7[%c1_92, %c0_93, %c0_94] : memref<2x8x1xf32, #tpu.memory_space<vmem>>, vector<1x8x1xf32>
    %412 = vector.shape_cast %411 : vector<1x8x1xf32> to vector<8x1xf32>
    %413 = vector.broadcast %412 : vector<8x1xf32> to vector<8x128xf32>
    %414 = arith.addf %410, %413 : vector<8x128xf32>
    %cst_95 = arith.constant 0.000000e+00 : f32
    %415 = vector.broadcast %cst_95 : f32 to vector<8x128xf32>
    %416 = arith.maximumf %414, %415 : vector<8x128xf32>
    %c0_96 = arith.constant 0 : index
    %c0_97 = arith.constant 0 : index
    %417 = vector.load %arg8[%c0_96, %c0_97] : memref<8x1xf32, #tpu.memory_space<vmem>>, vector<8x1xf32>
    %418 = vector.broadcast %417 : vector<8x1xf32> to vector<8x128xf32>
    %419 = arith.mulf %416, %418 : vector<8x128xf32>
    %cst_98 = arith.constant dense<0.000000e+00> : vector<128xf32>
    %420 = vector.multi_reduction <add>, %419, %cst_98 [0] : vector<8x128xf32> to vector<128xf32>
    %421 = vector.shape_cast %420 : vector<128xf32> to vector<1x128xf32>
    %c0_99 = arith.constant 0 : index
    %c0_100 = arith.constant 0 : index
    %422 = vector.load %arg3[%c0_99, %c0_100] : memref<1x128xf32, #tpu.memory_space<vmem>>, vector<1x128xf32>
    %423 = arith.mulf %421, %422 : vector<1x128xf32>
    %cst_101 = arith.constant 0.000000e+00 : f32
    %424 = vector.broadcast %cst_101 : f32 to vector<1x128xf32>
    %c120_i32_102 = arith.constant 120 : i32
    %425 = tpu.dynamic_rotate %423 by %c120_i32_102 dim 1 : vector<1x128xf32>, i32 -> vector<1x128xf32>
    %426 = arith.addf %423, %425 : vector<1x128xf32>
    %c112_i32 = arith.constant 112 : i32
    %427 = tpu.dynamic_rotate %426 by %c112_i32 dim 1 : vector<1x128xf32>, i32 -> vector<1x128xf32>
    %428 = arith.addf %426, %427 : vector<1x128xf32>
    %c96_i32 = arith.constant 96 : i32
    %429 = tpu.dynamic_rotate %428 by %c96_i32 dim 1 : vector<1x128xf32>, i32 -> vector<1x128xf32>
    %430 = arith.addf %428, %429 : vector<1x128xf32>
    %c64_i32 = arith.constant 64 : i32
    %431 = tpu.dynamic_rotate %430 by %c64_i32 dim 1 : vector<1x128xf32>, i32 -> vector<1x128xf32>
    %432 = arith.addf %430, %431 : vector<1x128xf32>
    %433 = arith.addf %424, %432 : vector<1x128xf32>
    %434 = vector.extract_strided_slice %433 {offsets = [0, 0], sizes = [1, 8], strides = [1, 1]} : vector<1x128xf32> to vector<1x8xf32>
    %c0_103 = arith.constant 0 : index
    %c0_104 = arith.constant 0 : index
    %435 = memref.load %arg9[%c0_103, %c0_104] : memref<1x1xf32, #tpu.memory_space<smem>>
    %436 = vector.broadcast %435 : f32 to vector<1x8xf32>
    %437 = arith.addf %434, %436 : vector<1x8xf32>
    %c0_105 = arith.constant 0 : index
    %c0_106 = arith.constant 0 : index
    %438 = vector.load %arg10[%c0_105, %c0_106] : memref<1x8xf32, #tpu.memory_space<vmem>>, vector<1x8xf32>
    tpu.vector_store %arg10[%c0_105, %c0_106], %437 {strides = array<i32>} : memref<1x8xf32, #tpu.memory_space<vmem>>, vector<1x8xf32>,
    return
  }
  func.func @transform_0(%arg0: i32) -> (i32, i32) {
    %c0_i32 = arith.constant 0 : i32
    %c0_i32_0 = arith.constant 0 : i32
    return %c0_i32, %arg0 : i32, i32
  }
  func.func @transform_1(%arg0: i32) -> (i32, i32) {
    %c0_i32 = arith.constant 0 : i32
    %c0_i32_0 = arith.constant 0 : i32
    %c0_i32_1 = arith.constant 0 : i32
    return %c0_i32, %c0_i32_0 : i32, i32
  }
  func.func @transform_2(%arg0: i32) -> (i32, i32) {
    %c0_i32 = arith.constant 0 : i32
    %c0_i32_0 = arith.constant 0 : i32
    %c0_i32_1 = arith.constant 0 : i32
    return %c0_i32, %c0_i32_0 : i32, i32
  }
  func.func @transform_3(%arg0: i32) -> (i32, i32) {
    %c0_i32 = arith.constant 0 : i32
    %c0_i32_0 = arith.constant 0 : i32
    %c0_i32_1 = arith.constant 0 : i32
    return %c0_i32, %c0_i32_0 : i32, i32
  }
  func.func @transform_4(%arg0: i32) -> (i32, i32) {
    %c0_i32 = arith.constant 0 : i32
    %c0_i32_0 = arith.constant 0 : i32
    %c0_i32_1 = arith.constant 0 : i32
    return %c0_i32, %c0_i32_0 : i32, i32
  }
  func.func @transform_5(%arg0: i32) -> (i32, i32, i32) {
    %c0_i32 = arith.constant 0 : i32
    %c0_i32_0 = arith.constant 0 : i32
    %c0_i32_1 = arith.constant 0 : i32
    %c0_i32_2 = arith.constant 0 : i32
    return %c0_i32, %c0_i32_0, %c0_i32_1 : i32, i32, i32
  }
  func.func @transform_6(%arg0: i32) -> (i32, i32, i32) {
    %c0_i32 = arith.constant 0 : i32
    %c0_i32_0 = arith.constant 0 : i32
    %c0_i32_1 = arith.constant 0 : i32
    %c0_i32_2 = arith.constant 0 : i32
    return %c0_i32, %c0_i32_0, %c0_i32_1 : i32, i32, i32
  }
  func.func @transform_7(%arg0: i32) -> (i32, i32) {
    %c0_i32 = arith.constant 0 : i32
    %c0_i32_0 = arith.constant 0 : i32
    %c0_i32_1 = arith.constant 0 : i32
    return %c0_i32, %c0_i32_0 : i32, i32
  }
  func.func @transform_8(%arg0: i32) -> (i32, i32) {
    %c0_i32 = arith.constant 0 : i32
    %c0_i32_0 = arith.constant 0 : i32
    %c0_i32_1 = arith.constant 0 : i32
    return %c0_i32, %c0_i32_0 : i32, i32
  }
  func.func @transform_9(%arg0: i32) -> (i32, i32) {
    %c0_i32 = arith.constant 0 : i32
    %c0_i32_0 = arith.constant 0 : i32
    return %c0_i32, %arg0 : i32, i32
  }
}

</mosaic_0001>

<bundles_post_ra>
// kernel: tpu_custom_call.1
= control target key start
LH: loop header
LB: loop body
LE: loop exit
PB: predicated region body
PF: predicated region fallthrough
CT: control target
= control target key end

     0   :  { %v797_v2 = vmov 1   ;;  %s798_s13 = smov 8   ;;  %v799_v3 = vmov 0   ;;  %s1217_s0 = inlined_call_operand.vmem [shape: f32[1,128], index: 0, kind: input, shape index: {}]   ;;  %s1218_s1 = inlined_call_operand.vmem [shape: s32[1,128], index: 1, kind: input, shape index: {}]   ;;  %s1219_s2 = inlined_call_operand.vmem [shape: f32[1,128], index: 2, kind: input, shape index: {}]   ;;  %s1220_s3 = inlined_call_operand.vmem [shape: f32[8,3], index: 3, kind: input, shape index: {}]   ;;  %s1221_s4 = inlined_call_operand.vmem [shape: f32[8,1], index: 4, kind: input, shape index: {}]   ;;  %s1222_s5 = inlined_call_operand.vmem [shape: f32[2,8,24], index: 5, kind: input, shape index: {}]   ;;  %s1223_s6 = inlined_call_operand.vmem [shape: f32[2,8,1], index: 6, kind: input, shape index: {}]   ;;  %s1224_s7 = inlined_call_operand.vmem [shape: f32[8,1], index: 7, kind: input, shape index: {}]   ;;  %s1225_s8 = inlined_call_operand.<no memory space> [shape: f32[1,1], index: 8, kind: input, shape index: {}]   ;;  %s1226_s9 = inlined_call_operand.hbm [shape: f32[1,8], index: 9, kind: output, shape index: {}]  }
   0x1   :  { %v43_v0 = vld [vmem:[%s1217_s0] sm:$0x1]  ;;  %717 = vset.pattern.permute.xlu1 %v797_v2  ;;  %716 = vset.pattern.permute.xlu0 %v799_v3 }
   0x2   :  { %v44_v1 = vld [vmem:[%s1220_s3] sm:$0xff]  ;;  %45 = vrot.lane.b32.xlu0 %v43_v0, %s798_s13 }
   0x3   :  { %59 = vperm.xlu1 %717, %v44_v1  }
   0x4   :  { %15 = vsyncpa [#allocation4], 0  ;;  %v800_v4 = vmov 2   ;;  %s801_s14 = smov 120   ;;  %v79_v5 = vld [vmem:[%s1221_s4] sm:$0xff]  ;;  %v802_v6 = vmov 10  }
   0x5   :  { %718 = vset.pattern.permute.xlu2 %v800_v4  ;;  %v896_v7 = vld [vmem:[%s1222_s5] sm:$0xff]  ;;  %v803_v8 = vmov 8   ;;  %v804_v9 = vmov 3   ;;  %v805_v10 = vmov 9   ;;  %v806_v11 = vmov 11   ;;  %s823_s26 = smov 112  }
   0x6   :  { %71 = vperm.xlu2 %718, %v44_v1   ;;  %v807_v12 = vmov 4   ;;  %v808_v13 = vmov 12   ;;  %v809_v14 = vmov 16   ;;  %v810_v15 = vmov 18   ;;  %v34_v24 = vld [vmem:[%s1218_s1] sm:$0x1] }
   0x7   :  { %v811_v16 = vmov 5   ;;  %v812_v17 = vmov 19   ;;  %v813_v18 = vmov 13   ;;  %v814_v19 = vmov 6   ;;  %v770_v33 = vld [vmem:[%s1217_s0] ss:$0 sm:$0xff] }
   0x8   :  { %v815_v20 = vmov 17   ;;  %v816_v21 = vmov 20   ;;  %v817_v22 = vmov 14   ;;  %v818_v23 = vmov 21   ;;  %s824_s27 = smov 96   ;;  %s825_s28 = smov 64  }
   0x9   :  { %v35_v25 = vadd.s32 4294967295, %v34_v24  ;;  %v39_v27 = vadd.s32 1, %v34_v24  ;;  %v819_v52 = vmov 22   ;;  %v820_v53 = vmov 7  }
   0xa   :  { %50 = vperm.xlu0 %716, %v44_v1   ;;  %v352_v1 = vld [vmem:[%s1223_s6] sm:$0xff]  ;;  %vm666_vm6 = vcmask 57344  }
   0xb   :  { %67 = vrot.lane.b32.xlu1 %v43_v0, %s801_s14  ;;  %vm36_vm0 = vcmp.ge.s32.totalorder %v35_v25, 0  ;;  %vm37_vm1 = vcmp.lt.s32.totalorder %v35_v25, 16  ;;  %vm40_vm3 = vcmp.ge.s32.totalorder %v39_v27, 0  ;;  %vm41_vm4 = vcmp.lt.s32.totalorder %v39_v27, 16 }
   0xc   :  { %726 = vset.pattern.permute.xlu1 %v802_v6  ;;  %vm939_vm2 = vmand %vm36_vm0, %vm37_vm1  ;;  %v821_v25 = vmov 23   ;;  %v822_v27 = vmov 15  }
   0xd   :  { %vm948_vm5 = vmand %vm40_vm3, %vm41_vm4 }
   0xe   :  { %719 = vset.pattern.permute.xlu2 %v799_v3 }
   0xf   :  { %82 = vperm.xlu2 %719, %v79_v5  }
  0x12   :  { %720 = vset.pattern.permute.xlu0 %v803_v8 }
  0x13   :  { %169 = vperm.xlu1 %726, %v896_v7   ;;  %102 = vperm.xlu0 %720, %v896_v7  }
  0x17   :  { %93 = vperm.xlu2 %719, %v896_v7  }
  0x1b   :  { %728 = vset.pattern.permute.xlu1 %v804_v9  ;;  %723 = vset.pattern.permute.xlu0 %v805_v10 }
  0x1c   :  { %193 = vperm.xlu1 %728, %v896_v7   ;;  %136 = vperm.xlu0 %723, %v896_v7  }
  0x1f   :  { %721 = vset.pattern.permute.xlu2 %v809_v14 }
  0x20   :  { %112 = vperm.xlu2 %721, %v896_v7  }
  0x24   :  { %729 = vset.pattern.permute.xlu1 %v806_v11  ;;  %727 = vset.pattern.permute.xlu0 %v810_v15 }
  0x25   :  { %202 = vperm.xlu1 %729, %v896_v7   ;;  %179 = vperm.xlu0 %727, %v896_v7  }
  0x28   :  { %722 = vset.pattern.permute.xlu2 %v797_v2 }
  0x29   :  { %127 = vperm.xlu2 %722, %v896_v7  }
  0x2d   :  { %731 = vset.pattern.permute.xlu1 %v807_v12  ;;  %730 = vset.pattern.permute.xlu0 %v812_v17 }
  0x2e   :  { %226 = vperm.xlu1 %731, %v896_v7   ;;  %212 = vperm.xlu0 %730, %v896_v7  }
  0x31   :  { %724 = vset.pattern.permute.xlu2 %v815_v20 }
  0x32   :  { %146 = vperm.xlu2 %724, %v896_v7  }
  0x36   :  { %732 = vset.pattern.permute.xlu1 %v808_v13  ;;  %733 = vset.pattern.permute.xlu0 %v816_v21 }
  0x37   :  { %235 = vperm.xlu1 %732, %v896_v7   ;;  %245 = vperm.xlu0 %733, %v896_v7  }
  0x3a   :  { %725 = vset.pattern.permute.xlu2 %v800_v4 }
  0x3b   :  { %160 = vperm.xlu2 %725, %v896_v7  }
  0x3f   :  { %734 = vset.pattern.permute.xlu1 %v811_v16  ;;  %736 = vset.pattern.permute.xlu0 %v818_v23 }
  0x40   :  { %259 = vperm.xlu1 %734, %v896_v7   ;;  %278 = vperm.xlu0 %736, %v896_v7  }
  0x43   :  { %742 = vset.pattern.permute.xlu2 %v821_v25 }
  0x48   :  { %735 = vset.pattern.permute.xlu1 %v813_v18  ;;  %739 = vset.pattern.permute.xlu0 %v819_v52 }
  0x49   :  { %268 = vperm.xlu1 %735, %v896_v7  }
  0x51   :  { %737 = vset.pattern.permute.xlu1 %v814_v19 }
  0x52   :  { %292 = vperm.xlu1 %737, %v896_v7  }
  0x5a   :  { %738 = vset.pattern.permute.xlu1 %v817_v22 }
  0x5b   :  { %301 = vperm.xlu1 %738, %v896_v7  }
  0x60   :  { %v72_v31 = vpop.permute.xlu2 %71 }
  0x63   :  { %740 = vset.pattern.permute.xlu1 %v820_v53 }
  0x69   :  { %v83_v44 = vpop.permute.xlu2 %82 }
  0x71   :  { %v998_v24 = vpop.permute.xlu2 %93 }
  0x74   :  { %v46_v26 = vpop.permute.xlu0 %45 }
  0x75   :  { %v60_v29 = vpop.permute.xlu1 %59  ;;  %v47_v30 = vsel %vm939_vm2, %v46_v26, 0.0  ;;  %v1003_v26 = vld [vmem:[%s1222_s5 + $0x8] sm:$0xff] }
  0x76   :  { %v54_v32 = vperm.slane %v47_v30, 0  ;;  %v65_v39 = vmul.f32 %v770_v33, %v60_v29 }
  0x7a   :  { %v113_v33 = vpop.permute.xlu2 %112 }
  0x7c   :  { %v51_v35 = vpop.permute.xlu0 %50 }
  0x7d   :  { %v56_v36 = vmul.f32 %v54_v32, %v51_v35  ;;  %v68_v37 = vpop.permute.xlu1 %67 }
  0x7e   :  { %v69_v38 = vsel %vm948_vm5, %v68_v37, 0.0 }
  0x7f   :  { %v75_v40 = vperm.slane %v69_v38, 0  ;;  %v66_v41 = vadd.f32 %v65_v39, %v56_v36 }
  0x81   :  { %v77_v42 = vmul.f32 %v75_v40, %v72_v31 }
  0x83   :  { %v78_v43 = vadd.f32 %v77_v42, %v66_v41  ;;  %v128_v35 = vpop.permute.xlu2 %127 }
  0x85   :  { %v85_v45 = vadd.f32 %v83_v44, %v78_v43  ;;  %v170_v46 = vpop.permute.xlu1 %169 }
  0x87   :  { %v954_v47 = vmax.f32 %v85_v45, 0.0 }
  0x89   :  { %v172_v48 = vperm.slane %v954_v47, 2  ;;  %88 = vrot.lane.b32.xlu1 %v954_v47, %s798_s13  ;;  %v187_v49 = vrot.slane %v954_v47, 3  ;;  %v154_v50 = vrot.slane %v954_v47, 2  ;;  %v205_v55 = vperm.slane %v954_v47, 3 }
  0x8a   :  { %v121_v57 = vrot.slane %v954_v47, 1  ;;  %v220_v59 = vrot.slane %v954_v47, 4  ;;  %v238_v61 = vperm.slane %v954_v47, 4  ;;  %v253_v63 = vrot.slane %v954_v47, 5 }
  0x8b   :  { %v961_v51 = vmul.f32 %v172_v48, %v170_v46  ;;  %189 = vrot.lane.b32.xlu2 %v187_v49, %s798_s13  ;;  %175 = vrot.lane.b32.xlu0 %v154_v50, %s801_s14  ;;  %v286_v29 = vrot.slane %v954_v47, 6  ;;  %v271_v30 = vperm.slane %v954_v47, 5  ;;  %v319_v36 = vrot.slane %v954_v47, 7 }
  0x8c   :  { %v147_v39 = vpop.permute.xlu2 %146  ;;  %v105_v43 = vperm.slane %v954_v47, 0 }
  0x8e   :  { %v967_v54 = vpop.permute.xlu1 %193 }
  0x91   :  { %108 = vrot.lane.b32.xlu1 %v954_v47, %s801_s14 }
  0x93   :  { %208 = vrot.lane.b32.xlu2 %v187_v49, %s801_s14  ;;  %311 = vperm.xlu0 %739, %v896_v7  }
  0x97   :  { %v203_v56 = vpop.permute.xlu1 %202 }
  0x98   :  { %v975_v58 = vmul.f32 %v205_v55, %v203_v56 }
  0x99   :  { %123 = vrot.lane.b32.xlu1 %v121_v57, %s798_s13 }
  0x9b   :  { %222 = vrot.lane.b32.xlu2 %v220_v59, %s798_s13  ;;  %743 = vset.pattern.permute.xlu0 %v799_v3 }
  0x9c   :  { %355 = vperm.xlu0 %743, %v352_v1  }
  0xa0   :  { %v981_v60 = vpop.permute.xlu1 %226 }
  0xa1   :  { %142 = vrot.lane.b32.xlu1 %v121_v57, %s801_s14 }
  0xa3   :  { %241 = vrot.lane.b32.xlu2 %v220_v59, %s801_s14 }
  0xa4   :  { %749 = vset.pattern.permute.xlu0 %v815_v20 }
  0xa5   :  { %420 = vperm.xlu0 %749, %v1003_v26  }
  0xa9   :  { %v236_v62 = vpop.permute.xlu1 %235  ;;  %156 = vrot.lane.b32.xlu1 %v154_v50, %s798_s13 }
  0xaa   :  { %v988_v0 = vmul.f32 %v238_v61, %v236_v62  ;;  %v139_v62 = vperm.slane %v954_v47, 1 }
  0xab   :  { %255 = vrot.lane.b32.xlu2 %v253_v63, %s798_s13 }
  0xad   :  { %752 = vset.pattern.permute.xlu0 %v810_v15  ;;  %v304_v15 = vperm.slane %v954_v47, 6 }
  0xae   :  { %453 = vperm.xlu0 %752, %v1003_v26  }
  0xb1   :  { %325 = vperm.xlu1 %740, %v896_v7  }
  0xb2   :  { %v995_v5 = vpop.permute.xlu1 %259 }
  0xb3   :  { %274 = vrot.lane.b32.xlu2 %v253_v63, %s801_s14 }
  0xb6   :  { %755 = vset.pattern.permute.xlu0 %v812_v17  ;;  %v1035_v17 = vpop.permute.xlu2 %160 }
  0xb7   :  { %486 = vperm.xlu0 %755, %v1003_v26  }
  0xb9   :  { %741 = vset.pattern.permute.xlu1 %v822_v27 }
  0xba   :  { %334 = vperm.xlu1 %741, %v896_v7  }
  0xbb   :  { %v269_v31 = vpop.permute.xlu1 %268  ;;  %288 = vrot.lane.b32.xlu2 %v286_v29, %s798_s13 }
  0xbc   :  { %v1012_v32 = vmul.f32 %v271_v30, %v269_v31 }
  0xbf   :  { %758 = vset.pattern.permute.xlu0 %v816_v21 }
  0xc2   :  { %744 = vset.pattern.permute.xlu1 %v799_v3 }
  0xc3   :  { %307 = vrot.lane.b32.xlu2 %v286_v29, %s801_s14  ;;  %367 = vperm.xlu1 %744, %v1003_v26  }
  0xc4   :  { %v1019_v20 = vpop.permute.xlu1 %292 }
  0xcb   :  { %321 = vrot.lane.b32.xlu2 %v319_v36, %s798_s13  ;;  %746 = vset.pattern.permute.xlu1 %v809_v14  ;;  %v103_v14 = vpop.permute.xlu0 %102 }
  0xcc   :  { %386 = vperm.xlu1 %746, %v1003_v26   ;;  %v106_v45 = vmul.f32 %v105_v43, %v103_v14 }
  0xcd   :  { %v302_v37 = vpop.permute.xlu1 %301 }
  0xce   :  { %v1028_v38 = vmul.f32 %v304_v15, %v302_v37 }
  0xd3   :  { %340 = vrot.lane.b32.xlu2 %v319_v36, %s801_s14 }
  0xd4   :  { %748 = vset.pattern.permute.xlu1 %v805_v10  ;;  %v137_v10 = vpop.permute.xlu0 %136 }
  0xd5   :  { %410 = vperm.xlu1 %748, %v1003_v26  }
  0xdb   :  { %344 = vperm.xlu2 %742, %v896_v7  }
  0xdd   :  { %750 = vset.pattern.permute.xlu1 %v800_v4  ;;  %v180_v4 = vpop.permute.xlu0 %179 }
  0xde   :  { %434 = vperm.xlu1 %750, %v1003_v26  }
  0xe3   :  { %745 = vset.pattern.permute.xlu2 %v803_v8 }
  0xe4   :  { %376 = vperm.xlu2 %745, %v1003_v26  }
  0xe5   :  { %v190_v21 = vpop.permute.xlu2 %189 }
  0xe6   :  { %751 = vset.pattern.permute.xlu1 %v802_v6  ;;  %v213_v6 = vpop.permute.xlu0 %212 }
  0xe7   :  { %443 = vperm.xlu1 %751, %v1003_v26  }
  0xec   :  { %747 = vset.pattern.permute.xlu2 %v797_v2 }
  0xed   :  { %v1044_v7 = vpop.permute.xlu2 %208  ;;  %401 = vperm.xlu2 %747, %v1003_v26  }
  0xee   :  { %v246_v46 = vpop.permute.xlu0 %245 }
  0xef   :  { %753 = vset.pattern.permute.xlu1 %v804_v9 }
  0xf0   :  { %467 = vperm.xlu1 %753, %v1003_v26  }
  0xf5   :  { %v223_v8 = vpop.permute.xlu2 %222  ;;  %767 = vset.pattern.permute.xlu2 %v821_v25 }
  0xf6   :  { %v279_v63 = vpop.permute.xlu0 %278 }
  0xf8   :  { %754 = vset.pattern.permute.xlu1 %v806_v11 }
  0xf9   :  { %476 = vperm.xlu1 %754, %v1003_v26  }
  0xfb   :  { %v89_v40 = vpop.permute.xlu1 %88 }
  0xfc   :  { %v90_v2 = vsel %vm939_vm2, %v89_v40, 0.0  ;;  %v191_v40 = vsel %vm939_vm2, %v190_v21, 0.0 }
  0xfd   :  { %v242_v41 = vpop.permute.xlu2 %241  ;;  %v97_v42 = vperm.slane %v90_v2, 0 }
  0xfe   :  { %v176_v36 = vpop.permute.xlu0 %175 }
  0xff   :  { %v99_v9 = vmul.f32 %v97_v42, %v998_v24  ;;  %v140_v24 = vmul.f32 %v139_v62, %v137_v10  ;;  %v177_v14 = vsel %vm948_vm5, %v176_v36, 0.0 }
 0x100   :  { %v183_v2 = vperm.slane %v177_v14, 0 }
 0x101   :  { %756 = vset.pattern.permute.xlu1 %v807_v12  ;;  %v107_v50 = vadd.f32 %v106_v45, %v99_v9  ;;  %v197_v9 = vperm.slane %v191_v40, 0 }
 0x102   :  { %500 = vperm.xlu1 %756, %v1003_v26  }
 0x103   :  { %v109_v44 = vpop.permute.xlu1 %108  ;;  %v199_v21 = vmul.f32 %v197_v9, %v967_v54 }
 0x104   :  { %v110_v11 = vsel %vm948_vm5, %v109_v44, 0.0 }
 0x105   :  { %v116_v48 = vperm.slane %v110_v11, 0  ;;  %v256_v49 = vpop.permute.xlu2 %255  ;;  %v185_v11 = vmul.f32 %v183_v2, %v180_v4 }
 0x107   :  { %v118_v55 = vmul.f32 %v116_v48, %v113_v33 }
 0x109   :  { %v119_v56 = vadd.f32 %v118_v55, %v107_v50  ;;  %v224_v50 = vsel %vm939_vm2, %v223_v8, 0.0 }
 0x10a   :  { %757 = vset.pattern.permute.xlu1 %v808_v13 }
 0x10b   :  { %509 = vperm.xlu1 %757, %v1003_v26   ;;  %v124_v12 = vpop.permute.xlu1 %123 }
 0x10c   :  { %v125_v57 = vsel %vm939_vm2, %v124_v12, 0.0  ;;  %v230_v12 = vperm.slane %v224_v50, 0 }
 0x10d   :  { %v131_v59 = vperm.slane %v125_v57, 0  ;;  %v275_v61 = vpop.permute.xlu2 %274  ;;  %v243_v57 = vsel %vm948_vm5, %v242_v41, 0.0 }
 0x10e   :  { %v232_v4 = vmul.f32 %v230_v12, %v981_v60 }
 0x10f   :  { %v133_v1 = vmul.f32 %v131_v59, %v128_v35 }
 0x111   :  { %v134_v25 = vadd.f32 %v133_v1, %v119_v56  ;;  %v249_v1 = vperm.slane %v243_v57, 0 }
 0x113   :  { %v143_v29 = vpop.permute.xlu1 %142  ;;  %v141_v30 = vadd.f32 %v140_v24, %v134_v25  ;;  %759 = vset.pattern.permute.xlu1 %v811_v16 }
 0x114   :  { %v144_v13 = vsel %vm948_vm5, %v143_v29, 0.0  ;;  %v276_v29 = vsel %vm948_vm5, %v275_v61, 0.0 }
 0x115   :  { %v289_v31 = vpop.permute.xlu2 %288  ;;  %v150_v33 = vperm.slane %v144_v13, 0 }
 0x117   :  { %v152_v15 = vmul.f32 %v150_v33, %v147_v39  ;;  %v210_v39 = vsel %vm948_vm5, %v1044_v7, 0.0  ;;  %v257_v7 = vsel %vm939_vm2, %v256_v49, 0.0  ;;  %v282_v49 = vperm.slane %v276_v29, 0 }
 0x118   :  { %v216_v55 = vperm.slane %v210_v39, 0  ;;  %v263_v24 = vperm.slane %v257_v7, 0 }
 0x119   :  { %v153_v16 = vadd.f32 %v152_v15, %v141_v30  ;;  %v251_v30 = vmul.f32 %v249_v1, %v246_v46 }
 0x11a   :  { %v218_v59 = vmul.f32 %v216_v55, %v213_v6  ;;  %v265_v6 = vmul.f32 %v263_v24, %v995_v5 }
 0x11b   :  { %v157_v37 = vpop.permute.xlu1 %156 }
 0x11c   :  { %v158_v35 = vsel %vm939_vm2, %v157_v37, 0.0  ;;  %v284_v37 = vmul.f32 %v282_v49, %v279_v63 }
 0x11d   :  { %v164_v10 = vperm.slane %v158_v35, 0  ;;  %v308_v43 = vpop.permute.xlu2 %307  ;;  %v312_v35 = vpop.permute.xlu0 %311 }
 0x11e   :  { %v309_v36 = vsel %vm948_vm5, %v308_v43, 0.0  ;;  %v337_v43 = vperm.slane %v954_v47, 7 }
 0x11f   :  { %v166_v42 = vmul.f32 %v164_v10, %v1035_v17 }
 0x121   :  { %v167_v44 = vadd.f32 %v166_v42, %v153_v16 }
 0x123   :  { %v174_v45 = vadd.f32 %v961_v51, %v167_v44  ;;  %v326_v48 = vpop.permute.xlu1 %325 }
 0x125   :  { %v186_v56 = vadd.f32 %v185_v11, %v174_v45  ;;  %v322_v51 = vpop.permute.xlu2 %321 }
 0x127   :  { %v200_v17 = vadd.f32 %v199_v21, %v186_v56  ;;  %v356_v21 = vpop.permute.xlu0 %355 }
 0x129   :  { %v207_v62 = vadd.f32 %v975_v58, %v200_v17  ;;  %v290_v58 = vsel %vm939_vm2, %v289_v31, 0.0  ;;  %v315_v31 = vperm.slane %v309_v36, 0 }
 0x12a   :  { %v296_v33 = vperm.slane %v290_v58, 0 }
 0x12b   :  { %v219_v8 = vadd.f32 %v218_v59, %v207_v62  ;;  %v317_v16 = vmul.f32 %v315_v31, %v312_v35 }
 0x12c   :  { %v335_v25 = vpop.permute.xlu1 %334  ;;  %v298_v46 = vmul.f32 %v296_v33, %v1019_v20 }
 0x12d   :  { %v233_v54 = vadd.f32 %v232_v4, %v219_v8  ;;  %v341_v15 = vpop.permute.xlu2 %340  ;;  %v338_v20 = vmul.f32 %v337_v43, %v335_v25 }
 0x12e   :  { %v342_v63 = vsel %vm948_vm5, %v341_v15, 0.0 }
 0x12f   :  { %v240_v41 = vadd.f32 %v988_v0, %v233_v54  ;;  %v323_v0 = vsel %vm939_vm2, %v322_v51, 0.0  ;;  %v348_v11 = vperm.slane %v342_v63, 0  ;;  %v421_v24 = vpop.permute.xlu0 %420 }
 0x130   :  { %v329_v40 = vperm.slane %v323_v0, 0 }
 0x131   :  { %v252_v13 = vadd.f32 %v251_v30, %v240_v41 }
 0x133   :  { %v266_v60 = vadd.f32 %v265_v6, %v252_v13 }
 0x135   :  { %v273_v14 = vadd.f32 %v1012_v32, %v266_v60  ;;  %v1096_v61 = vpop.permute.xlu1 %367  ;;  %v331_v32 = vmul.f32 %v329_v40, %v326_v48  ;;  %v345_v9 = vpop.permute.xlu2 %344 }
 0x136   :  { %v350_v50 = vmul.f32 %v348_v11, %v345_v9 }
 0x137   :  { %v285_v5 = vadd.f32 %v284_v37, %v273_v14  ;;  %v454_v29 = vpop.permute.xlu0 %453 }
 0x139   :  { %v299_v10 = vadd.f32 %v298_v46, %v285_v5 }
 0x13b   :  { %v306_v2 = vadd.f32 %v1028_v38, %v299_v10 }
 0x13d   :  { %v318_v42 = vadd.f32 %v317_v16, %v306_v2 }
 0x13e   :  { %v1105_v44 = vpop.permute.xlu1 %386  ;;  %v377_v17 = vpop.permute.xlu2 %376 }
 0x13f   :  { %v332_v39 = vadd.f32 %v331_v32, %v318_v42  ;;  %v487_v6 = vpop.permute.xlu0 %486 }
 0x141   :  { %v339_v45 = vadd.f32 %v338_v20, %v332_v39 }
 0x143   :  { %v351_v55 = vadd.f32 %v350_v50, %v339_v45 }
 0x145   :  { %v358_v56 = vadd.f32 %v356_v21, %v351_v55 }
 0x147   :  { %v1107_v38 = vmax.f32 %v358_v56, 0.0  ;;  %v411_v12 = vpop.permute.xlu1 %410  ;;  %v402_v1 = vpop.permute.xlu2 %401 }
 0x149   :  { %v413_v57 = vperm.slane %v1107_v38, 1  ;;  %382 = vrot.lane.b32.xlu2 %v1107_v38, %s801_s14  ;;  %362 = vrot.lane.b32.xlu1 %v1107_v38, %s798_s13  ;;  %v379_v47 = vperm.slane %v1107_v38, 0  ;;  %v395_v48 = vrot.slane %v1107_v38, 1  ;;  %v428_v7 = vrot.slane %v1107_v38, 2 }
 0x14a   :  { %v461_v51 = vrot.slane %v1107_v38, 3  ;;  %v560_v4 = vrot.slane %v1107_v38, 6  ;;  %v593_v8 = vrot.slane %v1107_v38, 7  ;;  %v446_v39 = vperm.slane %v1107_v38, 2 }
 0x14b   :  { %v1116_v59 = vmul.f32 %v413_v57, %v411_v12  ;;  %v1118_v62 = vmul.f32 %v379_v47, %v377_v17  ;;  %397 = vrot.lane.b32.xlu0 %v395_v48, %s798_s13 }
 0x151   :  { %533 = vperm.xlu1 %759, %v1003_v26   ;;  %430 = vrot.lane.b32.xlu2 %v428_v7, %s798_s13 }
 0x153   :  { %416 = vrot.lane.b32.xlu0 %v395_v48, %s801_s14 }
 0x159   :  { %760 = vset.pattern.permute.xlu1 %v813_v18  ;;  %449 = vrot.lane.b32.xlu2 %v428_v7, %s801_s14  ;;  %v494_v18 = vrot.slane %v1107_v38, 4 }
 0x15a   :  { %542 = vperm.xlu1 %760, %v1003_v26  }
 0x15b   :  { %519 = vperm.xlu0 %758, %v1003_v26  }
 0x161   :  { %463 = vrot.lane.b32.xlu2 %v461_v51, %s798_s13 }
 0x162   :  { %762 = vset.pattern.permute.xlu1 %v814_v19  ;;  %v685_v19 = vld [vmem:[%s1223_s6 + $0x8] sm:$0xff] }
 0x163   :  { %566 = vperm.xlu1 %762, %v1003_v26   ;;  %761 = vset.pattern.permute.xlu0 %v818_v23  ;;  %v435_v23 = vpop.permute.xlu1 %434 }
 0x164   :  { %552 = vperm.xlu0 %761, %v1003_v26  }
 0x169   :  { %482 = vrot.lane.b32.xlu2 %v461_v51, %s801_s14 }
 0x16b   :  { %763 = vset.pattern.permute.xlu1 %v817_v22  ;;  %v527_v22 = vrot.slane %v1107_v38, 5 }
 0x16c   :  { %575 = vperm.xlu1 %763, %v1003_v26   ;;  %764 = vset.pattern.permute.xlu0 %v819_v52  ;;  %v635_v52 = vld [vmem:[%s1224_s7] sm:$0xff] }
 0x16d   :  { %585 = vperm.xlu0 %764, %v1003_v26  }
 0x171   :  { %496 = vrot.lane.b32.xlu2 %v494_v18, %s798_s13 }
 0x174   :  { %765 = vset.pattern.permute.xlu1 %v820_v53  ;;  %v444_v53 = vpop.permute.xlu1 %443 }
 0x175   :  { %599 = vperm.xlu1 %765, %v1003_v26   ;;  %768 = vset.pattern.permute.xlu0 %v799_v3  ;;  %v447_v21 = vmul.f32 %v446_v39, %v444_v53 }
 0x176   :  { %630 = vperm.xlu0 %768, %v685_v19  }
 0x179   :  { %515 = vrot.lane.b32.xlu2 %v494_v18, %s801_s14 }
 0x17d   :  { %766 = vset.pattern.permute.xlu1 %v822_v27  ;;  %v468_v27 = vpop.permute.xlu1 %467 }
 0x17e   :  { %608 = vperm.xlu1 %766, %v1003_v26  }
 0x181   :  { %529 = vrot.lane.b32.xlu2 %v527_v22, %s798_s13 }
 0x185   :  { %v477_v54 = vpop.permute.xlu1 %476 }
 0x186   :  { %769 = vset.pattern.permute.xlu1 %v799_v3 }
 0x187   :  { %638 = vperm.xlu1 %769, %v635_v52  }
 0x189   :  { %548 = vrot.lane.b32.xlu2 %v527_v22, %s801_s14 }
 0x18d   :  { %v501_v3 = vpop.permute.xlu1 %500 }
 0x191   :  { %562 = vrot.lane.b32.xlu2 %v560_v4, %s798_s13 }
 0x195   :  { %v510_v41 = vpop.permute.xlu1 %509 }
 0x199   :  { %581 = vrot.lane.b32.xlu2 %v560_v4, %s801_s14 }
 0x1a1   :  { %595 = vrot.lane.b32.xlu2 %v593_v8, %s798_s13  ;;  %s675_s13 = sshll.u32 %s1226_s9, 4  ;;  %s676_s13 = int_to_ptr.hbm [resolvable:$true] %s675_s13 }
 0x1a3   :  { %v383_v25 = vpop.permute.xlu2 %382 }
 0x1a4   :  { %v384_v49 = vsel %vm948_vm5, %v383_v25, 0.0 }
 0x1a5   :  { %v390_v36 = vperm.slane %v384_v49, 0 }
 0x1a7   :  { %v392_v46 = vmul.f32 %v390_v36, %v1105_v44 }
 0x1a9   :  { %614 = vrot.lane.b32.xlu2 %v593_v8, %s801_s14 }
 0x1ab   :  { %v431_v30 = vpop.permute.xlu2 %430 }
 0x1ac   :  { %v432_v40 = vsel %vm939_vm2, %v431_v30, 0.0 }
 0x1ad   :  { %v438_v42 = vperm.slane %v432_v40, 0 }
 0x1af   :  { %v440_v20 = vmul.f32 %v438_v42, %v435_v23 }
 0x1b1   :  { %618 = vperm.xlu2 %767, %v1003_v26  }
 0x1b3   :  { %v450_v58 = vpop.permute.xlu2 %449 }
 0x1b4   :  { %v451_v43 = vsel %vm948_vm5, %v450_v58, 0.0 }
 0x1b5   :  { %v457_v11 = vperm.slane %v451_v43, 0 }
 0x1b7   :  { %v459_v17 = vmul.f32 %v457_v11, %v454_v29 }
 0x1bb   :  { %v363_v13 = vpop.permute.xlu1 %362  ;;  %v464_v33 = vpop.permute.xlu2 %463 }
 0x1bc   :  { %v364_v60 = vsel %vm939_vm2, %v363_v13, 0.0  ;;  %v465_v44 = vsel %vm939_vm2, %v464_v33, 0.0 }
 0x1bd   :  { %v371_v15 = vperm.slane %v364_v60, 0  ;;  %v398_v37 = vpop.permute.xlu0 %397  ;;  %v471_v55 = vperm.slane %v465_v44, 0  ;;  %v545_v60 = vperm.slane %v1107_v38, 5 }
 0x1be   :  { %v399_v14 = vsel %vm939_vm2, %v398_v37, 0.0 }
 0x1bf   :  { %v373_v0 = vmul.f32 %v371_v15, %v1096_v61  ;;  %v405_v26 = vperm.slane %v399_v14, 0 }
 0x1c1   :  { %v381_v31 = vadd.f32 %v1118_v62, %v373_v0  ;;  %v407_v35 = vmul.f32 %v405_v26, %v402_v1  ;;  %v473_v62 = vmul.f32 %v471_v55, %v468_v27  ;;  %v512_v1 = vperm.slane %v1107_v38, 4 }
 0x1c3   :  { %v393_v5 = vadd.f32 %v392_v46, %v381_v31  ;;  %v483_v10 = vpop.permute.xlu2 %482  ;;  %v534_v47 = vpop.permute.xlu1 %533  ;;  %v513_v25 = vmul.f32 %v512_v1, %v510_v41 }
 0x1c4   :  { %v484_v12 = vsel %vm948_vm5, %v483_v10, 0.0 }
 0x1c5   :  { %v408_v2 = vadd.f32 %v407_v35, %v393_v5  ;;  %v417_v16 = vpop.permute.xlu0 %416  ;;  %v490_v7 = vperm.slane %v484_v12, 0  ;;  %v611_v12 = vperm.slane %v1107_v38, 7 }
 0x1c6   :  { %v418_v63 = vsel %vm948_vm5, %v417_v16, 0.0  ;;  %v578_v16 = vperm.slane %v1107_v38, 6 }
 0x1c7   :  { %v415_v32 = vadd.f32 %v1116_v59, %v408_v2  ;;  %v424_v61 = vperm.slane %v418_v63, 0  ;;  %v479_v59 = vperm.slane %v1107_v38, 3  ;;  %v492_v52 = vmul.f32 %v490_v7, %v487_v6 }
 0x1c9   :  { %v426_v9 = vmul.f32 %v424_v61, %v421_v24  ;;  %v480_v18 = vmul.f32 %v479_v59, %v477_v54 }
 0x1cb   :  { %v427_v45 = vadd.f32 %v426_v9, %v415_v32  ;;  %v497_v50 = vpop.permute.xlu2 %496 }
 0x1cc   :  { %v498_v48 = vsel %vm939_vm2, %v497_v50, 0.0  ;;  %v543_v58 = vpop.permute.xlu1 %542 }
 0x1cd   :  { %v441_v56 = vadd.f32 %v440_v20, %v427_v45  ;;  %v504_v22 = vperm.slane %v498_v48, 0  ;;  %v520_v27 = vpop.permute.xlu0 %519  ;;  %v546_v37 = vmul.f32 %v545_v60, %v543_v58 }
 0x1cf   :  { %v448_v57 = vadd.f32 %v447_v21, %v441_v56  ;;  %v506_v24 = vmul.f32 %v504_v22, %v501_v3 }
 0x1d1   :  { %v460_v51 = vadd.f32 %v459_v17, %v448_v57 }
 0x1d3   :  { %v474_v19 = vadd.f32 %v473_v62, %v460_v51  ;;  %v516_v23 = vpop.permute.xlu2 %515 }
 0x1d4   :  { %v517_v4 = vsel %vm948_vm5, %v516_v23, 0.0 }
 0x1d5   :  { %v481_v53 = vadd.f32 %v480_v18, %v474_v19  ;;  %v523_v30 = vperm.slane %v517_v4, 0  ;;  %v567_v0 = vpop.permute.xlu1 %566 }
 0x1d6   :  { %v553_v31 = vpop.permute.xlu0 %552 }
 0x1d7   :  { %v493_v8 = vadd.f32 %v492_v52, %v481_v53  ;;  %v525_v33 = vmul.f32 %v523_v30, %v520_v27 }
 0x1d9   :  { %v507_v29 = vadd.f32 %v506_v24, %v493_v8 }
 0x1db   :  { %v514_v49 = vadd.f32 %v513_v25, %v507_v29  ;;  %v530_v13 = vpop.permute.xlu2 %529  ;;  %v648_v29 = vld [vmem:[%s1219_s2] sm:$0x1]  ;;  %s826_s2 = smov [#allocation3]  }
 0x1dc   :  { %v531_v54 = vsel %vm939_vm2, %v530_v13, 0.0  ;;  %s673_s10 = sshll.u32 %s826_s2, 4  ;;  %s674_s10 = int_to_ptr.vmem [resolvable:$true] %s673_s10 }
 0x1dd   :  { %v537_v6 = vperm.slane %v531_v54, 0  ;;  %v526_v36 = vadd.f32 %v525_v33, %v514_v49 }
 0x1de   :  { %v576_v10 = vpop.permute.xlu1 %575 }
 0x1df   :  { %v539_v15 = vmul.f32 %v537_v6, %v534_v47  ;;  %v579_v32 = vmul.f32 %v578_v16, %v576_v10  ;;  %v586_v11 = vpop.permute.xlu0 %585  ;;  %v664_v6 = vstv %s1225_s8 }
 0x1e1   :  { %v540_v14 = vadd.f32 %v539_v15, %v526_v36 }
 0x1e3   :  { %v549_v3 = vpop.permute.xlu2 %548  ;;  %v547_v41 = vadd.f32 %v546_v37, %v540_v14 }
 0x1e4   :  { %v550_v26 = vsel %vm948_vm5, %v549_v3, 0.0 }
 0x1e5   :  { %v556_v46 = vperm.slane %v550_v26, 0 }
 0x1e7   :  { %v558_v5 = vmul.f32 %v556_v46, %v553_v31  ;;  %v600_v44 = vpop.permute.xlu1 %599 }
 0x1e8   :  { %v631_v22 = vpop.permute.xlu0 %630 }
 0x1e9   :  { %v559_v63 = vadd.f32 %v558_v5, %v547_v41 }
 0x1eb   :  { %v563_v35 = vpop.permute.xlu2 %562 }
 0x1ec   :  { %v564_v40 = vsel %vm939_vm2, %v563_v35, 0.0 }
 0x1ed   :  { %v570_v2 = vperm.slane %v564_v40, 0 }
 0x1ef   :  { %v572_v42 = vmul.f32 %v570_v2, %v567_v0 }
 0x1f0   :  { %v609_v56 = vpop.permute.xlu1 %608 }
 0x1f1   :  { %v573_v61 = vadd.f32 %v572_v42, %v559_v63  ;;  %v612_v47 = vmul.f32 %v611_v12, %v609_v56 }
 0x1f3   :  { %v582_v43 = vpop.permute.xlu2 %581  ;;  %v580_v9 = vadd.f32 %v579_v32, %v573_v61 }
 0x1f4   :  { %v583_v39 = vsel %vm948_vm5, %v582_v43, 0.0 }
 0x1f5   :  { %v589_v20 = vperm.slane %v583_v39, 0 }
 0x1f7   :  { %v591_v45 = vmul.f32 %v589_v20, %v586_v11 }
 0x1f9   :  { %v592_v17 = vadd.f32 %v591_v45, %v580_v9  ;;  %v639_v52 = vpop.permute.xlu1 %638 }
 0x1fb   :  { %v596_v50 = vpop.permute.xlu2 %595 }
 0x1fc   :  { %v597_v21 = vsel %vm939_vm2, %v596_v50, 0.0 }
 0x1fd   :  { %v603_v55 = vperm.slane %v597_v21, 0 }
 0x1ff   :  { %v605_v57 = vmul.f32 %v603_v55, %v600_v44 }
 0x201   :  { %v606_v48 = vadd.f32 %v605_v57, %v592_v17 }
 0x203   :  { %v615_v59 = vpop.permute.xlu2 %614  ;;  %v613_v62 = vadd.f32 %v612_v47, %v606_v48 }
 0x204   :  { %v616_v7 = vsel %vm948_vm5, %v615_v59, 0.0 }
 0x205   :  { %v622_v51 = vperm.slane %v616_v7, 0 }
 0x20b   :  { %v619_v18 = vpop.permute.xlu2 %618 }
 0x20c   :  { %v624_v19 = vmul.f32 %v622_v51, %v619_v18 }
 0x20e   :  { %v625_v23 = vadd.f32 %v624_v19, %v613_v62 }
 0x210   :  { %v633_v28 = vadd.f32 %v631_v22, %v625_v23 }
 0x212   :  { %v634_v53 = vmax.f32 %v633_v28, 0.0 }
 0x214   :  { %v641_v4 = vmul.f32 %v639_v52, %v634_v53 }
 0x216   :  { %v642_v1 = vrot.slane %v641_v4, 4 }
 0x218   :  { %v643_v38 = vadd.f32 %v642_v1, %v641_v4 }
 0x21a   :  { %v644_v8 = vrot.slane %v643_v38, 2 }
 0x21c   :  { %v645_v24 = vadd.f32 %v644_v8, %v643_v38 }
 0x21e   :  { %v646_v25 = vrot.slane %v645_v24, 1 }
 0x220   :  { %v647_v34 = vadd.f32 %v646_v25, %v645_v24 }
 0x222   :  { %v649_v30 = vmul.f32 %v648_v29, %v647_v34 }
 0x224   :  { %650 = vrot.lane.b32.xlu2 %v649_v30, %s801_s14 }
 0x27e   :  { %v651_v58 = vpop.permute.xlu2 %650 }
 0x27f   :  { %v652_v27 = vadd.f32 %v651_v58, %v649_v30 }
 0x281   :  { %653 = vrot.lane.b32.xlu1 %v652_v27, %s823_s26 }
 0x2f3   :  { %v654_v49 = vpop.permute.xlu1 %653 }
 0x2f4   :  { %v655_v13 = vadd.f32 %v654_v49, %v652_v27 }
 0x2f6   :  { %656 = vrot.lane.b32.xlu2 %v655_v13, %s824_s27 }
 0x350   :  { %v657_v54 = vpop.permute.xlu2 %656 }
 0x351   :  { %v658_v33 = vadd.f32 %v657_v54, %v655_v13 }
 0x353   :  { %659 = vrot.lane.b32.xlu0 %v658_v33, %s825_s28 }
 0x3c5   :  { %v660_v60 = vpop.permute.xlu0 %659 }
 0x3c6   :  { %v661_v36 = vadd.f32 %v660_v60, %v658_v33 }
 0x3c8   :  { %v665_v15 = vadd.f32 %v664_v6, %v661_v36 }
 0x3ca   :  { %667 = vst.msk [vmem:[#allocation3] sm:$0x1] %vm666_vm6, %v665_v15 }
 0x3cb   :  { %678 = dma.vmem_to_hbm [thread:$0]  %s674_s10, 16, %s676_s13, [#allocation4]  }
 0x3cc   :  { %795 = dma.done.wait [#allocation4], 16  }
 0x3cd   :  { %796 = vsyncadd [#allocation4], 4294967280 }
 0x3ce   :  { %683 = vsyncpa [#allocation4], 1 }

// kernel: tpu_custom_call.1
= control target key start
LH: loop header
LB: loop body
LE: loop exit
PB: predicated region body
PF: predicated region fallthrough
CT: control target
= control target key end

     0   :  { %v797_v2 = vmov 1   ;;  %s798_s13 = smov 8   ;;  %v799_v3 = vmov 0   ;;  %s1217_s0 = inlined_call_operand.vmem [shape: f32[1,128], index: 0, kind: input, shape index: {}]   ;;  %s1218_s1 = inlined_call_operand.vmem [shape: s32[1,128], index: 1, kind: input, shape index: {}]   ;;  %s1219_s2 = inlined_call_operand.vmem [shape: f32[1,128], index: 2, kind: input, shape index: {}]   ;;  %s1220_s3 = inlined_call_operand.vmem [shape: f32[8,3], index: 3, kind: input, shape index: {}]   ;;  %s1221_s4 = inlined_call_operand.vmem [shape: f32[8,1], index: 4, kind: input, shape index: {}]   ;;  %s1222_s5 = inlined_call_operand.vmem [shape: f32[2,8,24], index: 5, kind: input, shape index: {}]   ;;  %s1223_s6 = inlined_call_operand.vmem [shape: f32[2,8,1], index: 6, kind: input, shape index: {}]   ;;  %s1224_s7 = inlined_call_operand.vmem [shape: f32[8,1], index: 7, kind: input, shape index: {}]   ;;  %s1225_s8 = inlined_call_operand.<no memory space> [shape: f32[1,1], index: 8, kind: input, shape index: {}]   ;;  %s1226_s9 = inlined_call_operand.hbm [shape: f32[1,8], index: 9, kind: output, shape index: {}]  }
   0x1   :  { %v43_v0 = vld [vmem:[%s1217_s0] sm:$0x1]  ;;  %717 = vset.pattern.permute.xlu1 %v797_v2  ;;  %716 = vset.pattern.permute.xlu0 %v799_v3 }
   0x2   :  { %v44_v1 = vld [vmem:[%s1220_s3] sm:$0xff]  ;;  %45 = vrot.lane.b32.xlu0 %v43_v0, %s798_s13 }
   0x3   :  { %59 = vperm.xlu1 %717, %v44_v1  }
   0x4   :  { %15 = vsyncpa [#allocation4], 0  ;;  %v800_v4 = vmov 2   ;;  %s801_s14 = smov 120   ;;  %v79_v5 = vld [vmem:[%s1221_s4] sm:$0xff]  ;;  %v802_v6 = vmov 10  }
   0x5   :  { %718 = vset.pattern.permute.xlu2 %v800_v4  ;;  %v896_v7 = vld [vmem:[%s1222_s5] sm:$0xff]  ;;  %v803_v8 = vmov 8   ;;  %v804_v9 = vmov 3   ;;  %v805_v10 = vmov 9   ;;  %v806_v11 = vmov 11   ;;  %s823_s26 = smov 112  }
   0x6   :  { %71 = vperm.xlu2 %718, %v44_v1   ;;  %v807_v12 = vmov 4   ;;  %v808_v13 = vmov 12   ;;  %v809_v14 = vmov 16   ;;  %v810_v15 = vmov 18   ;;  %v34_v24 = vld [vmem:[%s1218_s1] sm:$0x1] }
   0x7   :  { %v811_v16 = vmov 5   ;;  %v812_v17 = vmov 19   ;;  %v813_v18 = vmov 13   ;;  %v814_v19 = vmov 6   ;;  %v770_v33 = vld [vmem:[%s1217_s0] ss:$0 sm:$0xff] }
   0x8   :  { %v815_v20 = vmov 17   ;;  %v816_v21 = vmov 20   ;;  %v817_v22 = vmov 14   ;;  %v818_v23 = vmov 21   ;;  %s824_s27 = smov 96   ;;  %s825_s28 = smov 64  }
   0x9   :  { %v35_v25 = vadd.s32 4294967295, %v34_v24  ;;  %v39_v27 = vadd.s32 1, %v34_v24  ;;  %v819_v52 = vmov 22   ;;  %v820_v53 = vmov 7  }
   0xa   :  { %50 = vperm.xlu0 %716, %v44_v1   ;;  %v352_v1 = vld [vmem:[%s1223_s6] sm:$0xff]  ;;  %vm666_vm6 = vcmask 57344  }
   0xb   :  { %67 = vrot.lane.b32.xlu1 %v43_v0, %s801_s14  ;;  %vm36_vm0 = vcmp.ge.s32.totalorder %v35_v25, 0  ;;  %vm37_vm1 = vcmp.lt.s32.totalorder %v35_v25, 16  ;;  %vm40_vm3 = vcmp.ge.s32.totalorder %v39_v27, 0  ;;  %vm41_vm4 = vcmp.lt.s32.totalorder %v39_v27, 16 }
   0xc   :  { %726 = vset.pattern.permute.xlu1 %v802_v6  ;;  %vm939_vm2 = vmand %vm36_vm0, %vm37_vm1  ;;  %v821_v25 = vmov 23   ;;  %v822_v27 = vmov 15  }
   0xd   :  { %vm948_vm5 = vmand %vm40_vm3, %vm41_vm4 }
   0xe   :  { %719 = vset.pattern.permute.xlu2 %v799_v3 }
   0xf   :  { %82 = vperm.xlu2 %719, %v79_v5  }
  0x12   :  { %720 = vset.pattern.permute.xlu0 %v803_v8 }
  0x13   :  { %169 = vperm.xlu1 %726, %v896_v7   ;;  %102 = vperm.xlu0 %720, %v896_v7  }
  0x17   :  { %93 = vperm.xlu2 %719, %v896_v7  }
  0x1b   :  { %728 = vset.pattern.permute.xlu1 %v804_v9  ;;  %723 = vset.pattern.permute.xlu0 %v805_v10 }
  0x1c   :  { %193 = vperm.xlu1 %728, %v896_v7   ;;  %136 = vperm.xlu0 %723, %v896_v7  }
  0x1f   :  { %721 = vset.pattern.permute.xlu2 %v809_v14 }
  0x20   :  { %112 = vperm.xlu2 %721, %v896_v7  }
  0x24   :  { %729 = vset.pattern.permute.xlu1 %v806_v11  ;;  %727 = vset.pattern.permute.xlu0 %v810_v15 }
  0x25   :  { %202 = vperm.xlu1 %729, %v896_v7   ;;  %179 = vperm.xlu0 %727, %v896_v7  }
  0x28   :  { %722 = vset.pattern.permute.xlu2 %v797_v2 }
  0x29   :  { %127 = vperm.xlu2 %722, %v896_v7  }
  0x2d   :  { %731 = vset.pattern.permute.xlu1 %v807_v12  ;;  %730 = vset.pattern.permute.xlu0 %v812_v17 }
  0x2e   :  { %226 = vperm.xlu1 %731, %v896_v7   ;;  %212 = vperm.xlu0 %730, %v896_v7  }
  0x31   :  { %724 = vset.pattern.permute.xlu2 %v815_v20 }
  0x32   :  { %146 = vperm.xlu2 %724, %v896_v7  }
  0x36   :  { %732 = vset.pattern.permute.xlu1 %v808_v13  ;;  %733 = vset.pattern.permute.xlu0 %v816_v21 }
  0x37   :  { %235 = vperm.xlu1 %732, %v896_v7   ;;  %245 = vperm.xlu0 %733, %v896_v7  }
  0x3a   :  { %725 = vset.pattern.permute.xlu2 %v800_v4 }
  0x3b   :  { %160 = vperm.xlu2 %725, %v896_v7  }
  0x3f   :  { %734 = vset.pattern.permute.xlu1 %v811_v16  ;;  %736 = vset.pattern.permute.xlu0 %v818_v23 }
  0x40   :  { %259 = vperm.xlu1 %734, %v896_v7   ;;  %278 = vperm.xlu0 %736, %v896_v7  }
  0x43   :  { %742 = vset.pattern.permute.xlu2 %v821_v25 }
  0x48   :  { %735 = vset.pattern.permute.xlu1 %v813_v18  ;;  %739 = vset.pattern.permute.xlu0 %v819_v52 }
  0x49   :  { %268 = vperm.xlu1 %735, %v896_v7  }
  0x51   :  { %737 = vset.pattern.permute.xlu1 %v814_v19 }
  0x52   :  { %292 = vperm.xlu1 %737, %v896_v7  }
  0x5a   :  { %738 = vset.pattern.permute.xlu1 %v817_v22 }
  0x5b   :  { %301 = vperm.xlu1 %738, %v896_v7  }
  0x60   :  { %v72_v31 = vpop.permute.xlu2 %71 }
  0x63   :  { %740 = vset.pattern.permute.xlu1 %v820_v53 }
  0x69   :  { %v83_v44 = vpop.permute.xlu2 %82 }
  0x71   :  { %v998_v24 = vpop.permute.xlu2 %93 }
  0x74   :  { %v46_v26 = vpop.permute.xlu0 %45 }
  0x75   :  { %v60_v29 = vpop.permute.xlu1 %59  ;;  %v47_v30 = vsel %vm939_vm2, %v46_v26, 0.0  ;;  %v1003_v26 = vld [vmem:[%s1222_s5 + $0x8] sm:$0xff] }
  0x76   :  { %v54_v32 = vperm.slane %v47_v30, 0  ;;  %v65_v39 = vmul.f32 %v770_v33, %v60_v29 }
  0x7a   :  { %v113_v33 = vpop.permute.xlu2 %112 }
  0x7c   :  { %v51_v35 = vpop.permute.xlu0 %50 }
  0x7d   :  { %v56_v36 = vmul.f32 %v54_v32, %v51_v35  ;;  %v68_v37 = vpop.permute.xlu1 %67 }
  0x7e   :  { %v69_v38 = vsel %vm948_vm5, %v68_v37, 0.0 }
  0x7f   :  { %v75_v40 = vperm.slane %v69_v38, 0  ;;  %v66_v41 = vadd.f32 %v65_v39, %v56_v36 }
  0x81   :  { %v77_v42 = vmul.f32 %v75_v40, %v72_v31 }
  0x83   :  { %v78_v43 = vadd.f32 %v77_v42, %v66_v41  ;;  %v128_v35 = vpop.permute.xlu2 %127 }
  0x85   :  { %v85_v45 = vadd.f32 %v83_v44, %v78_v43  ;;  %v170_v46 = vpop.permute.xlu1 %169 }
  0x87   :  { %v954_v47 = vmax.f32 %v85_v45, 0.0 }
  0x89   :  { %v172_v48 = vperm.slane %v954_v47, 2  ;;  %88 = vrot.lane.b32.xlu1 %v954_v47, %s798_s13  ;;  %v187_v49 = vrot.slane %v954_v47, 3  ;;  %v154_v50 = vrot.slane %v954_v47, 2  ;;  %v205_v55 = vperm.slane %v954_v47, 3 }
  0x8a   :  { %v121_v57 = vrot.slane %v954_v47, 1  ;;  %v220_v59 = vrot.slane %v954_v47, 4  ;;  %v238_v61 = vperm.slane %v954_v47, 4  ;;  %v253_v63 = vrot.slane %v954_v47, 5 }
  0x8b   :  { %v961_v51 = vmul.f32 %v172_v48, %v170_v46  ;;  %189 = vrot.lane.b32.xlu2 %v187_v49, %s798_s13  ;;  %175 = vrot.lane.b32.xlu0 %v154_v50, %s801_s14  ;;  %v286_v29 = vrot.slane %v954_v47, 6  ;;  %v271_v30 = vperm.slane %v954_v47, 5  ;;  %v319_v36 = vrot.slane %v954_v47, 7 }
  0x8c   :  { %v147_v39 = vpop.permute.xlu2 %146  ;;  %v105_v43 = vperm.slane %v954_v47, 0 }
  0x8e   :  { %v967_v54 = vpop.permute.xlu1 %193 }
  0x91   :  { %108 = vrot.lane.b32.xlu1 %v954_v47, %s801_s14 }
  0x93   :  { %208 = vrot.lane.b32.xlu2 %v187_v49, %s801_s14  ;;  %311 = vperm.xlu0 %739, %v896_v7  }
  0x97   :  { %v203_v56 = vpop.permute.xlu1 %202 }
  0x98   :  { %v975_v58 = vmul.f32 %v205_v55, %v203_v56 }
  0x99   :  { %123 = vrot.lane.b32.xlu1 %v121_v57, %s798_s13 }
  0x9b   :  { %222 = vrot.lane.b32.xlu2 %v220_v59, %s798_s13  ;;  %743 = vset.pattern.permute.xlu0 %v799_v3 }
  0x9c   :  { %355 = vperm.xlu0 %743, %v352_v1  }
  0xa0   :  { %v981_v60 = vpop.permute.xlu1 %226 }
  0xa1   :  { %142 = vrot.lane.b32.xlu1 %v121_v57, %s801_s14 }
  0xa3   :  { %241 = vrot.lane.b32.xlu2 %v220_v59, %s801_s14 }
  0xa4   :  { %749 = vset.pattern.permute.xlu0 %v815_v20 }
  0xa5   :  { %420 = vperm.xlu0 %749, %v1003_v26  }
  0xa9   :  { %v236_v62 = vpop.permute.xlu1 %235  ;;  %156 = vrot.lane.b32.xlu1 %v154_v50, %s798_s13 }
  0xaa   :  { %v988_v0 = vmul.f32 %v238_v61, %v236_v62  ;;  %v139_v62 = vperm.slane %v954_v47, 1 }
  0xab   :  { %255 = vrot.lane.b32.xlu2 %v253_v63, %s798_s13 }
  0xad   :  { %752 = vset.pattern.permute.xlu0 %v810_v15  ;;  %v304_v15 = vperm.slane %v954_v47, 6 }
  0xae   :  { %453 = vperm.xlu0 %752, %v1003_v26  }
  0xb1   :  { %325 = vperm.xlu1 %740, %v896_v7  }
  0xb2   :  { %v995_v5 = vpop.permute.xlu1 %259 }
  0xb3   :  { %274 = vrot.lane.b32.xlu2 %v253_v63, %s801_s14 }
  0xb6   :  { %755 = vset.pattern.permute.xlu0 %v812_v17  ;;  %v1035_v17 = vpop.permute.xlu2 %160 }
  0xb7   :  { %486 = vperm.xlu0 %755, %v1003_v26  }
  0xb9   :  { %741 = vset.pattern.permute.xlu1 %v822_v27 }
  0xba   :  { %334 = vperm.xlu1 %741, %v896_v7  }
  0xbb   :  { %v269_v31 = vpop.permute.xlu1 %268  ;;  %288 = vrot.lane.b32.xlu2 %v286_v29, %s798_s13 }
  0xbc   :  { %v1012_v32 = vmul.f32 %v271_v30, %v269_v31 }
  0xbf   :  { %758 = vset.pattern.permute.xlu0 %v816_v21 }
  0xc2   :  { %744 = vset.pattern.permute.xlu1 %v799_v3 }
  0xc3   :  { %307 = vrot.lane.b32.xlu2 %v286_v29, %s801_s14  ;;  %367 = vperm.xlu1 %744, %v1003_v26  }
  0xc4   :  { %v1019_v20 = vpop.permute.xlu1 %292 }
  0xcb   :  { %321 = vrot.lane.b32.xlu2 %v319_v36, %s798_s13  ;;  %746 = vset.pattern.permute.xlu1 %v809_v14  ;;  %v103_v14 = vpop.permute.xlu0 %102 }
  0xcc   :  { %386 = vperm.xlu1 %746, %v1003_v26   ;;  %v106_v45 = vmul.f32 %v105_v43, %v103_v14 }
  0xcd   :  { %v302_v37 = vpop.permute.xlu1 %301 }
  0xce   :  { %v1028_v38 = vmul.f32 %v304_v15, %v302_v37 }
  0xd3   :  { %340 = vrot.lane.b32.xlu2 %v319_v36, %s801_s14 }
  0xd4   :  { %748 = vset.pattern.permute.xlu1 %v805_v10  ;;  %v137_v10 = vpop.permute.xlu0 %136 }
  0xd5   :  { %410 = vperm.xlu1 %748, %v1003_v26  }
  0xdb   :  { %344 = vperm.xlu2 %742, %v896_v7  }
  0xdd   :  { %750 = vset.pattern.permute.xlu1 %v800_v4  ;;  %v180_v4 = vpop.permute.xlu0 %179 }
  0xde   :  { %434 = vperm.xlu1 %750, %v1003_v26  }
  0xe3   :  { %745 = vset.pattern.permute.xlu2 %v803_v8 }
  0xe4   :  { %376 = vperm.xlu2 %745, %v1003_v26  }
  0xe5   :  { %v190_v21 = vpop.permute.xlu2 %189 }
  0xe6   :  { %751 = vset.pattern.permute.xlu1 %v802_v6  ;;  %v213_v6 = vpop.permute.xlu0 %212 }
  0xe7   :  { %443 = vperm.xlu1 %751, %v1003_v26  }
  0xec   :  { %747 = vset.pattern.permute.xlu2 %v797_v2 }
  0xed   :  { %v1044_v7 = vpop.permute.xlu2 %208  ;;  %401 = vperm.xlu2 %747, %v1003_v26  }
  0xee   :  { %v246_v46 = vpop.permute.xlu0 %245 }
  0xef   :  { %753 = vset.pattern.permute.xlu1 %v804_v9 }
  0xf0   :  { %467 = vperm.xlu1 %753, %v1003_v26  }
  0xf5   :  { %v223_v8 = vpop.permute.xlu2 %222  ;;  %767 = vset.pattern.permute.xlu2 %v821_v25 }
  0xf6   :  { %v279_v63 = vpop.permute.xlu0 %278 }
  0xf8   :  { %754 = vset.pattern.permute.xlu1 %v806_v11 }
  0xf9   :  { %476 = vperm.xlu1 %754, %v1003_v26  }
  0xfb   :  { %v89_v40 = vpop.permute.xlu1 %88 }
  0xfc   :  { %v90_v2 = vsel %vm939_vm2, %v89_v40, 0.0  ;;  %v191_v40 = vsel %vm939_vm2, %v190_v21, 0.0 }
  0xfd   :  { %v242_v41 = vpop.permute.xlu2 %241  ;;  %v97_v42 = vperm.slane %v90_v2, 0 }
  0xfe   :  { %v176_v36 = vpop.permute.xlu0 %175 }
  0xff   :  { %v99_v9 = vmul.f32 %v97_v42, %v998_v24  ;;  %v140_v24 = vmul.f32 %v139_v62, %v137_v10  ;;  %v177_v14 = vsel %vm948_vm5, %v176_v36, 0.0 }
 0x100   :  { %v183_v2 = vperm.slane %v177_v14, 0 }
 0x101   :  { %756 = vset.pattern.permute.xlu1 %v807_v12  ;;  %v107_v50 = vadd.f32 %v106_v45, %v99_v9  ;;  %v197_v9 = vperm.slane %v191_v40, 0 }
 0x102   :  { %500 = vperm.xlu1 %756, %v1003_v26  }
 0x103   :  { %v109_v44 = vpop.permute.xlu1 %108  ;;  %v199_v21 = vmul.f32 %v197_v9, %v967_v54 }
 0x104   :  { %v110_v11 = vsel %vm948_vm5, %v109_v44, 0.0 }
 0x105   :  { %v116_v48 = vperm.slane %v110_v11, 0  ;;  %v256_v49 = vpop.permute.xlu2 %255  ;;  %v185_v11 = vmul.f32 %v183_v2, %v180_v4 }
 0x107   :  { %v118_v55 = vmul.f32 %v116_v48, %v113_v33 }
 0x109   :  { %v119_v56 = vadd.f32 %v118_v55, %v107_v50  ;;  %v224_v50 = vsel %vm939_vm2, %v223_v8, 0.0 }
 0x10a   :  { %757 = vset.pattern.permute.xlu1 %v808_v13 }
 0x10b   :  { %509 = vperm.xlu1 %757, %v1003_v26   ;;  %v124_v12 = vpop.permute.xlu1 %123 }
 0x10c   :  { %v125_v57 = vsel %vm939_vm2, %v124_v12, 0.0  ;;  %v230_v12 = vperm.slane %v224_v50, 0 }
 0x10d   :  { %v131_v59 = vperm.slane %v125_v57, 0  ;;  %v275_v61 = vpop.permute.xlu2 %274  ;;  %v243_v57 = vsel %vm948_vm5, %v242_v41, 0.0 }
 0x10e   :  { %v232_v4 = vmul.f32 %v230_v12, %v981_v60 }
 0x10f   :  { %v133_v1 = vmul.f32 %v131_v59, %v128_v35 }
 0x111   :  { %v134_v25 = vadd.f32 %v133_v1, %v119_v56  ;;  %v249_v1 = vperm.slane %v243_v57, 0 }
 0x113   :  { %v143_v29 = vpop.permute.xlu1 %142  ;;  %v141_v30 = vadd.f32 %v140_v24, %v134_v25  ;;  %759 = vset.pattern.permute.xlu1 %v811_v16 }
 0x114   :  { %v144_v13 = vsel %vm948_vm5, %v143_v29, 0.0  ;;  %v276_v29 = vsel %vm948_vm5, %v275_v61, 0.0 }
 0x115   :  { %v289_v31 = vpop.permute.xlu2 %288  ;;  %v150_v33 = vperm.slane %v144_v13, 0 }
 0x117   :  { %v152_v15 = vmul.f32 %v150_v33, %v147_v39  ;;  %v210_v39 = vsel %vm948_vm5, %v1044_v7, 0.0  ;;  %v257_v7 = vsel %vm939_vm2, %v256_v49, 0.0  ;;  %v282_v49 = vperm.slane %v276_v29, 0 }
 0x118   :  { %v216_v55 = vperm.slane %v210_v39, 0  ;;  %v263_v24 = vperm.slane %v257_v7, 0 }
 0x119   :  { %v153_v16 = vadd.f32 %v152_v15, %v141_v30  ;;  %v251_v30 = vmul.f32 %v249_v1, %v246_v46 }
 0x11a   :  { %v218_v59 = vmul.f32 %v216_v55, %v213_v6  ;;  %v265_v6 = vmul.f32 %v263_v24, %v995_v5 }
 0x11b   :  { %v157_v37 = vpop.permute.xlu1 %156 }
 0x11c   :  { %v158_v35 = vsel %vm939_vm2, %v157_v37, 0.0  ;;  %v284_v37 = vmul.f32 %v282_v49, %v279_v63 }
 0x11d   :  { %v164_v10 = vperm.slane %v158_v35, 0  ;;  %v308_v43 = vpop.permute.xlu2 %307  ;;  %v312_v35 = vpop.permute.xlu0 %311 }
 0x11e   :  { %v309_v36 = vsel %vm948_vm5, %v308_v43, 0.0  ;;  %v337_v43 = vperm.slane %v954_v47, 7 }
 0x11f   :  { %v166_v42 = vmul.f32 %v164_v10, %v1035_v17 }
 0x121   :  { %v167_v44 = vadd.f32 %v166_v42, %v153_v16 }
 0x123   :  { %v174_v45 = vadd.f32 %v961_v51, %v167_v44  ;;  %v326_v48 = vpop.permute.xlu1 %325 }
 0x125   :  { %v186_v56 = vadd.f32 %v185_v11, %v174_v45  ;;  %v322_v51 = vpop.permute.xlu2 %321 }
 0x127   :  { %v200_v17 = vadd.f32 %v199_v21, %v186_v56  ;;  %v356_v21 = vpop.permute.xlu0 %355 }
 0x129   :  { %v207_v62 = vadd.f32 %v975_v58, %v200_v17  ;;  %v290_v58 = vsel %vm939_vm2, %v289_v31, 0.0  ;;  %v315_v31 = vperm.slane %v309_v36, 0 }
 0x12a   :  { %v296_v33 = vperm.slane %v290_v58, 0 }
 0x12b   :  { %v219_v8 = vadd.f32 %v218_v59, %v207_v62  ;;  %v317_v16 = vmul.f32 %v315_v31, %v312_v35 }
 0x12c   :  { %v335_v25 = vpop.permute.xlu1 %334  ;;  %v298_v46 = vmul.f32 %v296_v33, %v1019_v20 }
 0x12d   :  { %v233_v54 = vadd.f32 %v232_v4, %v219_v8  ;;  %v341_v15 = vpop.permute.xlu2 %340  ;;  %v338_v20 = vmul.f32 %v337_v43, %v335_v25 }
 0x12e   :  { %v342_v63 = vsel %vm948_vm5, %v341_v15, 0.0 }
 0x12f   :  { %v240_v41 = vadd.f32 %v988_v0, %v233_v54  ;;  %v323_v0 = vsel %vm939_vm2, %v322_v51, 0.0  ;;  %v348_v11 = vperm.slane %v342_v63, 0  ;;  %v421_v24 = vpop.permute.xlu0 %420 }
 0x130   :  { %v329_v40 = vperm.slane %v323_v0, 0 }
 0x131   :  { %v252_v13 = vadd.f32 %v251_v30, %v240_v41 }
 0x133   :  { %v266_v60 = vadd.f32 %v265_v6, %v252_v13 }
 0x135   :  { %v273_v14 = vadd.f32 %v1012_v32, %v266_v60  ;;  %v1096_v61 = vpop.permute.xlu1 %367  ;;  %v331_v32 = vmul.f32 %v329_v40, %v326_v48  ;;  %v345_v9 = vpop.permute.xlu2 %344 }
 0x136   :  { %v350_v50 = vmul.f32 %v348_v11, %v345_v9 }
 0x137   :  { %v285_v5 = vadd.f32 %v284_v37, %v273_v14  ;;  %v454_v29 = vpop.permute.xlu0 %453 }
 0x139   :  { %v299_v10 = vadd.f32 %v298_v46, %v285_v5 }
 0x13b   :  { %v306_v2 = vadd.f32 %v1028_v38, %v299_v10 }
 0x13d   :  { %v318_v42 = vadd.f32 %v317_v16, %v306_v2 }
 0x13e   :  { %v1105_v44 = vpop.permute.xlu1 %386  ;;  %v377_v17 = vpop.permute.xlu2 %376 }
 0x13f   :  { %v332_v39 = vadd.f32 %v331_v32, %v318_v42  ;;  %v487_v6 = vpop.permute.xlu0 %486 }
 0x141   :  { %v339_v45 = vadd.f32 %v338_v20, %v332_v39 }
 0x143   :  { %v351_v55 = vadd.f32 %v350_v50, %v339_v45 }
 0x145   :  { %v358_v56 = vadd.f32 %v356_v21, %v351_v55 }
 0x147   :  { %v1107_v38 = vmax.f32 %v358_v56, 0.0  ;;  %v411_v12 = vpop.permute.xlu1 %410  ;;  %v402_v1 = vpop.permute.xlu2 %401 }
 0x149   :  { %v413_v57 = vperm.slane %v1107_v38, 1  ;;  %382 = vrot.lane.b32.xlu2 %v1107_v38, %s801_s14  ;;  %362 = vrot.lane.b32.xlu1 %v1107_v38, %s798_s13  ;;  %v379_v47 = vperm.slane %v1107_v38, 0  ;;  %v395_v48 = vrot.slane %v1107_v38, 1  ;;  %v428_v7 = vrot.slane %v1107_v38, 2 }
 0x14a   :  { %v461_v51 = vrot.slane %v1107_v38, 3  ;;  %v560_v4 = vrot.slane %v1107_v38, 6  ;;  %v593_v8 = vrot.slane %v1107_v38, 7  ;;  %v446_v39 = vperm.slane %v1107_v38, 2 }
 0x14b   :  { %v1116_v59 = vmul.f32 %v413_v57, %v411_v12  ;;  %v1118_v62 = vmul.f32 %v379_v47, %v377_v17  ;;  %397 = vrot.lane.b32.xlu0 %v395_v48, %s798_s13 }
 0x151   :  { %533 = vperm.xlu1 %759, %v1003_v26   ;;  %430 = vrot.lane.b32.xlu2 %v428_v7, %s798_s13 }
 0x153   :  { %416 = vrot.lane.b32.xlu0 %v395_v48, %s801_s14 }
 0x159   :  { %760 = vset.pattern.permute.xlu1 %v813_v18  ;;  %449 = vrot.lane.b32.xlu2 %v428_v7, %s801_s14  ;;  %v494_v18 = vrot.slane %v1107_v38, 4 }
 0x15a   :  { %542 = vperm.xlu1 %760, %v1003_v26  }
 0x15b   :  { %519 = vperm.xlu0 %758, %v1003_v26  }
 0x161   :  { %463 = vrot.lane.b32.xlu2 %v461_v51, %s798_s13 }
 0x162   :  { %762 = vset.pattern.permute.xlu1 %v814_v19  ;;  %v685_v19 = vld [vmem:[%s1223_s6 + $0x8] sm:$0xff] }
 0x163   :  { %566 = vperm.xlu1 %762, %v1003_v26   ;;  %761 = vset.pattern.permute.xlu0 %v818_v23  ;;  %v435_v23 = vpop.permute.xlu1 %434 }
 0x164   :  { %552 = vperm.xlu0 %761, %v1003_v26  }
 0x169   :  { %482 = vrot.lane.b32.xlu2 %v461_v51, %s801_s14 }
 0x16b   :  { %763 = vset.pattern.permute.xlu1 %v817_v22  ;;  %v527_v22 = vrot.slane %v1107_v38, 5 }
 0x16c   :  { %575 = vperm.xlu1 %763, %v1003_v26   ;;  %764 = vset.pattern.permute.xlu0 %v819_v52  ;;  %v635_v52 = vld [vmem:[%s1224_s7] sm:$0xff] }
 0x16d   :  { %585 = vperm.xlu0 %764, %v1003_v26  }
 0x171   :  { %496 = vrot.lane.b32.xlu2 %v494_v18, %s798_s13 }
 0x174   :  { %765 = vset.pattern.permute.xlu1 %v820_v53  ;;  %v444_v53 = vpop.permute.xlu1 %443 }
 0x175   :  { %599 = vperm.xlu1 %765, %v1003_v26   ;;  %768 = vset.pattern.permute.xlu0 %v799_v3  ;;  %v447_v21 = vmul.f32 %v446_v39, %v444_v53 }
 0x176   :  { %630 = vperm.xlu0 %768, %v685_v19  }
 0x179   :  { %515 = vrot.lane.b32.xlu2 %v494_v18, %s801_s14 }
 0x17d   :  { %766 = vset.pattern.permute.xlu1 %v822_v27  ;;  %v468_v27 = vpop.permute.xlu1 %467 }
 0x17e   :  { %608 = vperm.xlu1 %766, %v1003_v26  }
 0x181   :  { %529 = vrot.lane.b32.xlu2 %v527_v22, %s798_s13 }
 0x185   :  { %v477_v54 = vpop.permute.xlu1 %476 }
 0x186   :  { %769 = vset.pattern.permute.xlu1 %v799_v3 }
 0x187   :  { %638 = vperm.xlu1 %769, %v635_v52  }
 0x189   :  { %548 = vrot.lane.b32.xlu2 %v527_v22, %s801_s14 }
 0x18d   :  { %v501_v3 = vpop.permute.xlu1 %500 }
 0x191   :  { %562 = vrot.lane.b32.xlu2 %v560_v4, %s798_s13 }
 0x195   :  { %v510_v41 = vpop.permute.xlu1 %509 }
 0x199   :  { %581 = vrot.lane.b32.xlu2 %v560_v4, %s801_s14 }
 0x1a1   :  { %595 = vrot.lane.b32.xlu2 %v593_v8, %s798_s13  ;;  %s675_s13 = sshll.u32 %s1226_s9, 4  ;;  %s676_s13 = int_to_ptr.hbm [resolvable:$true] %s675_s13 }
 0x1a3   :  { %v383_v25 = vpop.permute.xlu2 %382 }
 0x1a4   :  { %v384_v49 = vsel %vm948_vm5, %v383_v25, 0.0 }
 0x1a5   :  { %v390_v36 = vperm.slane %v384_v49, 0 }
 0x1a7   :  { %v392_v46 = vmul.f32 %v390_v36, %v1105_v44 }
 0x1a9   :  { %614 = vrot.lane.b32.xlu2 %v593_v8, %s801_s14 }
 0x1ab   :  { %v431_v30 = vpop.permute.xlu2 %430 }
 0x1ac   :  { %v432_v40 = vsel %vm939_vm2, %v431_v30, 0.0 }
 0x1ad   :  { %v438_v42 = vperm.slane %v432_v40, 0 }
 0x1af   :  { %v440_v20 = vmul.f32 %v438_v42, %v435_v23 }
 0x1b1   :  { %618 = vperm.xlu2 %767, %v1003_v26  }
 0x1b3   :  { %v450_v58 = vpop.permute.xlu2 %449 }
 0x1b4   :  { %v451_v43 = vsel %vm948_vm5, %v450_v58, 0.0 }
 0x1b5   :  { %v457_v11 = vperm.slane %v451_v43, 0 }
 0x1b7   :  { %v459_v17 = vmul.f32 %v457_v11, %v454_v29 }
 0x1bb   :  { %v363_v13 = vpop.permute.xlu1 %362  ;;  %v464_v33 = vpop.permute.xlu2 %463 }
 0x1bc   :  { %v364_v60 = vsel %vm939_vm2, %v363_v13, 0.0  ;;  %v465_v44 = vsel %vm939_vm2, %v464_v33, 0.0 }
 0x1bd   :  { %v371_v15 = vperm.slane %v364_v60, 0  ;;  %v398_v37 = vpop.permute.xlu0 %397  ;;  %v471_v55 = vperm.slane %v465_v44, 0  ;;  %v545_v60 = vperm.slane %v1107_v38, 5 }
 0x1be   :  { %v399_v14 = vsel %vm939_vm2, %v398_v37, 0.0 }
 0x1bf   :  { %v373_v0 = vmul.f32 %v371_v15, %v1096_v61  ;;  %v405_v26 = vperm.slane %v399_v14, 0 }
 0x1c1   :  { %v381_v31 = vadd.f32 %v1118_v62, %v373_v0  ;;  %v407_v35 = vmul.f32 %v405_v26, %v402_v1  ;;  %v473_v62 = vmul.f32 %v471_v55, %v468_v27  ;;  %v512_v1 = vperm.slane %v1107_v38, 4 }
 0x1c3   :  { %v393_v5 = vadd.f32 %v392_v46, %v381_v31  ;;  %v483_v10 = vpop.permute.xlu2 %482  ;;  %v534_v47 = vpop.permute.xlu1 %533  ;;  %v513_v25 = vmul.f32 %v512_v1, %v510_v41 }
 0x1c4   :  { %v484_v12 = vsel %vm948_vm5, %v483_v10, 0.0 }
 0x1c5   :  { %v408_v2 = vadd.f32 %v407_v35, %v393_v5  ;;  %v417_v16 = vpop.permute.xlu0 %416  ;;  %v490_v7 = vperm.slane %v484_v12, 0  ;;  %v611_v12 = vperm.slane %v1107_v38, 7 }
 0x1c6   :  { %v418_v63 = vsel %vm948_vm5, %v417_v16, 0.0  ;;  %v578_v16 = vperm.slane %v1107_v38, 6 }
 0x1c7   :  { %v415_v32 = vadd.f32 %v1116_v59, %v408_v2  ;;  %v424_v61 = vperm.slane %v418_v63, 0  ;;  %v479_v59 = vperm.slane %v1107_v38, 3  ;;  %v492_v52 = vmul.f32 %v490_v7, %v487_v6 }
 0x1c9   :  { %v426_v9 = vmul.f32 %v424_v61, %v421_v24  ;;  %v480_v18 = vmul.f32 %v479_v59, %v477_v54 }
 0x1cb   :  { %v427_v45 = vadd.f32 %v426_v9, %v415_v32  ;;  %v497_v50 = vpop.permute.xlu2 %496 }
 0x1cc   :  { %v498_v48 = vsel %vm939_vm2, %v497_v50, 0.0  ;;  %v543_v58 = vpop.permute.xlu1 %542 }
 0x1cd   :  { %v441_v56 = vadd.f32 %v440_v20, %v427_v45  ;;  %v504_v22 = vperm.slane %v498_v48, 0  ;;  %v520_v27 = vpop.permute.xlu0 %519  ;;  %v546_v37 = vmul.f32 %v545_v60, %v543_v58 }
 0x1cf   :  { %v448_v57 = vadd.f32 %v447_v21, %v441_v56  ;;  %v506_v24 = vmul.f32 %v504_v22, %v501_v3 }
 0x1d1   :  { %v460_v51 = vadd.f32 %v459_v17, %v448_v57 }
 0x1d3   :  { %v474_v19 = vadd.f32 %v473_v62, %v460_v51  ;;  %v516_v23 = vpop.permute.xlu2 %515 }
 0x1d4   :  { %v517_v4 = vsel %vm948_vm5, %v516_v23, 0.0 }
 0x1d5   :  { %v481_v53 = vadd.f32 %v480_v18, %v474_v19  ;;  %v523_v30 = vperm.slane %v517_v4, 0  ;;  %v567_v0 = vpop.permute.xlu1 %566 }
 0x1d6   :  { %v553_v31 = vpop.permute.xlu0 %552 }
 0x1d7   :  { %v493_v8 = vadd.f32 %v492_v52, %v481_v53  ;;  %v525_v33 = vmul.f32 %v523_v30, %v520_v27 }
 0x1d9   :  { %v507_v29 = vadd.f32 %v506_v24, %v493_v8 }
 0x1db   :  { %v514_v49 = vadd.f32 %v513_v25, %v507_v29  ;;  %v530_v13 = vpop.permute.xlu2 %529  ;;  %v648_v29 = vld [vmem:[%s1219_s2] sm:$0x1]  ;;  %s826_s2 = smov [#allocation3]  }
 0x1dc   :  { %v531_v54 = vsel %vm939_vm2, %v530_v13, 0.0  ;;  %s673_s10 = sshll.u32 %s826_s2, 4  ;;  %s674_s10 = int_to_ptr.vmem [resolvable:$true] %s673_s10 }
 0x1dd   :  { %v537_v6 = vperm.slane %v531_v54, 0  ;;  %v526_v36 = vadd.f32 %v525_v33, %v514_v49 }
 0x1de   :  { %v576_v10 = vpop.permute.xlu1 %575 }
 0x1df   :  { %v539_v15 = vmul.f32 %v537_v6, %v534_v47  ;;  %v579_v32 = vmul.f32 %v578_v16, %v576_v10  ;;  %v586_v11 = vpop.permute.xlu0 %585  ;;  %v664_v6 = vstv %s1225_s8 }
 0x1e1   :  { %v540_v14 = vadd.f32 %v539_v15, %v526_v36 }
 0x1e3   :  { %v549_v3 = vpop.permute.xlu2 %548  ;;  %v547_v41 = vadd.f32 %v546_v37, %v540_v14 }
 0x1e4   :  { %v550_v26 = vsel %vm948_vm5, %v549_v3, 0.0 }
 0x1e5   :  { %v556_v46 = vperm.slane %v550_v26, 0 }
 0x1e7   :  { %v558_v5 = vmul.f32 %v556_v46, %v553_v31  ;;  %v600_v44 = vpop.permute.xlu1 %599 }
 0x1e8   :  { %v631_v22 = vpop.permute.xlu0 %630 }
 0x1e9   :  { %v559_v63 = vadd.f32 %v558_v5, %v547_v41 }
 0x1eb   :  { %v563_v35 = vpop.permute.xlu2 %562 }
 0x1ec   :  { %v564_v40 = vsel %vm939_vm2, %v563_v35, 0.0 }
 0x1ed   :  { %v570_v2 = vperm.slane %v564_v40, 0 }
 0x1ef   :  { %v572_v42 = vmul.f32 %v570_v2, %v567_v0 }
 0x1f0   :  { %v609_v56 = vpop.permute.xlu1 %608 }
 0x1f1   :  { %v573_v61 = vadd.f32 %v572_v42, %v559_v63  ;;  %v612_v47 = vmul.f32 %v611_v12, %v609_v56 }
 0x1f3   :  { %v582_v43 = vpop.permute.xlu2 %581  ;;  %v580_v9 = vadd.f32 %v579_v32, %v573_v61 }
 0x1f4   :  { %v583_v39 = vsel %vm948_vm5, %v582_v43, 0.0 }
 0x1f5   :  { %v589_v20 = vperm.slane %v583_v39, 0 }
 0x1f7   :  { %v591_v45 = vmul.f32 %v589_v20, %v586_v11 }
 0x1f9   :  { %v592_v17 = vadd.f32 %v591_v45, %v580_v9  ;;  %v639_v52 = vpop.permute.xlu1 %638 }
 0x1fb   :  { %v596_v50 = vpop.permute.xlu2 %595 }
 0x1fc   :  { %v597_v21 = vsel %vm939_vm2, %v596_v50, 0.0 }
 0x1fd   :  { %v603_v55 = vperm.slane %v597_v21, 0 }
 0x1ff   :  { %v605_v57 = vmul.f32 %v603_v55, %v600_v44 }
 0x201   :  { %v606_v48 = vadd.f32 %v605_v57, %v592_v17 }
 0x203   :  { %v615_v59 = vpop.permute.xlu2 %614  ;;  %v613_v62 = vadd.f32 %v612_v47, %v606_v48 }
 0x204   :  { %v616_v7 = vsel %vm948_vm5, %v615_v59, 0.0 }
 0x205   :  { %v622_v51 = vperm.slane %v616_v7, 0 }
 0x20b   :  { %v619_v18 = vpop.permute.xlu2 %618 }
 0x20c   :  { %v624_v19 = vmul.f32 %v622_v51, %v619_v18 }
 0x20e   :  { %v625_v23 = vadd.f32 %v624_v19, %v613_v62 }
 0x210   :  { %v633_v28 = vadd.f32 %v631_v22, %v625_v23 }
 0x212   :  { %v634_v53 = vmax.f32 %v633_v28, 0.0 }
 0x214   :  { %v641_v4 = vmul.f32 %v639_v52, %v634_v53 }
 0x216   :  { %v642_v1 = vrot.slane %v641_v4, 4 }
 0x218   :  { %v643_v38 = vadd.f32 %v642_v1, %v641_v4 }
 0x21a   :  { %v644_v8 = vrot.slane %v643_v38, 2 }
 0x21c   :  { %v645_v24 = vadd.f32 %v644_v8, %v643_v38 }
 0x21e   :  { %v646_v25 = vrot.slane %v645_v24, 1 }
 0x220   :  { %v647_v34 = vadd.f32 %v646_v25, %v645_v24 }
 0x222   :  { %v649_v30 = vmul.f32 %v648_v29, %v647_v34 }
 0x224   :  { %650 = vrot.lane.b32.xlu2 %v649_v30, %s801_s14 }
 0x27e   :  { %v651_v58 = vpop.permute.xlu2 %650 }
 0x27f   :  { %v652_v27 = vadd.f32 %v651_v58, %v649_v30 }
 0x281   :  { %653 = vrot.lane.b32.xlu1 %v652_v27, %s823_s26 }
 0x2f3   :  { %v654_v49 = vpop.permute.xlu1 %653 }
 0x2f4   :  { %v655_v13 = vadd.f32 %v654_v49, %v652_v27 }
 0x2f6   :  { %656 = vrot.lane.b32.xlu2 %v655_v13, %s824_s27 }
 0x350   :  { %v657_v54 = vpop.permute.xlu2 %656 }
 0x351   :  { %v658_v33 = vadd.f32 %v657_v54, %v655_v13 }
 0x353   :  { %659 = vrot.lane.b32.xlu0 %v658_v33, %s825_s28 }
 0x3c5   :  { %v660_v60 = vpop.permute.xlu0 %659 }
 0x3c6   :  { %v661_v36 = vadd.f32 %v660_v60, %v658_v33 }
 0x3c8   :  { %v665_v15 = vadd.f32 %v664_v6, %v661_v36 }
 0x3ca   :  { %667 = vst.msk [vmem:[#allocation3] sm:$0x1] %vm666_vm6, %v665_v15 }
 0x3cb   :  { %678 = dma.vmem_to_hbm [thread:$0]  %s674_s10, 16, %s676_s13, [#allocation4]  }
 0x3cc   :  { %795 = dma.done.wait [#allocation4], 16  }
 0x3cd   :  { %796 = vsyncadd [#allocation4], 4294967280 }
 0x3ce   :  { %683 = vsyncpa [#allocation4], 1 }

</bundles_post_ra>
